<compile_context>
chip_gen: v7x
topology: tpu7x:2x2x1
jax: 0.10.0
libtpu: 0.0.40
codegen_flags: <defaults>
</compile_context>

<pallas_src>
import functools
import math

import jax
import jax.numpy as jnp
from jax.experimental import pallas as pl
from jax.experimental.pallas import tpu as pltpu

_EPS = 1e-3  # BatchNorm eps used throughout the PyTorch module
NB128_DILATIONS = [2, 4, 8, 16, 2, 4, 8, 16]

_TM = 256          # M tile (rows of im2col patches)
_TN_MAX = 256      # N tile cap (output channels)
_TK_MAX = 1024     # contractions above this get zero-padded 512-wide K tiles
_VMEM_LIMIT = 32 * 1024 * 1024  # explicit scoped-VMEM budget (safe on v5e/v6e/v7x)


def _round_up(x, m):
    return ((x + m - 1) // m) * m


# ----------------------------- Pallas kernels -----------------------------

def _epilogue(acc, s, b, r, relu):
    y = acc * s + b            # f32 epilogue (scale/shift fold bias + BN)
    if r is not None:
        y = y + r              # residual (bf16 -> promoted to f32)
    if relu:
        y = jnp.maximum(y, 0.0)
    return y


def _mm_kernel(x_ref, w_ref, s_ref, b_ref, o_ref, acc_ref, *, relu):
    @pl.when(pl.program_id(2) == 0)
    def _():
        acc_ref[...] = jnp.zeros_like(acc_ref)

    acc_ref[...] += jnp.dot(x_ref[...], w_ref[...],
                            preferred_element_type=jnp.float32)

    @pl.when(pl.program_id(2) == pl.num_programs(2) - 1)
    def _():
        y = _epilogue(acc_ref[...], s_ref[...], b_ref[...], None, relu)
        o_ref[...] = y.astype(o_ref.dtype)


def _mm_res_kernel(x_ref, w_ref, s_ref, b_ref, r_ref, o_ref, acc_ref, *, relu):
    @pl.when(pl.program_id(2) == 0)
    def _():
        acc_ref[...] = jnp.zeros_like(acc_ref)

    acc_ref[...] += jnp.dot(x_ref[...], w_ref[...],
                            preferred_element_type=jnp.float32)

    @pl.when(pl.program_id(2) == pl.num_programs(2) - 1)
    def _():
        y = _epilogue(acc_ref[...], s_ref[...], b_ref[...], r_ref[...], relu)
        o_ref[...] = y.astype(o_ref.dtype)


def _pool_bn_relu_kernel(a_ref, b_ref, c_ref, d_ref, s_ref, t_ref, o_ref):
    m = jnp.maximum(jnp.maximum(a_ref[...], b_ref[...]),
                    jnp.maximum(c_ref[...], d_ref[...]))
    y = m.astype(jnp.float32) * s_ref[...] + t_ref[...]
    o_ref[...] = jnp.maximum(y, 0.0).astype(o_ref.dtype)


# ------------------------ fused matmul wrapper ------------------------------

def fused_matmul(x, w, scale, shift, *, relu, residual=None,
                 out_dtype=jnp.bfloat16):
    """(M,K)@(K,N) * scale[N] + shift[N] (+ residual[M,N]) (+ ReLU) on the MXU.

    Tiled grid (M, N, K) with a VMEM f32 accumulator; bf16 operands.
    No host-side padding / output slicing in the common case: edge blocks use
    full-extent or masked partial tiles.
    """
    M, K = x.shape
    N = w.shape[1]
    x = x.astype(jnp.bfloat16)
    w = w.astype(jnp.bfloat16)
    scale = jnp.asarray(scale, jnp.float32).reshape(1, N)
    shift = jnp.asarray(shift, jnp.float32).reshape(1, N)

    # --- K tiling: every ERFNet contraction has K <= 640 -> single full-K step
    # (no padding).  Very large K falls back to zero-padded 512-wide tiles.
    if K <= _TK_MAX:
        TK, Kp = K, K
    else:
        TK = 512
        Kp = _round_up(K, TK)
        x = jnp.pad(x, ((0, 0), (0, Kp - K)))
        w = jnp.pad(w, ((0, Kp - K), (0, 0)))
    nk = Kp // TK

    # --- N tiling: lane-dense 128-multiples when possible, else full-extent
    # (small-channel layers) so no output slice/copy is ever needed.
    TN = min(N, _TN_MAX) if N % 128 == 0 else N
    TM = min(M, _TM)

    grid = (pl.cdiv(M, TM), pl.cdiv(N, TN), nk)

    in_specs = [
        pl.BlockSpec((TM, TK), lambda i, j, k: (i, k)),   # activations: stream
        pl.BlockSpec((TK, TN), lambda i, j, k: (k, j)),   # weights: const in M
        pl.BlockSpec((1, TN), lambda i, j, k: (0, j)),    # scale: const in M,K
        pl.BlockSpec((1, TN), lambda i, j, k: (0, j)),    # shift: const in M,K
    ]
    args = [x, w, scale, shift]
    if residual is not None:
        in_specs.append(pl.BlockSpec((TM, TN), lambda i, j, k: (i, j)))
        args.append(residual)
        kern = functools.partial(_mm_res_kernel, relu=relu)
    else:
        kern = functools.partial(_mm_kernel, relu=relu)

    return pl.pallas_call(
        kern,
        out_shape=jax.ShapeDtypeStruct((M, N), out_dtype),
        grid=grid,
        in_specs=in_specs,
        out_specs=pl.BlockSpec((TM, TN), lambda i, j, k: (i, j)),
        scratch_shapes=[pltpu.VMEM((TM, TN), jnp.float32)],
        compiler_params=pltpu.CompilerParams(
            dimension_semantics=("parallel", "parallel", "arbitrary"),
            vmem_limit_bytes=_VMEM_LIMIT,
        ),
    )(*args)


def maxpool_bn_relu(x, scale, shift):
    """Fused 2x2/stride-2 max-pool + per-channel BN + ReLU (NHWC)."""
    B, H, W, C = x.shape
    Ho, Wo = H // 2, W // 2
    x = x[:, :2 * Ho, :2 * Wo, :]
    quads = [x[:, di::2, dj::2, :].reshape(B * Ho * Wo, C)
             for di in (0, 1) for dj in (0, 1)]
    M = B * Ho * Wo
    TM = min(M, 512)
    out = pl.pallas_call(
        _pool_bn_relu_kernel,
        out_shape=jax.ShapeDtypeStruct((M, C), jnp.bfloat16),
        grid=(pl.cdiv(M, TM),),
        in_specs=[pl.BlockSpec((TM, C), lambda i: (i, 0))] * 4
                 + [pl.BlockSpec((1, C), lambda i: (0, 0))] * 2,
        out_specs=pl.BlockSpec((TM, C), lambda i: (i, 0)),
        compiler_params=pltpu.CompilerParams(
            dimension_semantics=("parallel",),
            vmem_limit_bytes=_VMEM_LIMIT,
        ),
    )(*quads,
      jnp.asarray(scale, jnp.float32).reshape(1, C),
      jnp.asarray(shift, jnp.float32).reshape(1, C))
    return out.reshape(B, Ho, Wo, C)


# ------------------------------- conv glue ---------------------------------

def _im2col(x, kh, kw, stride, pad_h, pad_w, dil_h, dil_w):
    # TODO(synk): replace im2col replication with in-kernel tap accumulation
    # (halo'd NHWC blocks) to cut activation HBM traffic another 3-9x.
    B, H, W, C = x.shape
    xp = jnp.pad(x, ((0, 0), (pad_h, pad_h), (pad_w, pad_w), (0, 0)))
    Ho = (H + 2 * pad_h - dil_h * (kh - 1) - 1) // stride + 1
    Wo = (W + 2 * pad_w - dil_w * (kw - 1) - 1) // stride + 1
    cols = []
    for i in range(kh):
        for j in range(kw):
            sl = xp[:, i * dil_h: i * dil_h + stride * (Ho - 1) + 1: stride,
                       j * dil_w: j * dil_w + stride * (Wo - 1) + 1: stride, :]
            cols.append(sl)
    pat = jnp.concatenate(cols, axis=-1)          # (B,Ho,Wo, kh*kw*C)
    return pat.reshape(B * Ho * Wo, kh * kw * C), (B, Ho, Wo)


def _fold_bn(bias, bn, cout):
    if bn is None:
        return jnp.ones((cout,), jnp.float32), jnp.asarray(bias, jnp.float32)
    gamma, beta, mean, var = bn
    scale = gamma / jnp.sqrt(var + _EPS)
    shift = (bias - mean) * scale + beta
    return scale, shift


def conv2d(x, w, bias, *, stride=1, pad=(0, 0), dil=(1, 1), bn=None, relu=False,
           residual=None, out_dtype=jnp.bfloat16):
    """PyTorch-style Conv2d (OIHW weight) on NHWC input via im2col + Pallas matmul."""
    cout, cin, kh, kw = w.shape
    x2d, (B, Ho, Wo) = _im2col(x.astype(jnp.bfloat16), kh, kw, stride,
                               pad[0], pad[1], dil[0], dil[1])
    w2d = jnp.transpose(w, (2, 3, 1, 0)).reshape(kh * kw * cin, cout)
    scale, shift = _fold_bn(bias, bn, cout)
    res2d = None if residual is None else residual.reshape(B * Ho * Wo, cout)
    y2d = fused_matmul(x2d, w2d, scale, shift, relu=relu, residual=res2d,
                       out_dtype=out_dtype)
    return y2d.reshape(B, Ho, Wo, cout)


# -------------------------------- blocks -----------------------------------

def downsampler_block(x, p):
    # conv branch: BN (its channel slice) folded into the matmul epilogue;
    # pool branch: fused maxpool+BN+ReLU kernel -> no standalone BN pass.
    nconv = p['w'].shape[0]
    gamma, beta, mean, var = p['bn']
    bn_conv = (gamma[:nconv], beta[:nconv], mean[:nconv], var[:nconv])
    conv_out = conv2d(x, p['w'], p['b'], stride=2, pad=(1, 1),
                      bn=bn_conv, relu=True)
    sc = gamma[nconv:] / jnp.sqrt(var[nconv:] + _EPS)
    sh = -mean[nconv:] * sc + beta[nconv:]
    pool_out = maxpool_bn_relu(x, sc, sh)
    return jnp.concatenate([conv_out, pool_out], axis=-1)


def non_bottleneck_1d(x, p, dilated):
    # TODO(synk): fuse each 3x1->1x3 pair into one pallas_call (intermediate
    # kept in VMEM with a row halo) to halve intermediate HBM traffic.
    o = conv2d(x, p['w1'], p['b1'], pad=(1, 0), relu=True)                         # conv3x1_1 + relu
    o = conv2d(o, p['w2'], p['b2'], pad=(0, 1), bn=p['bn1'], relu=True)            # conv1x3_1 + bn1 + relu
    o = conv2d(o, p['w3'], p['b3'], pad=(dilated, 0), dil=(dilated, 1), relu=True)  # conv3x1_2 + relu
    # conv1x3_2 + bn2 + residual + relu fused; Dropout2d identity in eval mode.
    o = conv2d(o, p['w4'], p['b4'], pad=(0, dilated), dil=(1, dilated),
               bn=p['bn2'], relu=True, residual=x)
    return o


def upsampler_block(x, p):
    # ConvTranspose2d(k=3, s=2, p=1, output_padding=1) via sub-pixel (phase)
    # decomposition: one matmul whose 4 column groups are the 4 output phases;
    # no zero-stuffed intermediate, no work on zeros.  BN+ReLU folded in.
    B, H, W, Cin = x.shape
    w = p['w']                      # (Cin, Cout, 3, 3)  ConvTranspose layout
    Cout = w.shape[1]

    xb = x.astype(jnp.bfloat16)
    xp = jnp.pad(xb, ((0, 0), (0, 1), (0, 1), (0, 0)))       # bottom/right halo
    taps = [xp[:, di:di + H, dj:dj + W, :] for di in (0, 1) for dj in (0, 1)]
    x2d = jnp.concatenate(taps, axis=-1).reshape(B * H * W, 4 * Cin)

    z = jnp.zeros((Cin, Cout), w.dtype)
    # rows = taps (0,0),(0,1),(1,0),(1,1); cols = phases (0,0),(0,1),(1,0),(1,1)
    row00 = jnp.concatenate([w[:, :, 1, 1], w[:, :, 1, 2], w[:, :, 2, 1], w[:, :, 2, 2]], axis=1)
    row01 = jnp.concatenate([z,             w[:, :, 1, 0], z,             w[:, :, 2, 0]], axis=1)
    row10 = jnp.concatenate([z,             z,             w[:, :, 0, 1], w[:, :, 0, 2]], axis=1)
    row11 = jnp.concatenate([z,             z,             z,             w[:, :, 0, 0]], axis=1)
    w2d = jnp.concatenate([row00, row01, row10, row11], axis=0)   # (4Cin, 4Cout)

    scale, shift = _fold_bn(p['b'], p['bn'], Cout)
    y2d = fused_matmul(x2d, w2d, jnp.tile(scale, 4), jnp.tile(shift, 4),
                       relu=True)
    y = y2d.reshape(B, H, W, 2, 2, Cout)
    return jnp.transpose(y, (0, 1, 3, 2, 4, 5)).reshape(B, 2 * H, 2 * W, Cout)


def output_convtranspose(x, w_t, bias):
    # ConvTranspose2d(k=2, s=2, p=0): per-pixel matmul + 2x2 pixel shuffle.
    B, H, W, Cin = x.shape
    Cout = w_t.shape[1]
    w2d = jnp.transpose(w_t, (0, 2, 3, 1)).reshape(Cin, 4 * Cout)
    y2d = fused_matmul(x.astype(jnp.bfloat16).reshape(B * H * W, Cin), w2d,
                       jnp.ones((4 * Cout,), jnp.float32), jnp.tile(bias, 4),
                       relu=False, out_dtype=jnp.float32)
    y = y2d.reshape(B, H, W, 2, 2, Cout)
    return jnp.transpose(y, (0, 1, 3, 2, 4, 5)).reshape(B, 2 * H, 2 * W, Cout)


# ------------------------------ full network -------------------------------

def erfnet_forward(x_nchw, params):
    # NCHW -> NHWC; activations stored bf16, matmul epilogues / output in f32.
    x = jnp.transpose(x_nchw, (0, 2, 3, 1)).astype(jnp.bfloat16)
    enc = params['encoder']
    o = downsampler_block(x, enc['init'])          # 3  -> 16,  H/2
    o = downsampler_block(o, enc['down1'])         # 16 -> 64,  H/4
    for p in enc['nb64']:
        o = non_bottleneck_1d(o, p, 1)
    o = downsampler_block(o, enc['down2'])         # 64 -> 128, H/8
    for p, d in zip(enc['nb128'], NB128_DILATIONS):
        o = non_bottleneck_1d(o, p, d)

    dec = params['decoder']
    o = upsampler_block(o, dec['up1'])             # 128 -> 64, H/4
    for p in dec['nb64']:
        o = non_bottleneck_1d(o, p, 1)
    o = upsampler_block(o, dec['up2'])             # 64 -> 16, H/2
    for p in dec['nb16']:
        o = non_bottleneck_1d(o, p, 1)
    o = output_convtranspose(o, dec['out_w'], dec['out_b'])   # 16 -> classes, H
    return jnp.transpose(o, (0, 3, 1, 2))          # NHWC -> NCHW (f32)


# --------------------------- deterministic init -----------------------------

def _make_keygen(seed):
    state = {'key': jax.random.PRNGKey(seed)}
    def kg():
        state['key'], sub = jax.random.split(state['key'])
        return sub
    return kg


def _conv_params(kg, cout, cin, kh, kw):
    fan = cin * kh * kw
    w = jax.random.normal(kg(), (cout, cin, kh, kw), jnp.float32) / math.sqrt(fan)
    b = 0.01 * jax.random.normal(kg(), (cout,), jnp.float32)
    return w, b


def _bn_params(kg, c):
    gamma = 1.0 + 0.1 * jax.random.normal(kg(), (c,), jnp.float32)
    beta = 0.1 * jax.random.normal(kg(), (c,), jnp.float32)
    mean = jnp.zeros((c,), jnp.float32)   # fresh-module running stats
    var = jnp.ones((c,), jnp.float32)
    return (gamma, beta, mean, var)


def init_params(num_classes=20, seed=0):
    kg = _make_keygen(seed)

    def down(nin, nout):
        w, b = _conv_params(kg, nout - nin, nin, 3, 3)
        return {'w': w, 'b': b, 'bn': _bn_params(kg, nout)}

    def nb(ch):
        w1, b1 = _conv_params(kg, ch, ch, 3, 1)
        w2, b2 = _conv_params(kg, ch, ch, 1, 3)
        bn1 = _bn_params(kg, ch)
        w3, b3 = _conv_params(kg, ch, ch, 3, 1)
        w4, b4 = _conv_params(kg, ch, ch, 1, 3)
        bn2 = _bn_params(kg, ch)
        return {'w1': w1, 'b1': b1, 'w2': w2, 'b2': b2, 'bn1': bn1,
                'w3': w3, 'b3': b3, 'w4': w4, 'b4': b4, 'bn2': bn2}

    def upsampler(nin, nout):
        w = jax.random.normal(kg(), (nin, nout, 3, 3), jnp.float32) / math.sqrt(nin * 9)
        b = 0.01 * jax.random.normal(kg(), (nout,), jnp.float32)
        return {'w': w, 'b': b, 'bn': _bn_params(kg, nout)}

    enc = {
        'init': down(3, 16),
        'down1': down(16, 64),
        'nb64': [nb(64) for _ in range(5)],
        'down2': down(64, 128),
        'nb128': [nb(128) for _ in range(len(NB128_DILATIONS))],
    }
    out_w = jax.random.normal(kg(), (16, num_classes, 2, 2), jnp.float32) / math.sqrt(16 * 4)
    out_b = 0.01 * jax.random.normal(kg(), (num_classes,), jnp.float32)
    dec = {
        'up1': upsampler(128, 64),
        'nb64': [nb(64) for _ in range(2)],
        'up2': upsampler(64, 16),
        'nb16': [nb(16) for _ in range(2)],
        'out_w': out_w, 'out_b': out_b,
    }
    return {'encoder': enc, 'decoder': dec}


if __name__ == "__main__":
    num_classes = 20
    params = init_params(num_classes=num_classes, seed=0)

    key = jax.random.PRNGKey(0)
    x = jax.random.normal(key, (2, 3, 16, 16), jnp.float32)   # NCHW, like PyTorch

    fwd = jax.jit(erfnet_forward)
    out = jax.block_until_ready(fwd(x, params))

    assert out.shape == (2, num_classes, 16, 16), out.shape
    assert out.dtype == jnp.float32
    assert bool(jnp.all(jnp.isfinite(out)))
    print("KERNEL_OK")
</pallas_src>

<mosaic_0001>
module attributes {stable_mosaic.version = 11 : i64} {
  func.func @_mm_kernel(%arg0: i32, %arg1: i32, %arg2: i32, %arg3: memref<128x27xbf16, #tpu.memory_space<vmem>>, %arg4: memref<27x13xbf16, #tpu.memory_space<vmem>>, %arg5: memref<1x13xf32, #tpu.memory_space<vmem>>, %arg6: memref<1x13xf32, #tpu.memory_space<vmem>>, %arg7: memref<128x13xbf16, #tpu.memory_space<vmem>>, %arg8: memref<128x13xf32, #tpu.memory_space<vmem>>) attributes {dimension_semantics = [#tpu.dimension_semantics<parallel>, #tpu.dimension_semantics<parallel>, #tpu.dimension_semantics<arbitrary>], iteration_bounds = array<i64: 1, 1, 1>, scalar_prefetch = 0 : i64, scratch_operands = 1 : i64, tpu.core_type = #tpu.core_type<tc>, window_params = [{transform_indices = @transform_0, window_bounds = array<i64: 128, 27>}, {transform_indices = @transform_1, window_bounds = array<i64: 27, 13>}, {transform_indices = @transform_2, window_bounds = array<i64: 1, 13>}, {transform_indices = @transform_3, window_bounds = array<i64: 1, 13>}, {transform_indices = @transform_4, window_bounds = array<i64: 128, 13>}]} {
    %c0_i32 = arith.constant 0 : i32
    %0 = arith.cmpi eq, %arg2, %c0_i32 : i32
    %1 = arith.extui %0 : i1 to i32
    %c0_i32_0 = arith.constant 0 : i32
    %2 = arith.cmpi ne, %1, %c0_i32_0 : i32
    scf.if %2 {
      %cst_10 = arith.constant 0.000000e+00 : f32
      %12 = vector.broadcast %cst_10 : f32 to vector<128x13xf32>
      %c0_11 = arith.constant 0 : index
      %c0_12 = arith.constant 0 : index
      %13 = vector.load %arg8[%c0_11, %c0_12] : memref<128x13xf32, #tpu.memory_space<vmem>>, vector<128x13xf32>
      tpu.vector_store %arg8[%c0_11, %c0_12], %12 {strides = array<i32>} : memref<128x13xf32, #tpu.memory_space<vmem>>, vector<128x13xf32>,
    } else {
    }
    %c0 = arith.constant 0 : index
    %c0_1 = arith.constant 0 : index
    %3 = vector.load %arg8[%c0, %c0_1] : memref<128x13xf32, #tpu.memory_space<vmem>>, vector<128x13xf32>
    %c0_2 = arith.constant 0 : index
    %c0_3 = arith.constant 0 : index
    %4 = vector.load %arg3[%c0_2, %c0_3] : memref<128x27xbf16, #tpu.memory_space<vmem>>, vector<128x27xbf16>
    %c0_4 = arith.constant 0 : index
    %c0_5 = arith.constant 0 : index
    %5 = vector.load %arg4[%c0_4, %c0_5] : memref<27x13xbf16, #tpu.memory_space<vmem>>, vector<27x13xbf16>
    %cst = arith.constant dense<0.000000e+00> : vector<128x13xf32>
    %6 = tpu.matmul %4, %5, %cst {dimension_numbers = #tpu.dot_dimension_numbers<[1], [0], [0], [1], [0, 0, 1, 1], [], []>} : vector<128x27xbf16>, vector<27x13xbf16>, vector<128x13xf32> -> vector<128x13xf32>
    %7 = arith.addf %3, %6 : vector<128x13xf32>
    %c0_6 = arith.constant 0 : index
    %c0_7 = arith.constant 0 : index
    %8 = vector.load %arg8[%c0_6, %c0_7] : memref<128x13xf32, #tpu.memory_space<vmem>>, vector<128x13xf32>
    tpu.vector_store %arg8[%c0_6, %c0_7], %7 {strides = array<i32>} : memref<128x13xf32, #tpu.memory_space<vmem>>, vector<128x13xf32>,
    %c0_i32_8 = arith.constant 0 : i32
    %9 = arith.cmpi eq, %arg2, %c0_i32_8 : i32
    %10 = arith.extui %9 : i1 to i32
    %c0_i32_9 = arith.constant 0 : i32
    %11 = arith.cmpi ne, %10, %c0_i32_9 : i32
    scf.if %11 {
      %c0_10 = arith.constant 0 : index
      %c0_11 = arith.constant 0 : index
      %12 = vector.load %arg8[%c0_10, %c0_11] : memref<128x13xf32, #tpu.memory_space<vmem>>, vector<128x13xf32>
      %c0_12 = arith.constant 0 : index
      %c0_13 = arith.constant 0 : index
      %13 = vector.load %arg5[%c0_12, %c0_13] : memref<1x13xf32, #tpu.memory_space<vmem>>, vector<1x13xf32>
      %c0_14 = arith.constant 0 : index
      %c0_15 = arith.constant 0 : index
      %14 = vector.load %arg6[%c0_14, %c0_15] : memref<1x13xf32, #tpu.memory_space<vmem>>, vector<1x13xf32>
      %15 = vector.broadcast %13 : vector<1x13xf32> to vector<128x13xf32>
      %16 = arith.mulf %12, %15 : vector<128x13xf32>
      %17 = vector.broadcast %14 : vector<1x13xf32> to vector<128x13xf32>
      %18 = arith.addf %16, %17 : vector<128x13xf32>
      %cst_16 = arith.constant 0.000000e+00 : f32
      %19 = vector.broadcast %cst_16 : f32 to vector<128x13xf32>
      %20 = arith.maximumf %18, %19 : vector<128x13xf32>
      %21 = arith.truncf %20 : vector<128x13xf32> to vector<128x13xbf16>
      %c0_17 = arith.constant 0 : index
      %c0_18 = arith.constant 0 : index
      %22 = vector.load %arg7[%c0_17, %c0_18] : memref<128x13xbf16, #tpu.memory_space<vmem>>, vector<128x13xbf16>
      tpu.vector_store %arg7[%c0_17, %c0_18], %21 {strides = array<i32>} : memref<128x13xbf16, #tpu.memory_space<vmem>>, vector<128x13xbf16>,
    } else {
    }
    return
  }
  func.func @transform_0(%arg0: i32, %arg1: i32, %arg2: i32) -> (i32, i32) {
    %c0_i32 = arith.constant 0 : i32
    return %arg0, %arg2 : i32, i32
  }
  func.func @transform_1(%arg0: i32, %arg1: i32, %arg2: i32) -> (i32, i32) {
    %c0_i32 = arith.constant 0 : i32
    return %arg2, %arg1 : i32, i32
  }
  func.func @transform_2(%arg0: i32, %arg1: i32, %arg2: i32) -> (i32, i32) {
    %c0_i32 = arith.constant 0 : i32
    %c0_i32_0 = arith.constant 0 : i32
    return %c0_i32, %arg1 : i32, i32
  }
  func.func @transform_3(%arg0: i32, %arg1: i32, %arg2: i32) -> (i32, i32) {
    %c0_i32 = arith.constant 0 : i32
    %c0_i32_0 = arith.constant 0 : i32
    return %c0_i32, %arg1 : i32, i32
  }
  func.func @transform_4(%arg0: i32, %arg1: i32, %arg2: i32) -> (i32, i32) {
    %c0_i32 = arith.constant 0 : i32
    return %arg0, %arg1 : i32, i32
  }
}

module attributes {stable_mosaic.version = 11 : i64} {
  func.func @_pool_bn_relu_kernel(%arg0: i32, %arg1: memref<128x3xbf16, #tpu.memory_space<vmem>>, %arg2: memref<128x3xbf16, #tpu.memory_space<vmem>>, %arg3: memref<128x3xbf16, #tpu.memory_space<vmem>>, %arg4: memref<128x3xbf16, #tpu.memory_space<vmem>>, %arg5: memref<1x3xf32, #tpu.memory_space<vmem>>, %arg6: memref<1x3xf32, #tpu.memory_space<vmem>>, %arg7: memref<128x3xbf16, #tpu.memory_space<vmem>>) attributes {dimension_semantics = [#tpu.dimension_semantics<parallel>], iteration_bounds = array<i64: 1>, scalar_prefetch = 0 : i64, scratch_operands = 0 : i64, tpu.core_type = #tpu.core_type<tc>, window_params = [{transform_indices = @transform_0, window_bounds = array<i64: 128, 3>}, {transform_indices = @transform_1, window_bounds = array<i64: 128, 3>}, {transform_indices = @transform_2, window_bounds = array<i64: 128, 3>}, {transform_indices = @transform_3, window_bounds = array<i64: 128, 3>}, {pipeline_mode = #tpu.pipeline_mode<synchronous>, transform_indices = @transform_4, window_bounds = array<i64: 1, 3>}, {pipeline_mode = #tpu.pipeline_mode<synchronous>, transform_indices = @transform_5, window_bounds = array<i64: 1, 3>}, {transform_indices = @transform_6, window_bounds = array<i64: 128, 3>}]} {
    %c0 = arith.constant 0 : index
    %c0_0 = arith.constant 0 : index
    %0 = vector.load %arg1[%c0, %c0_0] : memref<128x3xbf16, #tpu.memory_space<vmem>>, vector<128x3xbf16>
    %c0_1 = arith.constant 0 : index
    %c0_2 = arith.constant 0 : index
    %1 = vector.load %arg2[%c0_1, %c0_2] : memref<128x3xbf16, #tpu.memory_space<vmem>>, vector<128x3xbf16>
    %2 = arith.maximumf %0, %1 : vector<128x3xbf16>
    %c0_3 = arith.constant 0 : index
    %c0_4 = arith.constant 0 : index
    %3 = vector.load %arg3[%c0_3, %c0_4] : memref<128x3xbf16, #tpu.memory_space<vmem>>, vector<128x3xbf16>
    %c0_5 = arith.constant 0 : index
    %c0_6 = arith.constant 0 : index
    %4 = vector.load %arg4[%c0_5, %c0_6] : memref<128x3xbf16, #tpu.memory_space<vmem>>, vector<128x3xbf16>
    %5 = arith.maximumf %3, %4 : vector<128x3xbf16>
    %6 = arith.maximumf %2, %5 : vector<128x3xbf16>
    %7 = arith.extf %6 : vector<128x3xbf16> to vector<128x3xf32>
    %c0_7 = arith.constant 0 : index
    %c0_8 = arith.constant 0 : index
    %8 = vector.load %arg5[%c0_7, %c0_8] : memref<1x3xf32, #tpu.memory_space<vmem>>, vector<1x3xf32>
    %9 = vector.broadcast %8 : vector<1x3xf32> to vector<128x3xf32>
    %10 = arith.mulf %7, %9 : vector<128x3xf32>
    %c0_9 = arith.constant 0 : index
    %c0_10 = arith.constant 0 : index
    %11 = vector.load %arg6[%c0_9, %c0_10] : memref<1x3xf32, #tpu.memory_space<vmem>>, vector<1x3xf32>
    %12 = vector.broadcast %11 : vector<1x3xf32> to vector<128x3xf32>
    %13 = arith.addf %10, %12 : vector<128x3xf32>
    %cst = arith.constant 0.000000e+00 : f32
    %14 = vector.broadcast %cst : f32 to vector<128x3xf32>
    %15 = arith.maximumf %13, %14 : vector<128x3xf32>
    %16 = arith.truncf %15 : vector<128x3xf32> to vector<128x3xbf16>
    %c0_11 = arith.constant 0 : index
    %c0_12 = arith.constant 0 : index
    %17 = vector.load %arg7[%c0_11, %c0_12] : memref<128x3xbf16, #tpu.memory_space<vmem>>, vector<128x3xbf16>
    tpu.vector_store %arg7[%c0_11, %c0_12], %16 {strides = array<i32>} : memref<128x3xbf16, #tpu.memory_space<vmem>>, vector<128x3xbf16>,
    return
  }
  func.func @transform_0(%arg0: i32) -> (i32, i32) {
    %c0_i32 = arith.constant 0 : i32
    %c0_i32_0 = arith.constant 0 : i32
    return %arg0, %c0_i32 : i32, i32
  }
  func.func @transform_1(%arg0: i32) -> (i32, i32) {
    %c0_i32 = arith.constant 0 : i32
    %c0_i32_0 = arith.constant 0 : i32
    return %arg0, %c0_i32 : i32, i32
  }
  func.func @transform_2(%arg0: i32) -> (i32, i32) {
    %c0_i32 = arith.constant 0 : i32
    %c0_i32_0 = arith.constant 0 : i32
    return %arg0, %c0_i32 : i32, i32
  }
  func.func @transform_3(%arg0: i32) -> (i32, i32) {
    %c0_i32 = arith.constant 0 : i32
    %c0_i32_0 = arith.constant 0 : i32
    return %arg0, %c0_i32 : i32, i32
  }
  func.func @transform_4(%arg0: i32) -> (i32, i32) {
    %c0_i32 = arith.constant 0 : i32
    %c0_i32_0 = arith.constant 0 : i32
    %c0_i32_1 = arith.constant 0 : i32
    return %c0_i32, %c0_i32_0 : i32, i32
  }
  func.func @transform_5(%arg0: i32) -> (i32, i32) {
    %c0_i32 = arith.constant 0 : i32
    %c0_i32_0 = arith.constant 0 : i32
    %c0_i32_1 = arith.constant 0 : i32
    return %c0_i32, %c0_i32_0 : i32, i32
  }
  func.func @transform_6(%arg0: i32) -> (i32, i32) {
    %c0_i32 = arith.constant 0 : i32
    %c0_i32_0 = arith.constant 0 : i32
    return %arg0, %c0_i32 : i32, i32
  }
}

module attributes {stable_mosaic.version = 11 : i64} {
  func.func @_mm_kernel(%arg0: i32, %arg1: i32, %arg2: i32, %arg3: memref<32x144xbf16, #tpu.memory_space<vmem>>, %arg4: memref<144x48xbf16, #tpu.memory_space<vmem>>, %arg5: memref<1x48xf32, #tpu.memory_space<vmem>>, %arg6: memref<1x48xf32, #tpu.memory_space<vmem>>, %arg7: memref<32x48xbf16, #tpu.memory_space<vmem>>, %arg8: memref<32x48xf32, #tpu.memory_space<vmem>>) attributes {dimension_semantics = [#tpu.dimension_semantics<parallel>, #tpu.dimension_semantics<parallel>, #tpu.dimension_semantics<arbitrary>], iteration_bounds = array<i64: 1, 1, 1>, scalar_prefetch = 0 : i64, scratch_operands = 1 : i64, tpu.core_type = #tpu.core_type<tc>, window_params = [{transform_indices = @transform_0, window_bounds = array<i64: 32, 144>}, {transform_indices = @transform_1, window_bounds = array<i64: 144, 48>}, {transform_indices = @transform_2, window_bounds = array<i64: 1, 48>}, {transform_indices = @transform_3, window_bounds = array<i64: 1, 48>}, {transform_indices = @transform_4, window_bounds = array<i64: 32, 48>}]} {
    %c0_i32 = arith.constant 0 : i32
    %0 = arith.cmpi eq, %arg2, %c0_i32 : i32
    %1 = arith.extui %0 : i1 to i32
    %c0_i32_0 = arith.constant 0 : i32
    %2 = arith.cmpi ne, %1, %c0_i32_0 : i32
    scf.if %2 {
      %cst_10 = arith.constant 0.000000e+00 : f32
      %12 = vector.broadcast %cst_10 : f32 to vector<32x48xf32>
      %c0_11 = arith.constant 0 : index
      %c0_12 = arith.constant 0 : index
      %13 = vector.load %arg8[%c0_11, %c0_12] : memref<32x48xf32, #tpu.memory_space<vmem>>, vector<32x48xf32>
      tpu.vector_store %arg8[%c0_11, %c0_12], %12 {strides = array<i32>} : memref<32x48xf32, #tpu.memory_space<vmem>>, vector<32x48xf32>,
    } else {
    }
    %c0 = arith.constant 0 : index
    %c0_1 = arith.constant 0 : index
    %3 = vector.load %arg8[%c0, %c0_1] : memref<32x48xf32, #tpu.memory_space<vmem>>, vector<32x48xf32>
    %c0_2 = arith.constant 0 : index
    %c0_3 = arith.constant 0 : index
    %4 = vector.load %arg3[%c0_2, %c0_3] : memref<32x144xbf16, #tpu.memory_space<vmem>>, vector<32x144xbf16>
    %c0_4 = arith.constant 0 : index
    %c0_5 = arith.constant 0 : index
    %5 = vector.load %arg4[%c0_4, %c0_5] : memref<144x48xbf16, #tpu.memory_space<vmem>>, vector<144x48xbf16>
    %cst = arith.constant dense<0.000000e+00> : vector<32x48xf32>
    %6 = tpu.matmul %4, %5, %cst {dimension_numbers = #tpu.dot_dimension_numbers<[1], [0], [0], [1], [0, 0, 1, 1], [], []>} : vector<32x144xbf16>, vector<144x48xbf16>, vector<32x48xf32> -> vector<32x48xf32>
    %7 = arith.addf %3, %6 : vector<32x48xf32>
    %c0_6 = arith.constant 0 : index
    %c0_7 = arith.constant 0 : index
    %8 = vector.load %arg8[%c0_6, %c0_7] : memref<32x48xf32, #tpu.memory_space<vmem>>, vector<32x48xf32>
    tpu.vector_store %arg8[%c0_6, %c0_7], %7 {strides = array<i32>} : memref<32x48xf32, #tpu.memory_space<vmem>>, vector<32x48xf32>,
    %c0_i32_8 = arith.constant 0 : i32
    %9 = arith.cmpi eq, %arg2, %c0_i32_8 : i32
    %10 = arith.extui %9 : i1 to i32
    %c0_i32_9 = arith.constant 0 : i32
    %11 = arith.cmpi ne, %10, %c0_i32_9 : i32
    scf.if %11 {
      %c0_10 = arith.constant 0 : index
      %c0_11 = arith.constant 0 : index
      %12 = vector.load %arg8[%c0_10, %c0_11] : memref<32x48xf32, #tpu.memory_space<vmem>>, vector<32x48xf32>
      %c0_12 = arith.constant 0 : index
      %c0_13 = arith.constant 0 : index
      %13 = vector.load %arg5[%c0_12, %c0_13] : memref<1x48xf32, #tpu.memory_space<vmem>>, vector<1x48xf32>
      %c0_14 = arith.constant 0 : index
      %c0_15 = arith.constant 0 : index
      %14 = vector.load %arg6[%c0_14, %c0_15] : memref<1x48xf32, #tpu.memory_space<vmem>>, vector<1x48xf32>
      %15 = vector.broadcast %13 : vector<1x48xf32> to vector<32x48xf32>
      %16 = arith.mulf %12, %15 : vector<32x48xf32>
      %17 = vector.broadcast %14 : vector<1x48xf32> to vector<32x48xf32>
      %18 = arith.addf %16, %17 : vector<32x48xf32>
      %cst_16 = arith.constant 0.000000e+00 : f32
      %19 = vector.broadcast %cst_16 : f32 to vector<32x48xf32>
      %20 = arith.maximumf %18, %19 : vector<32x48xf32>
      %21 = arith.truncf %20 : vector<32x48xf32> to vector<32x48xbf16>
      %c0_17 = arith.constant 0 : index
      %c0_18 = arith.constant 0 : index
      %22 = vector.load %arg7[%c0_17, %c0_18] : memref<32x48xbf16, #tpu.memory_space<vmem>>, vector<32x48xbf16>
      tpu.vector_store %arg7[%c0_17, %c0_18], %21 {strides = array<i32>} : memref<32x48xbf16, #tpu.memory_space<vmem>>, vector<32x48xbf16>,
    } else {
    }
    return
  }
  func.func @transform_0(%arg0: i32, %arg1: i32, %arg2: i32) -> (i32, i32) {
    %c0_i32 = arith.constant 0 : i32
    return %arg0, %arg2 : i32, i32
  }
  func.func @transform_1(%arg0: i32, %arg1: i32, %arg2: i32) -> (i32, i32) {
    %c0_i32 = arith.constant 0 : i32
    return %arg2, %arg1 : i32, i32
  }
  func.func @transform_2(%arg0: i32, %arg1: i32, %arg2: i32) -> (i32, i32) {
    %c0_i32 = arith.constant 0 : i32
    %c0_i32_0 = arith.constant 0 : i32
    return %c0_i32, %arg1 : i32, i32
  }
  func.func @transform_3(%arg0: i32, %arg1: i32, %arg2: i32) -> (i32, i32) {
    %c0_i32 = arith.constant 0 : i32
    %c0_i32_0 = arith.constant 0 : i32
    return %c0_i32, %arg1 : i32, i32
  }
  func.func @transform_4(%arg0: i32, %arg1: i32, %arg2: i32) -> (i32, i32) {
    %c0_i32 = arith.constant 0 : i32
    return %arg0, %arg1 : i32, i32
  }
}

module attributes {stable_mosaic.version = 11 : i64} {
  func.func @_pool_bn_relu_kernel(%arg0: i32, %arg1: memref<32x16xbf16, #tpu.memory_space<vmem>>, %arg2: memref<32x16xbf16, #tpu.memory_space<vmem>>, %arg3: memref<32x16xbf16, #tpu.memory_space<vmem>>, %arg4: memref<32x16xbf16, #tpu.memory_space<vmem>>, %arg5: memref<1x16xf32, #tpu.memory_space<vmem>>, %arg6: memref<1x16xf32, #tpu.memory_space<vmem>>, %arg7: memref<32x16xbf16, #tpu.memory_space<vmem>>) attributes {dimension_semantics = [#tpu.dimension_semantics<parallel>], iteration_bounds = array<i64: 1>, scalar_prefetch = 0 : i64, scratch_operands = 0 : i64, tpu.core_type = #tpu.core_type<tc>, window_params = [{transform_indices = @transform_0, window_bounds = array<i64: 32, 16>}, {transform_indices = @transform_1, window_bounds = array<i64: 32, 16>}, {transform_indices = @transform_2, window_bounds = array<i64: 32, 16>}, {transform_indices = @transform_3, window_bounds = array<i64: 32, 16>}, {pipeline_mode = #tpu.pipeline_mode<synchronous>, transform_indices = @transform_4, window_bounds = array<i64: 1, 16>}, {pipeline_mode = #tpu.pipeline_mode<synchronous>, transform_indices = @transform_5, window_bounds = array<i64: 1, 16>}, {transform_indices = @transform_6, window_bounds = array<i64: 32, 16>}]} {
    %c0 = arith.constant 0 : index
    %c0_0 = arith.constant 0 : index
    %0 = vector.load %arg1[%c0, %c0_0] : memref<32x16xbf16, #tpu.memory_space<vmem>>, vector<32x16xbf16>
    %c0_1 = arith.constant 0 : index
    %c0_2 = arith.constant 0 : index
    %1 = vector.load %arg2[%c0_1, %c0_2] : memref<32x16xbf16, #tpu.memory_space<vmem>>, vector<32x16xbf16>
    %2 = arith.maximumf %0, %1 : vector<32x16xbf16>
    %c0_3 = arith.constant 0 : index
    %c0_4 = arith.constant 0 : index
    %3 = vector.load %arg3[%c0_3, %c0_4] : memref<32x16xbf16, #tpu.memory_space<vmem>>, vector<32x16xbf16>
    %c0_5 = arith.constant 0 : index
    %c0_6 = arith.constant 0 : index
    %4 = vector.load %arg4[%c0_5, %c0_6] : memref<32x16xbf16, #tpu.memory_space<vmem>>, vector<32x16xbf16>
    %5 = arith.maximumf %3, %4 : vector<32x16xbf16>
    %6 = arith.maximumf %2, %5 : vector<32x16xbf16>
    %7 = arith.extf %6 : vector<32x16xbf16> to vector<32x16xf32>
    %c0_7 = arith.constant 0 : index
    %c0_8 = arith.constant 0 : index
    %8 = vector.load %arg5[%c0_7, %c0_8] : memref<1x16xf32, #tpu.memory_space<vmem>>, vector<1x16xf32>
    %9 = vector.broadcast %8 : vector<1x16xf32> to vector<32x16xf32>
    %10 = arith.mulf %7, %9 : vector<32x16xf32>
    %c0_9 = arith.constant 0 : index
    %c0_10 = arith.constant 0 : index
    %11 = vector.load %arg6[%c0_9, %c0_10] : memref<1x16xf32, #tpu.memory_space<vmem>>, vector<1x16xf32>
    %12 = vector.broadcast %11 : vector<1x16xf32> to vector<32x16xf32>
    %13 = arith.addf %10, %12 : vector<32x16xf32>
    %cst = arith.constant 0.000000e+00 : f32
    %14 = vector.broadcast %cst : f32 to vector<32x16xf32>
    %15 = arith.maximumf %13, %14 : vector<32x16xf32>
    %16 = arith.truncf %15 : vector<32x16xf32> to vector<32x16xbf16>
    %c0_11 = arith.constant 0 : index
    %c0_12 = arith.constant 0 : index
    %17 = vector.load %arg7[%c0_11, %c0_12] : memref<32x16xbf16, #tpu.memory_space<vmem>>, vector<32x16xbf16>
    tpu.vector_store %arg7[%c0_11, %c0_12], %16 {strides = array<i32>} : memref<32x16xbf16, #tpu.memory_space<vmem>>, vector<32x16xbf16>,
    return
  }
  func.func @transform_0(%arg0: i32) -> (i32, i32) {
    %c0_i32 = arith.constant 0 : i32
    %c0_i32_0 = arith.constant 0 : i32
    return %arg0, %c0_i32 : i32, i32
  }
  func.func @transform_1(%arg0: i32) -> (i32, i32) {
    %c0_i32 = arith.constant 0 : i32
    %c0_i32_0 = arith.constant 0 : i32
    return %arg0, %c0_i32 : i32, i32
  }
  func.func @transform_2(%arg0: i32) -> (i32, i32) {
    %c0_i32 = arith.constant 0 : i32
    %c0_i32_0 = arith.constant 0 : i32
    return %arg0, %c0_i32 : i32, i32
  }
  func.func @transform_3(%arg0: i32) -> (i32, i32) {
    %c0_i32 = arith.constant 0 : i32
    %c0_i32_0 = arith.constant 0 : i32
    return %arg0, %c0_i32 : i32, i32
  }
  func.func @transform_4(%arg0: i32) -> (i32, i32) {
    %c0_i32 = arith.constant 0 : i32
    %c0_i32_0 = arith.constant 0 : i32
    %c0_i32_1 = arith.constant 0 : i32
    return %c0_i32, %c0_i32_0 : i32, i32
  }
  func.func @transform_5(%arg0: i32) -> (i32, i32) {
    %c0_i32 = arith.constant 0 : i32
    %c0_i32_0 = arith.constant 0 : i32
    %c0_i32_1 = arith.constant 0 : i32
    return %c0_i32, %c0_i32_0 : i32, i32
  }
  func.func @transform_6(%arg0: i32) -> (i32, i32) {
    %c0_i32 = arith.constant 0 : i32
    %c0_i32_0 = arith.constant 0 : i32
    return %arg0, %c0_i32 : i32, i32
  }
}

module attributes {stable_mosaic.version = 11 : i64} {
  func.func @_mm_kernel(%arg0: i32, %arg1: i32, %arg2: i32, %arg3: memref<32x192xbf16, #tpu.memory_space<vmem>>, %arg4: memref<192x64xbf16, #tpu.memory_space<vmem>>, %arg5: memref<1x64xf32, #tpu.memory_space<vmem>>, %arg6: memref<1x64xf32, #tpu.memory_space<vmem>>, %arg7: memref<32x64xbf16, #tpu.memory_space<vmem>>, %arg8: memref<32x64xf32, #tpu.memory_space<vmem>>) attributes {dimension_semantics = [#tpu.dimension_semantics<parallel>, #tpu.dimension_semantics<parallel>, #tpu.dimension_semantics<arbitrary>], iteration_bounds = array<i64: 1, 1, 1>, scalar_prefetch = 0 : i64, scratch_operands = 1 : i64, tpu.core_type = #tpu.core_type<tc>, window_params = [{transform_indices = @transform_0, window_bounds = array<i64: 32, 192>}, {transform_indices = @transform_1, window_bounds = array<i64: 192, 64>}, {transform_indices = @transform_2, window_bounds = array<i64: 1, 64>}, {transform_indices = @transform_3, window_bounds = array<i64: 1, 64>}, {transform_indices = @transform_4, window_bounds = array<i64: 32, 64>}]} {
    %c0_i32 = arith.constant 0 : i32
    %0 = arith.cmpi eq, %arg2, %c0_i32 : i32
    %1 = arith.extui %0 : i1 to i32
    %c0_i32_0 = arith.constant 0 : i32
    %2 = arith.cmpi ne, %1, %c0_i32_0 : i32
    scf.if %2 {
      %cst_10 = arith.constant 0.000000e+00 : f32
      %12 = vector.broadcast %cst_10 : f32 to vector<32x64xf32>
      %c0_11 = arith.constant 0 : index
      %c0_12 = arith.constant 0 : index
      %13 = vector.load %arg8[%c0_11, %c0_12] : memref<32x64xf32, #tpu.memory_space<vmem>>, vector<32x64xf32>
      tpu.vector_store %arg8[%c0_11, %c0_12], %12 {strides = array<i32>} : memref<32x64xf32, #tpu.memory_space<vmem>>, vector<32x64xf32>,
    } else {
    }
    %c0 = arith.constant 0 : index
    %c0_1 = arith.constant 0 : index
    %3 = vector.load %arg8[%c0, %c0_1] : memref<32x64xf32, #tpu.memory_space<vmem>>, vector<32x64xf32>
    %c0_2 = arith.constant 0 : index
    %c0_3 = arith.constant 0 : index
    %4 = vector.load %arg3[%c0_2, %c0_3] : memref<32x192xbf16, #tpu.memory_space<vmem>>, vector<32x192xbf16>
    %c0_4 = arith.constant 0 : index
    %c0_5 = arith.constant 0 : index
    %5 = vector.load %arg4[%c0_4, %c0_5] : memref<192x64xbf16, #tpu.memory_space<vmem>>, vector<192x64xbf16>
    %cst = arith.constant dense<0.000000e+00> : vector<32x64xf32>
    %6 = tpu.matmul %4, %5, %cst {dimension_numbers = #tpu.dot_dimension_numbers<[1], [0], [0], [1], [0, 0, 1, 1], [], []>} : vector<32x192xbf16>, vector<192x64xbf16>, vector<32x64xf32> -> vector<32x64xf32>
    %7 = arith.addf %3, %6 : vector<32x64xf32>
    %c0_6 = arith.constant 0 : index
    %c0_7 = arith.constant 0 : index
    %8 = vector.load %arg8[%c0_6, %c0_7] : memref<32x64xf32, #tpu.memory_space<vmem>>, vector<32x64xf32>
    tpu.vector_store %arg8[%c0_6, %c0_7], %7 {strides = array<i32>} : memref<32x64xf32, #tpu.memory_space<vmem>>, vector<32x64xf32>,
    %c0_i32_8 = arith.constant 0 : i32
    %9 = arith.cmpi eq, %arg2, %c0_i32_8 : i32
    %10 = arith.extui %9 : i1 to i32
    %c0_i32_9 = arith.constant 0 : i32
    %11 = arith.cmpi ne, %10, %c0_i32_9 : i32
    scf.if %11 {
      %c0_10 = arith.constant 0 : index
      %c0_11 = arith.constant 0 : index
      %12 = vector.load %arg8[%c0_10, %c0_11] : memref<32x64xf32, #tpu.memory_space<vmem>>, vector<32x64xf32>
      %c0_12 = arith.constant 0 : index
      %c0_13 = arith.constant 0 : index
      %13 = vector.load %arg5[%c0_12, %c0_13] : memref<1x64xf32, #tpu.memory_space<vmem>>, vector<1x64xf32>
      %c0_14 = arith.constant 0 : index
      %c0_15 = arith.constant 0 : index
      %14 = vector.load %arg6[%c0_14, %c0_15] : memref<1x64xf32, #tpu.memory_space<vmem>>, vector<1x64xf32>
      %15 = vector.broadcast %13 : vector<1x64xf32> to vector<32x64xf32>
      %16 = arith.mulf %12, %15 : vector<32x64xf32>
      %17 = vector.broadcast %14 : vector<1x64xf32> to vector<32x64xf32>
      %18 = arith.addf %16, %17 : vector<32x64xf32>
      %cst_16 = arith.constant 0.000000e+00 : f32
      %19 = vector.broadcast %cst_16 : f32 to vector<32x64xf32>
      %20 = arith.maximumf %18, %19 : vector<32x64xf32>
      %21 = arith.truncf %20 : vector<32x64xf32> to vector<32x64xbf16>
      %c0_17 = arith.constant 0 : index
      %c0_18 = arith.constant 0 : index
      %22 = vector.load %arg7[%c0_17, %c0_18] : memref<32x64xbf16, #tpu.memory_space<vmem>>, vector<32x64xbf16>
      tpu.vector_store %arg7[%c0_17, %c0_18], %21 {strides = array<i32>} : memref<32x64xbf16, #tpu.memory_space<vmem>>, vector<32x64xbf16>,
    } else {
    }
    return
  }
  func.func @transform_0(%arg0: i32, %arg1: i32, %arg2: i32) -> (i32, i32) {
    %c0_i32 = arith.constant 0 : i32
    return %arg0, %arg2 : i32, i32
  }
  func.func @transform_1(%arg0: i32, %arg1: i32, %arg2: i32) -> (i32, i32) {
    %c0_i32 = arith.constant 0 : i32
    return %arg2, %arg1 : i32, i32
  }
  func.func @transform_2(%arg0: i32, %arg1: i32, %arg2: i32) -> (i32, i32) {
    %c0_i32 = arith.constant 0 : i32
    %c0_i32_0 = arith.constant 0 : i32
    return %c0_i32, %arg1 : i32, i32
  }
  func.func @transform_3(%arg0: i32, %arg1: i32, %arg2: i32) -> (i32, i32) {
    %c0_i32 = arith.constant 0 : i32
    %c0_i32_0 = arith.constant 0 : i32
    return %c0_i32, %arg1 : i32, i32
  }
  func.func @transform_4(%arg0: i32, %arg1: i32, %arg2: i32) -> (i32, i32) {
    %c0_i32 = arith.constant 0 : i32
    return %arg0, %arg1 : i32, i32
  }
}

module attributes {stable_mosaic.version = 11 : i64} {
  func.func @_mm_res_kernel(%arg0: i32, %arg1: i32, %arg2: i32, %arg3: memref<32x192xbf16, #tpu.memory_space<vmem>>, %arg4: memref<192x64xbf16, #tpu.memory_space<vmem>>, %arg5: memref<1x64xf32, #tpu.memory_space<vmem>>, %arg6: memref<1x64xf32, #tpu.memory_space<vmem>>, %arg7: memref<32x64xbf16, #tpu.memory_space<vmem>>, %arg8: memref<32x64xbf16, #tpu.memory_space<vmem>>, %arg9: memref<32x64xf32, #tpu.memory_space<vmem>>) attributes {dimension_semantics = [#tpu.dimension_semantics<parallel>, #tpu.dimension_semantics<parallel>, #tpu.dimension_semantics<arbitrary>], iteration_bounds = array<i64: 1, 1, 1>, scalar_prefetch = 0 : i64, scratch_operands = 1 : i64, tpu.core_type = #tpu.core_type<tc>, window_params = [{transform_indices = @transform_0, window_bounds = array<i64: 32, 192>}, {transform_indices = @transform_1, window_bounds = array<i64: 192, 64>}, {transform_indices = @transform_2, window_bounds = array<i64: 1, 64>}, {transform_indices = @transform_3, window_bounds = array<i64: 1, 64>}, {transform_indices = @transform_4, window_bounds = array<i64: 32, 64>}, {transform_indices = @transform_5, window_bounds = array<i64: 32, 64>}]} {
    %c0_i32 = arith.constant 0 : i32
    %0 = arith.cmpi eq, %arg2, %c0_i32 : i32
    %1 = arith.extui %0 : i1 to i32
    %c0_i32_0 = arith.constant 0 : i32
    %2 = arith.cmpi ne, %1, %c0_i32_0 : i32
    scf.if %2 {
      %cst_10 = arith.constant 0.000000e+00 : f32
      %12 = vector.broadcast %cst_10 : f32 to vector<32x64xf32>
      %c0_11 = arith.constant 0 : index
      %c0_12 = arith.constant 0 : index
      %13 = vector.load %arg9[%c0_11, %c0_12] : memref<32x64xf32, #tpu.memory_space<vmem>>, vector<32x64xf32>
      tpu.vector_store %arg9[%c0_11, %c0_12], %12 {strides = array<i32>} : memref<32x64xf32, #tpu.memory_space<vmem>>, vector<32x64xf32>,
    } else {
    }
    %c0 = arith.constant 0 : index
    %c0_1 = arith.constant 0 : index
    %3 = vector.load %arg9[%c0, %c0_1] : memref<32x64xf32, #tpu.memory_space<vmem>>, vector<32x64xf32>
    %c0_2 = arith.constant 0 : index
    %c0_3 = arith.constant 0 : index
    %4 = vector.load %arg3[%c0_2, %c0_3] : memref<32x192xbf16, #tpu.memory_space<vmem>>, vector<32x192xbf16>
    %c0_4 = arith.constant 0 : index
    %c0_5 = arith.constant 0 : index
    %5 = vector.load %arg4[%c0_4, %c0_5] : memref<192x64xbf16, #tpu.memory_space<vmem>>, vector<192x64xbf16>
    %cst = arith.constant dense<0.000000e+00> : vector<32x64xf32>
    %6 = tpu.matmul %4, %5, %cst {dimension_numbers = #tpu.dot_dimension_numbers<[1], [0], [0], [1], [0, 0, 1, 1], [], []>} : vector<32x192xbf16>, vector<192x64xbf16>, vector<32x64xf32> -> vector<32x64xf32>
    %7 = arith.addf %3, %6 : vector<32x64xf32>
    %c0_6 = arith.constant 0 : index
    %c0_7 = arith.constant 0 : index
    %8 = vector.load %arg9[%c0_6, %c0_7] : memref<32x64xf32, #tpu.memory_space<vmem>>, vector<32x64xf32>
    tpu.vector_store %arg9[%c0_6, %c0_7], %7 {strides = array<i32>} : memref<32x64xf32, #tpu.memory_space<vmem>>, vector<32x64xf32>,
    %c0_i32_8 = arith.constant 0 : i32
    %9 = arith.cmpi eq, %arg2, %c0_i32_8 : i32
    %10 = arith.extui %9 : i1 to i32
    %c0_i32_9 = arith.constant 0 : i32
    %11 = arith.cmpi ne, %10, %c0_i32_9 : i32
    scf.if %11 {
      %c0_10 = arith.constant 0 : index
      %c0_11 = arith.constant 0 : index
      %12 = vector.load %arg9[%c0_10, %c0_11] : memref<32x64xf32, #tpu.memory_space<vmem>>, vector<32x64xf32>
      %c0_12 = arith.constant 0 : index
      %c0_13 = arith.constant 0 : index
      %13 = vector.load %arg5[%c0_12, %c0_13] : memref<1x64xf32, #tpu.memory_space<vmem>>, vector<1x64xf32>
      %c0_14 = arith.constant 0 : index
      %c0_15 = arith.constant 0 : index
      %14 = vector.load %arg6[%c0_14, %c0_15] : memref<1x64xf32, #tpu.memory_space<vmem>>, vector<1x64xf32>
      %c0_16 = arith.constant 0 : index
      %c0_17 = arith.constant 0 : index
      %15 = vector.load %arg7[%c0_16, %c0_17] : memref<32x64xbf16, #tpu.memory_space<vmem>>, vector<32x64xbf16>
      %16 = vector.broadcast %13 : vector<1x64xf32> to vector<32x64xf32>
      %17 = arith.mulf %12, %16 : vector<32x64xf32>
      %18 = vector.broadcast %14 : vector<1x64xf32> to vector<32x64xf32>
      %19 = arith.addf %17, %18 : vector<32x64xf32>
      %20 = arith.extf %15 : vector<32x64xbf16> to vector<32x64xf32>
      %21 = arith.addf %19, %20 : vector<32x64xf32>
      %cst_18 = arith.constant 0.000000e+00 : f32
      %22 = vector.broadcast %cst_18 : f32 to vector<32x64xf32>
      %23 = arith.maximumf %21, %22 : vector<32x64xf32>
      %24 = arith.truncf %23 : vector<32x64xf32> to vector<32x64xbf16>
      %c0_19 = arith.constant 0 : index
      %c0_20 = arith.constant 0 : index
      %25 = vector.load %arg8[%c0_19, %c0_20] : memref<32x64xbf16, #tpu.memory_space<vmem>>, vector<32x64xbf16>
      tpu.vector_store %arg8[%c0_19, %c0_20], %24 {strides = array<i32>} : memref<32x64xbf16, #tpu.memory_space<vmem>>, vector<32x64xbf16>,
    } else {
    }
    return
  }
  func.func @transform_0(%arg0: i32, %arg1: i32, %arg2: i32) -> (i32, i32) {
    %c0_i32 = arith.constant 0 : i32
    return %arg0, %arg2 : i32, i32
  }
  func.func @transform_1(%arg0: i32, %arg1: i32, %arg2: i32) -> (i32, i32) {
    %c0_i32 = arith.constant 0 : i32
    return %arg2, %arg1 : i32, i32
  }
  func.func @transform_2(%arg0: i32, %arg1: i32, %arg2: i32) -> (i32, i32) {
    %c0_i32 = arith.constant 0 : i32
    %c0_i32_0 = arith.constant 0 : i32
    return %c0_i32, %arg1 : i32, i32
  }
  func.func @transform_3(%arg0: i32, %arg1: i32, %arg2: i32) -> (i32, i32) {
    %c0_i32 = arith.constant 0 : i32
    %c0_i32_0 = arith.constant 0 : i32
    return %c0_i32, %arg1 : i32, i32
  }
  func.func @transform_4(%arg0: i32, %arg1: i32, %arg2: i32) -> (i32, i32) {
    %c0_i32 = arith.constant 0 : i32
    return %arg0, %arg1 : i32, i32
  }
  func.func @transform_5(%arg0: i32, %arg1: i32, %arg2: i32) -> (i32, i32) {
    %c0_i32 = arith.constant 0 : i32
    return %arg0, %arg1 : i32, i32
  }
}

module attributes {stable_mosaic.version = 11 : i64} {
  func.func @_mm_kernel(%arg0: i32, %arg1: i32, %arg2: i32, %arg3: memref<8x576xbf16, #tpu.memory_space<vmem>>, %arg4: memref<576x64xbf16, #tpu.memory_space<vmem>>, %arg5: memref<1x64xf32, #tpu.memory_space<vmem>>, %arg6: memref<1x64xf32, #tpu.memory_space<vmem>>, %arg7: memref<8x64xbf16, #tpu.memory_space<vmem>>, %arg8: memref<8x64xf32, #tpu.memory_space<vmem>>) attributes {dimension_semantics = [#tpu.dimension_semantics<parallel>, #tpu.dimension_semantics<parallel>, #tpu.dimension_semantics<arbitrary>], iteration_bounds = array<i64: 1, 1, 1>, scalar_prefetch = 0 : i64, scratch_operands = 1 : i64, tpu.core_type = #tpu.core_type<tc>, window_params = [{transform_indices = @transform_0, window_bounds = array<i64: 8, 576>}, {transform_indices = @transform_1, window_bounds = array<i64: 576, 64>}, {transform_indices = @transform_2, window_bounds = array<i64: 1, 64>}, {transform_indices = @transform_3, window_bounds = array<i64: 1, 64>}, {transform_indices = @transform_4, window_bounds = array<i64: 8, 64>}]} {
    %c0_i32 = arith.constant 0 : i32
    %0 = arith.cmpi eq, %arg2, %c0_i32 : i32
    %1 = arith.extui %0 : i1 to i32
    %c0_i32_0 = arith.constant 0 : i32
    %2 = arith.cmpi ne, %1, %c0_i32_0 : i32
    scf.if %2 {
      %cst_10 = arith.constant 0.000000e+00 : f32
      %12 = vector.broadcast %cst_10 : f32 to vector<8x64xf32>
      %c0_11 = arith.constant 0 : index
      %c0_12 = arith.constant 0 : index
      %13 = vector.load %arg8[%c0_11, %c0_12] : memref<8x64xf32, #tpu.memory_space<vmem>>, vector<8x64xf32>
      tpu.vector_store %arg8[%c0_11, %c0_12], %12 {strides = array<i32>} : memref<8x64xf32, #tpu.memory_space<vmem>>, vector<8x64xf32>,
    } else {
    }
    %c0 = arith.constant 0 : index
    %c0_1 = arith.constant 0 : index
    %3 = vector.load %arg8[%c0, %c0_1] : memref<8x64xf32, #tpu.memory_space<vmem>>, vector<8x64xf32>
    %c0_2 = arith.constant 0 : index
    %c0_3 = arith.constant 0 : index
    %4 = vector.load %arg3[%c0_2, %c0_3] : memref<8x576xbf16, #tpu.memory_space<vmem>>, vector<8x576xbf16>
    %c0_4 = arith.constant 0 : index
    %c0_5 = arith.constant 0 : index
    %5 = vector.load %arg4[%c0_4, %c0_5] : memref<576x64xbf16, #tpu.memory_space<vmem>>, vector<576x64xbf16>
    %cst = arith.constant dense<0.000000e+00> : vector<8x64xf32>
    %6 = tpu.matmul %4, %5, %cst {dimension_numbers = #tpu.dot_dimension_numbers<[1], [0], [0], [1], [0, 0, 1, 1], [], []>} : vector<8x576xbf16>, vector<576x64xbf16>, vector<8x64xf32> -> vector<8x64xf32>
    %7 = arith.addf %3, %6 : vector<8x64xf32>
    %c0_6 = arith.constant 0 : index
    %c0_7 = arith.constant 0 : index
    %8 = vector.load %arg8[%c0_6, %c0_7] : memref<8x64xf32, #tpu.memory_space<vmem>>, vector<8x64xf32>
    tpu.vector_store %arg8[%c0_6, %c0_7], %7 {strides = array<i32>} : memref<8x64xf32, #tpu.memory_space<vmem>>, vector<8x64xf32>,
    %c0_i32_8 = arith.constant 0 : i32
    %9 = arith.cmpi eq, %arg2, %c0_i32_8 : i32
    %10 = arith.extui %9 : i1 to i32
    %c0_i32_9 = arith.constant 0 : i32
    %11 = arith.cmpi ne, %10, %c0_i32_9 : i32
    scf.if %11 {
      %c0_10 = arith.constant 0 : index
      %c0_11 = arith.constant 0 : index
      %12 = vector.load %arg8[%c0_10, %c0_11] : memref<8x64xf32, #tpu.memory_space<vmem>>, vector<8x64xf32>
      %c0_12 = arith.constant 0 : index
      %c0_13 = arith.constant 0 : index
      %13 = vector.load %arg5[%c0_12, %c0_13] : memref<1x64xf32, #tpu.memory_space<vmem>>, vector<1x64xf32>
      %c0_14 = arith.constant 0 : index
      %c0_15 = arith.constant 0 : index
      %14 = vector.load %arg6[%c0_14, %c0_15] : memref<1x64xf32, #tpu.memory_space<vmem>>, vector<1x64xf32>
      %15 = vector.broadcast %13 : vector<1x64xf32> to vector<8x64xf32>
      %16 = arith.mulf %12, %15 : vector<8x64xf32>
      %17 = vector.broadcast %14 : vector<1x64xf32> to vector<8x64xf32>
      %18 = arith.addf %16, %17 : vector<8x64xf32>
      %cst_16 = arith.constant 0.000000e+00 : f32
      %19 = vector.broadcast %cst_16 : f32 to vector<8x64xf32>
      %20 = arith.maximumf %18, %19 : vector<8x64xf32>
      %21 = arith.truncf %20 : vector<8x64xf32> to vector<8x64xbf16>
      %c0_17 = arith.constant 0 : index
      %c0_18 = arith.constant 0 : index
      %22 = vector.load %arg7[%c0_17, %c0_18] : memref<8x64xbf16, #tpu.memory_space<vmem>>, vector<8x64xbf16>
      tpu.vector_store %arg7[%c0_17, %c0_18], %21 {strides = array<i32>} : memref<8x64xbf16, #tpu.memory_space<vmem>>, vector<8x64xbf16>,
    } else {
    }
    return
  }
  func.func @transform_0(%arg0: i32, %arg1: i32, %arg2: i32) -> (i32, i32) {
    %c0_i32 = arith.constant 0 : i32
    return %arg0, %arg2 : i32, i32
  }
  func.func @transform_1(%arg0: i32, %arg1: i32, %arg2: i32) -> (i32, i32) {
    %c0_i32 = arith.constant 0 : i32
    return %arg2, %arg1 : i32, i32
  }
  func.func @transform_2(%arg0: i32, %arg1: i32, %arg2: i32) -> (i32, i32) {
    %c0_i32 = arith.constant 0 : i32
    %c0_i32_0 = arith.constant 0 : i32
    return %c0_i32, %arg1 : i32, i32
  }
  func.func @transform_3(%arg0: i32, %arg1: i32, %arg2: i32) -> (i32, i32) {
    %c0_i32 = arith.constant 0 : i32
    %c0_i32_0 = arith.constant 0 : i32
    return %c0_i32, %arg1 : i32, i32
  }
  func.func @transform_4(%arg0: i32, %arg1: i32, %arg2: i32) -> (i32, i32) {
    %c0_i32 = arith.constant 0 : i32
    return %arg0, %arg1 : i32, i32
  }
}

module attributes {stable_mosaic.version = 11 : i64} {
  func.func @_pool_bn_relu_kernel(%arg0: i32, %arg1: memref<8x64xbf16, #tpu.memory_space<vmem>>, %arg2: memref<8x64xbf16, #tpu.memory_space<vmem>>, %arg3: memref<8x64xbf16, #tpu.memory_space<vmem>>, %arg4: memref<8x64xbf16, #tpu.memory_space<vmem>>, %arg5: memref<1x64xf32, #tpu.memory_space<vmem>>, %arg6: memref<1x64xf32, #tpu.memory_space<vmem>>, %arg7: memref<8x64xbf16, #tpu.memory_space<vmem>>) attributes {dimension_semantics = [#tpu.dimension_semantics<parallel>], iteration_bounds = array<i64: 1>, scalar_prefetch = 0 : i64, scratch_operands = 0 : i64, tpu.core_type = #tpu.core_type<tc>, window_params = [{transform_indices = @transform_0, window_bounds = array<i64: 8, 64>}, {transform_indices = @transform_1, window_bounds = array<i64: 8, 64>}, {transform_indices = @transform_2, window_bounds = array<i64: 8, 64>}, {transform_indices = @transform_3, window_bounds = array<i64: 8, 64>}, {pipeline_mode = #tpu.pipeline_mode<synchronous>, transform_indices = @transform_4, window_bounds = array<i64: 1, 64>}, {pipeline_mode = #tpu.pipeline_mode<synchronous>, transform_indices = @transform_5, window_bounds = array<i64: 1, 64>}, {transform_indices = @transform_6, window_bounds = array<i64: 8, 64>}]} {
    %c0 = arith.constant 0 : index
    %c0_0 = arith.constant 0 : index
    %0 = vector.load %arg1[%c0, %c0_0] : memref<8x64xbf16, #tpu.memory_space<vmem>>, vector<8x64xbf16>
    %c0_1 = arith.constant 0 : index
    %c0_2 = arith.constant 0 : index
    %1 = vector.load %arg2[%c0_1, %c0_2] : memref<8x64xbf16, #tpu.memory_space<vmem>>, vector<8x64xbf16>
    %2 = arith.maximumf %0, %1 : vector<8x64xbf16>
    %c0_3 = arith.constant 0 : index
    %c0_4 = arith.constant 0 : index
    %3 = vector.load %arg3[%c0_3, %c0_4] : memref<8x64xbf16, #tpu.memory_space<vmem>>, vector<8x64xbf16>
    %c0_5 = arith.constant 0 : index
    %c0_6 = arith.constant 0 : index
    %4 = vector.load %arg4[%c0_5, %c0_6] : memref<8x64xbf16, #tpu.memory_space<vmem>>, vector<8x64xbf16>
    %5 = arith.maximumf %3, %4 : vector<8x64xbf16>
    %6 = arith.maximumf %2, %5 : vector<8x64xbf16>
    %7 = arith.extf %6 : vector<8x64xbf16> to vector<8x64xf32>
    %c0_7 = arith.constant 0 : index
    %c0_8 = arith.constant 0 : index
    %8 = vector.load %arg5[%c0_7, %c0_8] : memref<1x64xf32, #tpu.memory_space<vmem>>, vector<1x64xf32>
    %9 = vector.broadcast %8 : vector<1x64xf32> to vector<8x64xf32>
    %10 = arith.mulf %7, %9 : vector<8x64xf32>
    %c0_9 = arith.constant 0 : index
    %c0_10 = arith.constant 0 : index
    %11 = vector.load %arg6[%c0_9, %c0_10] : memref<1x64xf32, #tpu.memory_space<vmem>>, vector<1x64xf32>
    %12 = vector.broadcast %11 : vector<1x64xf32> to vector<8x64xf32>
    %13 = arith.addf %10, %12 : vector<8x64xf32>
    %cst = arith.constant 0.000000e+00 : f32
    %14 = vector.broadcast %cst : f32 to vector<8x64xf32>
    %15 = arith.maximumf %13, %14 : vector<8x64xf32>
    %16 = arith.truncf %15 : vector<8x64xf32> to vector<8x64xbf16>
    %c0_11 = arith.constant 0 : index
    %c0_12 = arith.constant 0 : index
    %17 = vector.load %arg7[%c0_11, %c0_12] : memref<8x64xbf16, #tpu.memory_space<vmem>>, vector<8x64xbf16>
    tpu.vector_store %arg7[%c0_11, %c0_12], %16 {strides = array<i32>} : memref<8x64xbf16, #tpu.memory_space<vmem>>, vector<8x64xbf16>,
    return
  }
  func.func @transform_0(%arg0: i32) -> (i32, i32) {
    %c0_i32 = arith.constant 0 : i32
    %c0_i32_0 = arith.constant 0 : i32
    return %arg0, %c0_i32 : i32, i32
  }
  func.func @transform_1(%arg0: i32) -> (i32, i32) {
    %c0_i32 = arith.constant 0 : i32
    %c0_i32_0 = arith.constant 0 : i32
    return %arg0, %c0_i32 : i32, i32
  }
  func.func @transform_2(%arg0: i32) -> (i32, i32) {
    %c0_i32 = arith.constant 0 : i32
    %c0_i32_0 = arith.constant 0 : i32
    return %arg0, %c0_i32 : i32, i32
  }
  func.func @transform_3(%arg0: i32) -> (i32, i32) {
    %c0_i32 = arith.constant 0 : i32
    %c0_i32_0 = arith.constant 0 : i32
    return %arg0, %c0_i32 : i32, i32
  }
  func.func @transform_4(%arg0: i32) -> (i32, i32) {
    %c0_i32 = arith.constant 0 : i32
    %c0_i32_0 = arith.constant 0 : i32
    %c0_i32_1 = arith.constant 0 : i32
    return %c0_i32, %c0_i32_0 : i32, i32
  }
  func.func @transform_5(%arg0: i32) -> (i32, i32) {
    %c0_i32 = arith.constant 0 : i32
    %c0_i32_0 = arith.constant 0 : i32
    %c0_i32_1 = arith.constant 0 : i32
    return %c0_i32, %c0_i32_0 : i32, i32
  }
  func.func @transform_6(%arg0: i32) -> (i32, i32) {
    %c0_i32 = arith.constant 0 : i32
    %c0_i32_0 = arith.constant 0 : i32
    return %arg0, %c0_i32 : i32, i32
  }
}

module attributes {stable_mosaic.version = 11 : i64} {
  func.func @_mm_kernel(%arg0: i32, %arg1: i32, %arg2: i32, %arg3: memref<8x384xbf16, #tpu.memory_space<vmem>>, %arg4: memref<384x128xbf16, #tpu.memory_space<vmem>>, %arg5: memref<1x128xf32, #tpu.memory_space<vmem>>, %arg6: memref<1x128xf32, #tpu.memory_space<vmem>>, %arg7: memref<8x128xbf16, #tpu.memory_space<vmem>>, %arg8: memref<8x128xf32, #tpu.memory_space<vmem>>) attributes {dimension_semantics = [#tpu.dimension_semantics<parallel>, #tpu.dimension_semantics<parallel>, #tpu.dimension_semantics<arbitrary>], iteration_bounds = array<i64: 1, 1, 1>, scalar_prefetch = 0 : i64, scratch_operands = 1 : i64, tpu.core_type = #tpu.core_type<tc>, window_params = [{transform_indices = @transform_0, window_bounds = array<i64: 8, 384>}, {transform_indices = @transform_1, window_bounds = array<i64: 384, 128>}, {transform_indices = @transform_2, window_bounds = array<i64: 1, 128>}, {transform_indices = @transform_3, window_bounds = array<i64: 1, 128>}, {transform_indices = @transform_4, window_bounds = array<i64: 8, 128>}]} {
    %c0_i32 = arith.constant 0 : i32
    %0 = arith.cmpi eq, %arg2, %c0_i32 : i32
    %1 = arith.extui %0 : i1 to i32
    %c0_i32_0 = arith.constant 0 : i32
    %2 = arith.cmpi ne, %1, %c0_i32_0 : i32
    scf.if %2 {
      %cst_10 = arith.constant 0.000000e+00 : f32
      %12 = vector.broadcast %cst_10 : f32 to vector<8x128xf32>
      %c0_11 = arith.constant 0 : index
      %c0_12 = arith.constant 0 : index
      %13 = vector.load %arg8[%c0_11, %c0_12] : memref<8x128xf32, #tpu.memory_space<vmem>>, vector<8x128xf32>
      tpu.vector_store %arg8[%c0_11, %c0_12], %12 {strides = array<i32>} : memref<8x128xf32, #tpu.memory_space<vmem>>, vector<8x128xf32>,
    } else {
    }
    %c0 = arith.constant 0 : index
    %c0_1 = arith.constant 0 : index
    %3 = vector.load %arg8[%c0, %c0_1] : memref<8x128xf32, #tpu.memory_space<vmem>>, vector<8x128xf32>
    %c0_2 = arith.constant 0 : index
    %c0_3 = arith.constant 0 : index
    %4 = vector.load %arg3[%c0_2, %c0_3] : memref<8x384xbf16, #tpu.memory_space<vmem>>, vector<8x384xbf16>
    %c0_4 = arith.constant 0 : index
    %c0_5 = arith.constant 0 : index
    %5 = vector.load %arg4[%c0_4, %c0_5] : memref<384x128xbf16, #tpu.memory_space<vmem>>, vector<384x128xbf16>
    %cst = arith.constant dense<0.000000e+00> : vector<8x128xf32>
    %6 = tpu.matmul %4, %5, %cst {dimension_numbers = #tpu.dot_dimension_numbers<[1], [0], [0], [1], [0, 0, 1, 1], [], []>} : vector<8x384xbf16>, vector<384x128xbf16>, vector<8x128xf32> -> vector<8x128xf32>
    %7 = arith.addf %3, %6 : vector<8x128xf32>
    %c0_6 = arith.constant 0 : index
    %c0_7 = arith.constant 0 : index
    %8 = vector.load %arg8[%c0_6, %c0_7] : memref<8x128xf32, #tpu.memory_space<vmem>>, vector<8x128xf32>
    tpu.vector_store %arg8[%c0_6, %c0_7], %7 {strides = array<i32>} : memref<8x128xf32, #tpu.memory_space<vmem>>, vector<8x128xf32>,
    %c0_i32_8 = arith.constant 0 : i32
    %9 = arith.cmpi eq, %arg2, %c0_i32_8 : i32
    %10 = arith.extui %9 : i1 to i32
    %c0_i32_9 = arith.constant 0 : i32
    %11 = arith.cmpi ne, %10, %c0_i32_9 : i32
    scf.if %11 {
      %c0_10 = arith.constant 0 : index
      %c0_11 = arith.constant 0 : index
      %12 = vector.load %arg8[%c0_10, %c0_11] : memref<8x128xf32, #tpu.memory_space<vmem>>, vector<8x128xf32>
      %c0_12 = arith.constant 0 : index
      %c0_13 = arith.constant 0 : index
      %13 = vector.load %arg5[%c0_12, %c0_13] : memref<1x128xf32, #tpu.memory_space<vmem>>, vector<1x128xf32>
      %c0_14 = arith.constant 0 : index
      %c0_15 = arith.constant 0 : index
      %14 = vector.load %arg6[%c0_14, %c0_15] : memref<1x128xf32, #tpu.memory_space<vmem>>, vector<1x128xf32>
      %15 = vector.broadcast %13 : vector<1x128xf32> to vector<8x128xf32>
      %16 = arith.mulf %12, %15 : vector<8x128xf32>
      %17 = vector.broadcast %14 : vector<1x128xf32> to vector<8x128xf32>
      %18 = arith.addf %16, %17 : vector<8x128xf32>
      %cst_16 = arith.constant 0.000000e+00 : f32
      %19 = vector.broadcast %cst_16 : f32 to vector<8x128xf32>
      %20 = arith.maximumf %18, %19 : vector<8x128xf32>
      %21 = arith.truncf %20 : vector<8x128xf32> to vector<8x128xbf16>
      %c0_17 = arith.constant 0 : index
      %c0_18 = arith.constant 0 : index
      %22 = vector.load %arg7[%c0_17, %c0_18] : memref<8x128xbf16, #tpu.memory_space<vmem>>, vector<8x128xbf16>
      tpu.vector_store %arg7[%c0_17, %c0_18], %21 {strides = array<i32>} : memref<8x128xbf16, #tpu.memory_space<vmem>>, vector<8x128xbf16>,
    } else {
    }
    return
  }
  func.func @transform_0(%arg0: i32, %arg1: i32, %arg2: i32) -> (i32, i32) {
    %c0_i32 = arith.constant 0 : i32
    return %arg0, %arg2 : i32, i32
  }
  func.func @transform_1(%arg0: i32, %arg1: i32, %arg2: i32) -> (i32, i32) {
    %c0_i32 = arith.constant 0 : i32
    return %arg2, %arg1 : i32, i32
  }
  func.func @transform_2(%arg0: i32, %arg1: i32, %arg2: i32) -> (i32, i32) {
    %c0_i32 = arith.constant 0 : i32
    %c0_i32_0 = arith.constant 0 : i32
    return %c0_i32, %arg1 : i32, i32
  }
  func.func @transform_3(%arg0: i32, %arg1: i32, %arg2: i32) -> (i32, i32) {
    %c0_i32 = arith.constant 0 : i32
    %c0_i32_0 = arith.constant 0 : i32
    return %c0_i32, %arg1 : i32, i32
  }
  func.func @transform_4(%arg0: i32, %arg1: i32, %arg2: i32) -> (i32, i32) {
    %c0_i32 = arith.constant 0 : i32
    return %arg0, %arg1 : i32, i32
  }
}

module attributes {stable_mosaic.version = 11 : i64} {
  func.func @_mm_res_kernel(%arg0: i32, %arg1: i32, %arg2: i32, %arg3: memref<8x384xbf16, #tpu.memory_space<vmem>>, %arg4: memref<384x128xbf16, #tpu.memory_space<vmem>>, %arg5: memref<1x128xf32, #tpu.memory_space<vmem>>, %arg6: memref<1x128xf32, #tpu.memory_space<vmem>>, %arg7: memref<8x128xbf16, #tpu.memory_space<vmem>>, %arg8: memref<8x128xbf16, #tpu.memory_space<vmem>>, %arg9: memref<8x128xf32, #tpu.memory_space<vmem>>) attributes {dimension_semantics = [#tpu.dimension_semantics<parallel>, #tpu.dimension_semantics<parallel>, #tpu.dimension_semantics<arbitrary>], iteration_bounds = array<i64: 1, 1, 1>, scalar_prefetch = 0 : i64, scratch_operands = 1 : i64, tpu.core_type = #tpu.core_type<tc>, window_params = [{transform_indices = @transform_0, window_bounds = array<i64: 8, 384>}, {transform_indices = @transform_1, window_bounds = array<i64: 384, 128>}, {transform_indices = @transform_2, window_bounds = array<i64: 1, 128>}, {transform_indices = @transform_3, window_bounds = array<i64: 1, 128>}, {transform_indices = @transform_4, window_bounds = array<i64: 8, 128>}, {transform_indices = @transform_5, window_bounds = array<i64: 8, 128>}]} {
    %c0_i32 = arith.constant 0 : i32
    %0 = arith.cmpi eq, %arg2, %c0_i32 : i32
    %1 = arith.extui %0 : i1 to i32
    %c0_i32_0 = arith.constant 0 : i32
    %2 = arith.cmpi ne, %1, %c0_i32_0 : i32
    scf.if %2 {
      %cst_10 = arith.constant 0.000000e+00 : f32
      %12 = vector.broadcast %cst_10 : f32 to vector<8x128xf32>
      %c0_11 = arith.constant 0 : index
      %c0_12 = arith.constant 0 : index
      %13 = vector.load %arg9[%c0_11, %c0_12] : memref<8x128xf32, #tpu.memory_space<vmem>>, vector<8x128xf32>
      tpu.vector_store %arg9[%c0_11, %c0_12], %12 {strides = array<i32>} : memref<8x128xf32, #tpu.memory_space<vmem>>, vector<8x128xf32>,
    } else {
    }
    %c0 = arith.constant 0 : index
    %c0_1 = arith.constant 0 : index
    %3 = vector.load %arg9[%c0, %c0_1] : memref<8x128xf32, #tpu.memory_space<vmem>>, vector<8x128xf32>
    %c0_2 = arith.constant 0 : index
    %c0_3 = arith.constant 0 : index
    %4 = vector.load %arg3[%c0_2, %c0_3] : memref<8x384xbf16, #tpu.memory_space<vmem>>, vector<8x384xbf16>
    %c0_4 = arith.constant 0 : index
    %c0_5 = arith.constant 0 : index
    %5 = vector.load %arg4[%c0_4, %c0_5] : memref<384x128xbf16, #tpu.memory_space<vmem>>, vector<384x128xbf16>
    %cst = arith.constant dense<0.000000e+00> : vector<8x128xf32>
    %6 = tpu.matmul %4, %5, %cst {dimension_numbers = #tpu.dot_dimension_numbers<[1], [0], [0], [1], [0, 0, 1, 1], [], []>} : vector<8x384xbf16>, vector<384x128xbf16>, vector<8x128xf32> -> vector<8x128xf32>
    %7 = arith.addf %3, %6 : vector<8x128xf32>
    %c0_6 = arith.constant 0 : index
    %c0_7 = arith.constant 0 : index
    %8 = vector.load %arg9[%c0_6, %c0_7] : memref<8x128xf32, #tpu.memory_space<vmem>>, vector<8x128xf32>
    tpu.vector_store %arg9[%c0_6, %c0_7], %7 {strides = array<i32>} : memref<8x128xf32, #tpu.memory_space<vmem>>, vector<8x128xf32>,
    %c0_i32_8 = arith.constant 0 : i32
    %9 = arith.cmpi eq, %arg2, %c0_i32_8 : i32
    %10 = arith.extui %9 : i1 to i32
    %c0_i32_9 = arith.constant 0 : i32
    %11 = arith.cmpi ne, %10, %c0_i32_9 : i32
    scf.if %11 {
      %c0_10 = arith.constant 0 : index
      %c0_11 = arith.constant 0 : index
      %12 = vector.load %arg9[%c0_10, %c0_11] : memref<8x128xf32, #tpu.memory_space<vmem>>, vector<8x128xf32>
      %c0_12 = arith.constant 0 : index
      %c0_13 = arith.constant 0 : index
      %13 = vector.load %arg5[%c0_12, %c0_13] : memref<1x128xf32, #tpu.memory_space<vmem>>, vector<1x128xf32>
      %c0_14 = arith.constant 0 : index
      %c0_15 = arith.constant 0 : index
      %14 = vector.load %arg6[%c0_14, %c0_15] : memref<1x128xf32, #tpu.memory_space<vmem>>, vector<1x128xf32>
      %c0_16 = arith.constant 0 : index
      %c0_17 = arith.constant 0 : index
      %15 = vector.load %arg7[%c0_16, %c0_17] : memref<8x128xbf16, #tpu.memory_space<vmem>>, vector<8x128xbf16>
      %16 = vector.broadcast %13 : vector<1x128xf32> to vector<8x128xf32>
      %17 = arith.mulf %12, %16 : vector<8x128xf32>
      %18 = vector.broadcast %14 : vector<1x128xf32> to vector<8x128xf32>
      %19 = arith.addf %17, %18 : vector<8x128xf32>
      %20 = arith.extf %15 : vector<8x128xbf16> to vector<8x128xf32>
      %21 = arith.addf %19, %20 : vector<8x128xf32>
      %cst_18 = arith.constant 0.000000e+00 : f32
      %22 = vector.broadcast %cst_18 : f32 to vector<8x128xf32>
      %23 = arith.maximumf %21, %22 : vector<8x128xf32>
      %24 = arith.truncf %23 : vector<8x128xf32> to vector<8x128xbf16>
      %c0_19 = arith.constant 0 : index
      %c0_20 = arith.constant 0 : index
      %25 = vector.load %arg8[%c0_19, %c0_20] : memref<8x128xbf16, #tpu.memory_space<vmem>>, vector<8x128xbf16>
      tpu.vector_store %arg8[%c0_19, %c0_20], %24 {strides = array<i32>} : memref<8x128xbf16, #tpu.memory_space<vmem>>, vector<8x128xbf16>,
    } else {
    }
    return
  }
  func.func @transform_0(%arg0: i32, %arg1: i32, %arg2: i32) -> (i32, i32) {
    %c0_i32 = arith.constant 0 : i32
    return %arg0, %arg2 : i32, i32
  }
  func.func @transform_1(%arg0: i32, %arg1: i32, %arg2: i32) -> (i32, i32) {
    %c0_i32 = arith.constant 0 : i32
    return %arg2, %arg1 : i32, i32
  }
  func.func @transform_2(%arg0: i32, %arg1: i32, %arg2: i32) -> (i32, i32) {
    %c0_i32 = arith.constant 0 : i32
    %c0_i32_0 = arith.constant 0 : i32
    return %c0_i32, %arg1 : i32, i32
  }
  func.func @transform_3(%arg0: i32, %arg1: i32, %arg2: i32) -> (i32, i32) {
    %c0_i32 = arith.constant 0 : i32
    %c0_i32_0 = arith.constant 0 : i32
    return %c0_i32, %arg1 : i32, i32
  }
  func.func @transform_4(%arg0: i32, %arg1: i32, %arg2: i32) -> (i32, i32) {
    %c0_i32 = arith.constant 0 : i32
    return %arg0, %arg1 : i32, i32
  }
  func.func @transform_5(%arg0: i32, %arg1: i32, %arg2: i32) -> (i32, i32) {
    %c0_i32 = arith.constant 0 : i32
    return %arg0, %arg1 : i32, i32
  }
}

module attributes {stable_mosaic.version = 11 : i64} {
  func.func @_mm_kernel(%arg0: i32, %arg1: i32, %arg2: i32, %arg3: memref<8x512xbf16, #tpu.memory_space<vmem>>, %arg4: memref<512x256xbf16, #tpu.memory_space<vmem>>, %arg5: memref<1x256xf32, #tpu.memory_space<vmem>>, %arg6: memref<1x256xf32, #tpu.memory_space<vmem>>, %arg7: memref<8x256xbf16, #tpu.memory_space<vmem>>, %arg8: memref<8x256xf32, #tpu.memory_space<vmem>>) attributes {dimension_semantics = [#tpu.dimension_semantics<parallel>, #tpu.dimension_semantics<parallel>, #tpu.dimension_semantics<arbitrary>], iteration_bounds = array<i64: 1, 1, 1>, scalar_prefetch = 0 : i64, scratch_operands = 1 : i64, tpu.core_type = #tpu.core_type<tc>, window_params = [{transform_indices = @transform_0, window_bounds = array<i64: 8, 512>}, {transform_indices = @transform_1, window_bounds = array<i64: 512, 256>}, {transform_indices = @transform_2, window_bounds = array<i64: 1, 256>}, {transform_indices = @transform_3, window_bounds = array<i64: 1, 256>}, {transform_indices = @transform_4, window_bounds = array<i64: 8, 256>}]} {
    %c0_i32 = arith.constant 0 : i32
    %0 = arith.cmpi eq, %arg2, %c0_i32 : i32
    %1 = arith.extui %0 : i1 to i32
    %c0_i32_0 = arith.constant 0 : i32
    %2 = arith.cmpi ne, %1, %c0_i32_0 : i32
    scf.if %2 {
      %cst_10 = arith.constant 0.000000e+00 : f32
      %12 = vector.broadcast %cst_10 : f32 to vector<8x256xf32>
      %c0_11 = arith.constant 0 : index
      %c0_12 = arith.constant 0 : index
      %13 = vector.load %arg8[%c0_11, %c0_12] : memref<8x256xf32, #tpu.memory_space<vmem>>, vector<8x256xf32>
      tpu.vector_store %arg8[%c0_11, %c0_12], %12 {strides = array<i32>} : memref<8x256xf32, #tpu.memory_space<vmem>>, vector<8x256xf32>,
    } else {
    }
    %c0 = arith.constant 0 : index
    %c0_1 = arith.constant 0 : index
    %3 = vector.load %arg8[%c0, %c0_1] : memref<8x256xf32, #tpu.memory_space<vmem>>, vector<8x256xf32>
    %c0_2 = arith.constant 0 : index
    %c0_3 = arith.constant 0 : index
    %4 = vector.load %arg3[%c0_2, %c0_3] : memref<8x512xbf16, #tpu.memory_space<vmem>>, vector<8x512xbf16>
    %c0_4 = arith.constant 0 : index
    %c0_5 = arith.constant 0 : index
    %5 = vector.load %arg4[%c0_4, %c0_5] : memref<512x256xbf16, #tpu.memory_space<vmem>>, vector<512x256xbf16>
    %cst = arith.constant dense<0.000000e+00> : vector<8x256xf32>
    %6 = tpu.matmul %4, %5, %cst {dimension_numbers = #tpu.dot_dimension_numbers<[1], [0], [0], [1], [0, 0, 1, 1], [], []>} : vector<8x512xbf16>, vector<512x256xbf16>, vector<8x256xf32> -> vector<8x256xf32>
    %7 = arith.addf %3, %6 : vector<8x256xf32>
    %c0_6 = arith.constant 0 : index
    %c0_7 = arith.constant 0 : index
    %8 = vector.load %arg8[%c0_6, %c0_7] : memref<8x256xf32, #tpu.memory_space<vmem>>, vector<8x256xf32>
    tpu.vector_store %arg8[%c0_6, %c0_7], %7 {strides = array<i32>} : memref<8x256xf32, #tpu.memory_space<vmem>>, vector<8x256xf32>,
    %c0_i32_8 = arith.constant 0 : i32
    %9 = arith.cmpi eq, %arg2, %c0_i32_8 : i32
    %10 = arith.extui %9 : i1 to i32
    %c0_i32_9 = arith.constant 0 : i32
    %11 = arith.cmpi ne, %10, %c0_i32_9 : i32
    scf.if %11 {
      %c0_10 = arith.constant 0 : index
      %c0_11 = arith.constant 0 : index
      %12 = vector.load %arg8[%c0_10, %c0_11] : memref<8x256xf32, #tpu.memory_space<vmem>>, vector<8x256xf32>
      %c0_12 = arith.constant 0 : index
      %c0_13 = arith.constant 0 : index
      %13 = vector.load %arg5[%c0_12, %c0_13] : memref<1x256xf32, #tpu.memory_space<vmem>>, vector<1x256xf32>
      %c0_14 = arith.constant 0 : index
      %c0_15 = arith.constant 0 : index
      %14 = vector.load %arg6[%c0_14, %c0_15] : memref<1x256xf32, #tpu.memory_space<vmem>>, vector<1x256xf32>
      %15 = vector.broadcast %13 : vector<1x256xf32> to vector<8x256xf32>
      %16 = arith.mulf %12, %15 : vector<8x256xf32>
      %17 = vector.broadcast %14 : vector<1x256xf32> to vector<8x256xf32>
      %18 = arith.addf %16, %17 : vector<8x256xf32>
      %cst_16 = arith.constant 0.000000e+00 : f32
      %19 = vector.broadcast %cst_16 : f32 to vector<8x256xf32>
      %20 = arith.maximumf %18, %19 : vector<8x256xf32>
      %21 = arith.truncf %20 : vector<8x256xf32> to vector<8x256xbf16>
      %c0_17 = arith.constant 0 : index
      %c0_18 = arith.constant 0 : index
      %22 = vector.load %arg7[%c0_17, %c0_18] : memref<8x256xbf16, #tpu.memory_space<vmem>>, vector<8x256xbf16>
      tpu.vector_store %arg7[%c0_17, %c0_18], %21 {strides = array<i32>} : memref<8x256xbf16, #tpu.memory_space<vmem>>, vector<8x256xbf16>,
    } else {
    }
    return
  }
  func.func @transform_0(%arg0: i32, %arg1: i32, %arg2: i32) -> (i32, i32) {
    %c0_i32 = arith.constant 0 : i32
    return %arg0, %arg2 : i32, i32
  }
  func.func @transform_1(%arg0: i32, %arg1: i32, %arg2: i32) -> (i32, i32) {
    %c0_i32 = arith.constant 0 : i32
    return %arg2, %arg1 : i32, i32
  }
  func.func @transform_2(%arg0: i32, %arg1: i32, %arg2: i32) -> (i32, i32) {
    %c0_i32 = arith.constant 0 : i32
    %c0_i32_0 = arith.constant 0 : i32
    return %c0_i32, %arg1 : i32, i32
  }
  func.func @transform_3(%arg0: i32, %arg1: i32, %arg2: i32) -> (i32, i32) {
    %c0_i32 = arith.constant 0 : i32
    %c0_i32_0 = arith.constant 0 : i32
    return %c0_i32, %arg1 : i32, i32
  }
  func.func @transform_4(%arg0: i32, %arg1: i32, %arg2: i32) -> (i32, i32) {
    %c0_i32 = arith.constant 0 : i32
    return %arg0, %arg1 : i32, i32
  }
}

module attributes {stable_mosaic.version = 11 : i64} {
  func.func @_mm_kernel(%arg0: i32, %arg1: i32, %arg2: i32, %arg3: memref<32x256xbf16, #tpu.memory_space<vmem>>, %arg4: memref<256x64xbf16, #tpu.memory_space<vmem>>, %arg5: memref<1x64xf32, #tpu.memory_space<vmem>>, %arg6: memref<1x64xf32, #tpu.memory_space<vmem>>, %arg7: memref<32x64xbf16, #tpu.memory_space<vmem>>, %arg8: memref<32x64xf32, #tpu.memory_space<vmem>>) attributes {dimension_semantics = [#tpu.dimension_semantics<parallel>, #tpu.dimension_semantics<parallel>, #tpu.dimension_semantics<arbitrary>], iteration_bounds = array<i64: 1, 1, 1>, scalar_prefetch = 0 : i64, scratch_operands = 1 : i64, tpu.core_type = #tpu.core_type<tc>, window_params = [{transform_indices = @transform_0, window_bounds = array<i64: 32, 256>}, {transform_indices = @transform_1, window_bounds = array<i64: 256, 64>}, {transform_indices = @transform_2, window_bounds = array<i64: 1, 64>}, {transform_indices = @transform_3, window_bounds = array<i64: 1, 64>}, {transform_indices = @transform_4, window_bounds = array<i64: 32, 64>}]} {
    %c0_i32 = arith.constant 0 : i32
    %0 = arith.cmpi eq, %arg2, %c0_i32 : i32
    %1 = arith.extui %0 : i1 to i32
    %c0_i32_0 = arith.constant 0 : i32
    %2 = arith.cmpi ne, %1, %c0_i32_0 : i32
    scf.if %2 {
      %cst_10 = arith.constant 0.000000e+00 : f32
      %12 = vector.broadcast %cst_10 : f32 to vector<32x64xf32>
      %c0_11 = arith.constant 0 : index
      %c0_12 = arith.constant 0 : index
      %13 = vector.load %arg8[%c0_11, %c0_12] : memref<32x64xf32, #tpu.memory_space<vmem>>, vector<32x64xf32>
      tpu.vector_store %arg8[%c0_11, %c0_12], %12 {strides = array<i32>} : memref<32x64xf32, #tpu.memory_space<vmem>>, vector<32x64xf32>,
    } else {
    }
    %c0 = arith.constant 0 : index
    %c0_1 = arith.constant 0 : index
    %3 = vector.load %arg8[%c0, %c0_1] : memref<32x64xf32, #tpu.memory_space<vmem>>, vector<32x64xf32>
    %c0_2 = arith.constant 0 : index
    %c0_3 = arith.constant 0 : index
    %4 = vector.load %arg3[%c0_2, %c0_3] : memref<32x256xbf16, #tpu.memory_space<vmem>>, vector<32x256xbf16>
    %c0_4 = arith.constant 0 : index
    %c0_5 = arith.constant 0 : index
    %5 = vector.load %arg4[%c0_4, %c0_5] : memref<256x64xbf16, #tpu.memory_space<vmem>>, vector<256x64xbf16>
    %cst = arith.constant dense<0.000000e+00> : vector<32x64xf32>
    %6 = tpu.matmul %4, %5, %cst {dimension_numbers = #tpu.dot_dimension_numbers<[1], [0], [0], [1], [0, 0, 1, 1], [], []>} : vector<32x256xbf16>, vector<256x64xbf16>, vector<32x64xf32> -> vector<32x64xf32>
    %7 = arith.addf %3, %6 : vector<32x64xf32>
    %c0_6 = arith.constant 0 : index
    %c0_7 = arith.constant 0 : index
    %8 = vector.load %arg8[%c0_6, %c0_7] : memref<32x64xf32, #tpu.memory_space<vmem>>, vector<32x64xf32>
    tpu.vector_store %arg8[%c0_6, %c0_7], %7 {strides = array<i32>} : memref<32x64xf32, #tpu.memory_space<vmem>>, vector<32x64xf32>,
    %c0_i32_8 = arith.constant 0 : i32
    %9 = arith.cmpi eq, %arg2, %c0_i32_8 : i32
    %10 = arith.extui %9 : i1 to i32
    %c0_i32_9 = arith.constant 0 : i32
    %11 = arith.cmpi ne, %10, %c0_i32_9 : i32
    scf.if %11 {
      %c0_10 = arith.constant 0 : index
      %c0_11 = arith.constant 0 : index
      %12 = vector.load %arg8[%c0_10, %c0_11] : memref<32x64xf32, #tpu.memory_space<vmem>>, vector<32x64xf32>
      %c0_12 = arith.constant 0 : index
      %c0_13 = arith.constant 0 : index
      %13 = vector.load %arg5[%c0_12, %c0_13] : memref<1x64xf32, #tpu.memory_space<vmem>>, vector<1x64xf32>
      %c0_14 = arith.constant 0 : index
      %c0_15 = arith.constant 0 : index
      %14 = vector.load %arg6[%c0_14, %c0_15] : memref<1x64xf32, #tpu.memory_space<vmem>>, vector<1x64xf32>
      %15 = vector.broadcast %13 : vector<1x64xf32> to vector<32x64xf32>
      %16 = arith.mulf %12, %15 : vector<32x64xf32>
      %17 = vector.broadcast %14 : vector<1x64xf32> to vector<32x64xf32>
      %18 = arith.addf %16, %17 : vector<32x64xf32>
      %cst_16 = arith.constant 0.000000e+00 : f32
      %19 = vector.broadcast %cst_16 : f32 to vector<32x64xf32>
      %20 = arith.maximumf %18, %19 : vector<32x64xf32>
      %21 = arith.truncf %20 : vector<32x64xf32> to vector<32x64xbf16>
      %c0_17 = arith.constant 0 : index
      %c0_18 = arith.constant 0 : index
      %22 = vector.load %arg7[%c0_17, %c0_18] : memref<32x64xbf16, #tpu.memory_space<vmem>>, vector<32x64xbf16>
      tpu.vector_store %arg7[%c0_17, %c0_18], %21 {strides = array<i32>} : memref<32x64xbf16, #tpu.memory_space<vmem>>, vector<32x64xbf16>,
    } else {
    }
    return
  }
  func.func @transform_0(%arg0: i32, %arg1: i32, %arg2: i32) -> (i32, i32) {
    %c0_i32 = arith.constant 0 : i32
    return %arg0, %arg2 : i32, i32
  }
  func.func @transform_1(%arg0: i32, %arg1: i32, %arg2: i32) -> (i32, i32) {
    %c0_i32 = arith.constant 0 : i32
    return %arg2, %arg1 : i32, i32
  }
  func.func @transform_2(%arg0: i32, %arg1: i32, %arg2: i32) -> (i32, i32) {
    %c0_i32 = arith.constant 0 : i32
    %c0_i32_0 = arith.constant 0 : i32
    return %c0_i32, %arg1 : i32, i32
  }
  func.func @transform_3(%arg0: i32, %arg1: i32, %arg2: i32) -> (i32, i32) {
    %c0_i32 = arith.constant 0 : i32
    %c0_i32_0 = arith.constant 0 : i32
    return %c0_i32, %arg1 : i32, i32
  }
  func.func @transform_4(%arg0: i32, %arg1: i32, %arg2: i32) -> (i32, i32) {
    %c0_i32 = arith.constant 0 : i32
    return %arg0, %arg1 : i32, i32
  }
}

module attributes {stable_mosaic.version = 11 : i64} {
  func.func @_mm_kernel(%arg0: i32, %arg1: i32, %arg2: i32, %arg3: memref<128x48xbf16, #tpu.memory_space<vmem>>, %arg4: memref<48x16xbf16, #tpu.memory_space<vmem>>, %arg5: memref<1x16xf32, #tpu.memory_space<vmem>>, %arg6: memref<1x16xf32, #tpu.memory_space<vmem>>, %arg7: memref<128x16xbf16, #tpu.memory_space<vmem>>, %arg8: memref<128x16xf32, #tpu.memory_space<vmem>>) attributes {dimension_semantics = [#tpu.dimension_semantics<parallel>, #tpu.dimension_semantics<parallel>, #tpu.dimension_semantics<arbitrary>], iteration_bounds = array<i64: 1, 1, 1>, scalar_prefetch = 0 : i64, scratch_operands = 1 : i64, tpu.core_type = #tpu.core_type<tc>, window_params = [{transform_indices = @transform_0, window_bounds = array<i64: 128, 48>}, {transform_indices = @transform_1, window_bounds = array<i64: 48, 16>}, {transform_indices = @transform_2, window_bounds = array<i64: 1, 16>}, {transform_indices = @transform_3, window_bounds = array<i64: 1, 16>}, {transform_indices = @transform_4, window_bounds = array<i64: 128, 16>}]} {
    %c0_i32 = arith.constant 0 : i32
    %0 = arith.cmpi eq, %arg2, %c0_i32 : i32
    %1 = arith.extui %0 : i1 to i32
    %c0_i32_0 = arith.constant 0 : i32
    %2 = arith.cmpi ne, %1, %c0_i32_0 : i32
    scf.if %2 {
      %cst_10 = arith.constant 0.000000e+00 : f32
      %12 = vector.broadcast %cst_10 : f32 to vector<128x16xf32>
      %c0_11 = arith.constant 0 : index
      %c0_12 = arith.constant 0 : index
      %13 = vector.load %arg8[%c0_11, %c0_12] : memref<128x16xf32, #tpu.memory_space<vmem>>, vector<128x16xf32>
      tpu.vector_store %arg8[%c0_11, %c0_12], %12 {strides = array<i32>} : memref<128x16xf32, #tpu.memory_space<vmem>>, vector<128x16xf32>,
    } else {
    }
    %c0 = arith.constant 0 : index
    %c0_1 = arith.constant 0 : index
    %3 = vector.load %arg8[%c0, %c0_1] : memref<128x16xf32, #tpu.memory_space<vmem>>, vector<128x16xf32>
    %c0_2 = arith.constant 0 : index
    %c0_3 = arith.constant 0 : index
    %4 = vector.load %arg3[%c0_2, %c0_3] : memref<128x48xbf16, #tpu.memory_space<vmem>>, vector<128x48xbf16>
    %c0_4 = arith.constant 0 : index
    %c0_5 = arith.constant 0 : index
    %5 = vector.load %arg4[%c0_4, %c0_5] : memref<48x16xbf16, #tpu.memory_space<vmem>>, vector<48x16xbf16>
    %cst = arith.constant dense<0.000000e+00> : vector<128x16xf32>
    %6 = tpu.matmul %4, %5, %cst {dimension_numbers = #tpu.dot_dimension_numbers<[1], [0], [0], [1], [0, 0, 1, 1], [], []>} : vector<128x48xbf16>, vector<48x16xbf16>, vector<128x16xf32> -> vector<128x16xf32>
    %7 = arith.addf %3, %6 : vector<128x16xf32>
    %c0_6 = arith.constant 0 : index
    %c0_7 = arith.constant 0 : index
    %8 = vector.load %arg8[%c0_6, %c0_7] : memref<128x16xf32, #tpu.memory_space<vmem>>, vector<128x16xf32>
    tpu.vector_store %arg8[%c0_6, %c0_7], %7 {strides = array<i32>} : memref<128x16xf32, #tpu.memory_space<vmem>>, vector<128x16xf32>,
    %c0_i32_8 = arith.constant 0 : i32
    %9 = arith.cmpi eq, %arg2, %c0_i32_8 : i32
    %10 = arith.extui %9 : i1 to i32
    %c0_i32_9 = arith.constant 0 : i32
    %11 = arith.cmpi ne, %10, %c0_i32_9 : i32
    scf.if %11 {
      %c0_10 = arith.constant 0 : index
      %c0_11 = arith.constant 0 : index
      %12 = vector.load %arg8[%c0_10, %c0_11] : memref<128x16xf32, #tpu.memory_space<vmem>>, vector<128x16xf32>
      %c0_12 = arith.constant 0 : index
      %c0_13 = arith.constant 0 : index
      %13 = vector.load %arg5[%c0_12, %c0_13] : memref<1x16xf32, #tpu.memory_space<vmem>>, vector<1x16xf32>
      %c0_14 = arith.constant 0 : index
      %c0_15 = arith.constant 0 : index
      %14 = vector.load %arg6[%c0_14, %c0_15] : memref<1x16xf32, #tpu.memory_space<vmem>>, vector<1x16xf32>
      %15 = vector.broadcast %13 : vector<1x16xf32> to vector<128x16xf32>
      %16 = arith.mulf %12, %15 : vector<128x16xf32>
      %17 = vector.broadcast %14 : vector<1x16xf32> to vector<128x16xf32>
      %18 = arith.addf %16, %17 : vector<128x16xf32>
      %cst_16 = arith.constant 0.000000e+00 : f32
      %19 = vector.broadcast %cst_16 : f32 to vector<128x16xf32>
      %20 = arith.maximumf %18, %19 : vector<128x16xf32>
      %21 = arith.truncf %20 : vector<128x16xf32> to vector<128x16xbf16>
      %c0_17 = arith.constant 0 : index
      %c0_18 = arith.constant 0 : index
      %22 = vector.load %arg7[%c0_17, %c0_18] : memref<128x16xbf16, #tpu.memory_space<vmem>>, vector<128x16xbf16>
      tpu.vector_store %arg7[%c0_17, %c0_18], %21 {strides = array<i32>} : memref<128x16xbf16, #tpu.memory_space<vmem>>, vector<128x16xbf16>,
    } else {
    }
    return
  }
  func.func @transform_0(%arg0: i32, %arg1: i32, %arg2: i32) -> (i32, i32) {
    %c0_i32 = arith.constant 0 : i32
    return %arg0, %arg2 : i32, i32
  }
  func.func @transform_1(%arg0: i32, %arg1: i32, %arg2: i32) -> (i32, i32) {
    %c0_i32 = arith.constant 0 : i32
    return %arg2, %arg1 : i32, i32
  }
  func.func @transform_2(%arg0: i32, %arg1: i32, %arg2: i32) -> (i32, i32) {
    %c0_i32 = arith.constant 0 : i32
    %c0_i32_0 = arith.constant 0 : i32
    return %c0_i32, %arg1 : i32, i32
  }
  func.func @transform_3(%arg0: i32, %arg1: i32, %arg2: i32) -> (i32, i32) {
    %c0_i32 = arith.constant 0 : i32
    %c0_i32_0 = arith.constant 0 : i32
    return %c0_i32, %arg1 : i32, i32
  }
  func.func @transform_4(%arg0: i32, %arg1: i32, %arg2: i32) -> (i32, i32) {
    %c0_i32 = arith.constant 0 : i32
    return %arg0, %arg1 : i32, i32
  }
}

module attributes {stable_mosaic.version = 11 : i64} {
  func.func @_mm_res_kernel(%arg0: i32, %arg1: i32, %arg2: i32, %arg3: memref<128x48xbf16, #tpu.memory_space<vmem>>, %arg4: memref<48x16xbf16, #tpu.memory_space<vmem>>, %arg5: memref<1x16xf32, #tpu.memory_space<vmem>>, %arg6: memref<1x16xf32, #tpu.memory_space<vmem>>, %arg7: memref<128x16xbf16, #tpu.memory_space<vmem>>, %arg8: memref<128x16xbf16, #tpu.memory_space<vmem>>, %arg9: memref<128x16xf32, #tpu.memory_space<vmem>>) attributes {dimension_semantics = [#tpu.dimension_semantics<parallel>, #tpu.dimension_semantics<parallel>, #tpu.dimension_semantics<arbitrary>], iteration_bounds = array<i64: 1, 1, 1>, scalar_prefetch = 0 : i64, scratch_operands = 1 : i64, tpu.core_type = #tpu.core_type<tc>, window_params = [{transform_indices = @transform_0, window_bounds = array<i64: 128, 48>}, {transform_indices = @transform_1, window_bounds = array<i64: 48, 16>}, {transform_indices = @transform_2, window_bounds = array<i64: 1, 16>}, {transform_indices = @transform_3, window_bounds = array<i64: 1, 16>}, {transform_indices = @transform_4, window_bounds = array<i64: 128, 16>}, {transform_indices = @transform_5, window_bounds = array<i64: 128, 16>}]} {
    %c0_i32 = arith.constant 0 : i32
    %0 = arith.cmpi eq, %arg2, %c0_i32 : i32
    %1 = arith.extui %0 : i1 to i32
    %c0_i32_0 = arith.constant 0 : i32
    %2 = arith.cmpi ne, %1, %c0_i32_0 : i32
    scf.if %2 {
      %cst_10 = arith.constant 0.000000e+00 : f32
      %12 = vector.broadcast %cst_10 : f32 to vector<128x16xf32>
      %c0_11 = arith.constant 0 : index
      %c0_12 = arith.constant 0 : index
      %13 = vector.load %arg9[%c0_11, %c0_12] : memref<128x16xf32, #tpu.memory_space<vmem>>, vector<128x16xf32>
      tpu.vector_store %arg9[%c0_11, %c0_12], %12 {strides = array<i32>} : memref<128x16xf32, #tpu.memory_space<vmem>>, vector<128x16xf32>,
    } else {
    }
    %c0 = arith.constant 0 : index
    %c0_1 = arith.constant 0 : index
    %3 = vector.load %arg9[%c0, %c0_1] : memref<128x16xf32, #tpu.memory_space<vmem>>, vector<128x16xf32>
    %c0_2 = arith.constant 0 : index
    %c0_3 = arith.constant 0 : index
    %4 = vector.load %arg3[%c0_2, %c0_3] : memref<128x48xbf16, #tpu.memory_space<vmem>>, vector<128x48xbf16>
    %c0_4 = arith.constant 0 : index
    %c0_5 = arith.constant 0 : index
    %5 = vector.load %arg4[%c0_4, %c0_5] : memref<48x16xbf16, #tpu.memory_space<vmem>>, vector<48x16xbf16>
    %cst = arith.constant dense<0.000000e+00> : vector<128x16xf32>
    %6 = tpu.matmul %4, %5, %cst {dimension_numbers = #tpu.dot_dimension_numbers<[1], [0], [0], [1], [0, 0, 1, 1], [], []>} : vector<128x48xbf16>, vector<48x16xbf16>, vector<128x16xf32> -> vector<128x16xf32>
    %7 = arith.addf %3, %6 : vector<128x16xf32>
    %c0_6 = arith.constant 0 : index
    %c0_7 = arith.constant 0 : index
    %8 = vector.load %arg9[%c0_6, %c0_7] : memref<128x16xf32, #tpu.memory_space<vmem>>, vector<128x16xf32>
    tpu.vector_store %arg9[%c0_6, %c0_7], %7 {strides = array<i32>} : memref<128x16xf32, #tpu.memory_space<vmem>>, vector<128x16xf32>,
    %c0_i32_8 = arith.constant 0 : i32
    %9 = arith.cmpi eq, %arg2, %c0_i32_8 : i32
    %10 = arith.extui %9 : i1 to i32
    %c0_i32_9 = arith.constant 0 : i32
    %11 = arith.cmpi ne, %10, %c0_i32_9 : i32
    scf.if %11 {
      %c0_10 = arith.constant 0 : index
      %c0_11 = arith.constant 0 : index
      %12 = vector.load %arg9[%c0_10, %c0_11] : memref<128x16xf32, #tpu.memory_space<vmem>>, vector<128x16xf32>
      %c0_12 = arith.constant 0 : index
      %c0_13 = arith.constant 0 : index
      %13 = vector.load %arg5[%c0_12, %c0_13] : memref<1x16xf32, #tpu.memory_space<vmem>>, vector<1x16xf32>
      %c0_14 = arith.constant 0 : index
      %c0_15 = arith.constant 0 : index
      %14 = vector.load %arg6[%c0_14, %c0_15] : memref<1x16xf32, #tpu.memory_space<vmem>>, vector<1x16xf32>
      %c0_16 = arith.constant 0 : index
      %c0_17 = arith.constant 0 : index
      %15 = vector.load %arg7[%c0_16, %c0_17] : memref<128x16xbf16, #tpu.memory_space<vmem>>, vector<128x16xbf16>
      %16 = vector.broadcast %13 : vector<1x16xf32> to vector<128x16xf32>
      %17 = arith.mulf %12, %16 : vector<128x16xf32>
      %18 = vector.broadcast %14 : vector<1x16xf32> to vector<128x16xf32>
      %19 = arith.addf %17, %18 : vector<128x16xf32>
      %20 = arith.extf %15 : vector<128x16xbf16> to vector<128x16xf32>
      %21 = arith.addf %19, %20 : vector<128x16xf32>
      %cst_18 = arith.constant 0.000000e+00 : f32
      %22 = vector.broadcast %cst_18 : f32 to vector<128x16xf32>
      %23 = arith.maximumf %21, %22 : vector<128x16xf32>
      %24 = arith.truncf %23 : vector<128x16xf32> to vector<128x16xbf16>
      %c0_19 = arith.constant 0 : index
      %c0_20 = arith.constant 0 : index
      %25 = vector.load %arg8[%c0_19, %c0_20] : memref<128x16xbf16, #tpu.memory_space<vmem>>, vector<128x16xbf16>
      tpu.vector_store %arg8[%c0_19, %c0_20], %24 {strides = array<i32>} : memref<128x16xbf16, #tpu.memory_space<vmem>>, vector<128x16xbf16>,
    } else {
    }
    return
  }
  func.func @transform_0(%arg0: i32, %arg1: i32, %arg2: i32) -> (i32, i32) {
    %c0_i32 = arith.constant 0 : i32
    return %arg0, %arg2 : i32, i32
  }
  func.func @transform_1(%arg0: i32, %arg1: i32, %arg2: i32) -> (i32, i32) {
    %c0_i32 = arith.constant 0 : i32
    return %arg2, %arg1 : i32, i32
  }
  func.func @transform_2(%arg0: i32, %arg1: i32, %arg2: i32) -> (i32, i32) {
    %c0_i32 = arith.constant 0 : i32
    %c0_i32_0 = arith.constant 0 : i32
    return %c0_i32, %arg1 : i32, i32
  }
  func.func @transform_3(%arg0: i32, %arg1: i32, %arg2: i32) -> (i32, i32) {
    %c0_i32 = arith.constant 0 : i32
    %c0_i32_0 = arith.constant 0 : i32
    return %c0_i32, %arg1 : i32, i32
  }
  func.func @transform_4(%arg0: i32, %arg1: i32, %arg2: i32) -> (i32, i32) {
    %c0_i32 = arith.constant 0 : i32
    return %arg0, %arg1 : i32, i32
  }
  func.func @transform_5(%arg0: i32, %arg1: i32, %arg2: i32) -> (i32, i32) {
    %c0_i32 = arith.constant 0 : i32
    return %arg0, %arg1 : i32, i32
  }
}

module attributes {stable_mosaic.version = 11 : i64} {
  func.func @_mm_kernel(%arg0: i32, %arg1: i32, %arg2: i32, %arg3: memref<128x16xbf16, #tpu.memory_space<vmem>>, %arg4: memref<16x80xbf16, #tpu.memory_space<vmem>>, %arg5: memref<1x80xf32, #tpu.memory_space<vmem>>, %arg6: memref<1x80xf32, #tpu.memory_space<vmem>>, %arg7: memref<128x80xf32, #tpu.memory_space<vmem>>, %arg8: memref<128x80xf32, #tpu.memory_space<vmem>>) attributes {dimension_semantics = [#tpu.dimension_semantics<parallel>, #tpu.dimension_semantics<parallel>, #tpu.dimension_semantics<arbitrary>], iteration_bounds = array<i64: 1, 1, 1>, scalar_prefetch = 0 : i64, scratch_operands = 1 : i64, tpu.core_type = #tpu.core_type<tc>, window_params = [{transform_indices = @transform_0, window_bounds = array<i64: 128, 16>}, {transform_indices = @transform_1, window_bounds = array<i64: 16, 80>}, {transform_indices = @transform_2, window_bounds = array<i64: 1, 80>}, {transform_indices = @transform_3, window_bounds = array<i64: 1, 80>}, {transform_indices = @transform_4, window_bounds = array<i64: 128, 80>}]} {
    %c0_i32 = arith.constant 0 : i32
    %0 = arith.cmpi eq, %arg2, %c0_i32 : i32
    %1 = arith.extui %0 : i1 to i32
    %c0_i32_0 = arith.constant 0 : i32
    %2 = arith.cmpi ne, %1, %c0_i32_0 : i32
    scf.if %2 {
      %cst_10 = arith.constant 0.000000e+00 : f32
      %12 = vector.broadcast %cst_10 : f32 to vector<128x80xf32>
      %c0_11 = arith.constant 0 : index
      %c0_12 = arith.constant 0 : index
      %13 = vector.load %arg8[%c0_11, %c0_12] : memref<128x80xf32, #tpu.memory_space<vmem>>, vector<128x80xf32>
      tpu.vector_store %arg8[%c0_11, %c0_12], %12 {strides = array<i32>} : memref<128x80xf32, #tpu.memory_space<vmem>>, vector<128x80xf32>,
    } else {
    }
    %c0 = arith.constant 0 : index
    %c0_1 = arith.constant 0 : index
    %3 = vector.load %arg8[%c0, %c0_1] : memref<128x80xf32, #tpu.memory_space<vmem>>, vector<128x80xf32>
    %c0_2 = arith.constant 0 : index
    %c0_3 = arith.constant 0 : index
    %4 = vector.load %arg3[%c0_2, %c0_3] : memref<128x16xbf16, #tpu.memory_space<vmem>>, vector<128x16xbf16>
    %c0_4 = arith.constant 0 : index
    %c0_5 = arith.constant 0 : index
    %5 = vector.load %arg4[%c0_4, %c0_5] : memref<16x80xbf16, #tpu.memory_space<vmem>>, vector<16x80xbf16>
    %cst = arith.constant dense<0.000000e+00> : vector<128x80xf32>
    %6 = tpu.matmul %4, %5, %cst {dimension_numbers = #tpu.dot_dimension_numbers<[1], [0], [0], [1], [0, 0, 1, 1], [], []>} : vector<128x16xbf16>, vector<16x80xbf16>, vector<128x80xf32> -> vector<128x80xf32>
    %7 = arith.addf %3, %6 : vector<128x80xf32>
    %c0_6 = arith.constant 0 : index
    %c0_7 = arith.constant 0 : index
    %8 = vector.load %arg8[%c0_6, %c0_7] : memref<128x80xf32, #tpu.memory_space<vmem>>, vector<128x80xf32>
    tpu.vector_store %arg8[%c0_6, %c0_7], %7 {strides = array<i32>} : memref<128x80xf32, #tpu.memory_space<vmem>>, vector<128x80xf32>,
    %c0_i32_8 = arith.constant 0 : i32
    %9 = arith.cmpi eq, %arg2, %c0_i32_8 : i32
    %10 = arith.extui %9 : i1 to i32
    %c0_i32_9 = arith.constant 0 : i32
    %11 = arith.cmpi ne, %10, %c0_i32_9 : i32
    scf.if %11 {
      %c0_10 = arith.constant 0 : index
      %c0_11 = arith.constant 0 : index
      %12 = vector.load %arg8[%c0_10, %c0_11] : memref<128x80xf32, #tpu.memory_space<vmem>>, vector<128x80xf32>
      %c0_12 = arith.constant 0 : index
      %c0_13 = arith.constant 0 : index
      %13 = vector.load %arg5[%c0_12, %c0_13] : memref<1x80xf32, #tpu.memory_space<vmem>>, vector<1x80xf32>
      %c0_14 = arith.constant 0 : index
      %c0_15 = arith.constant 0 : index
      %14 = vector.load %arg6[%c0_14, %c0_15] : memref<1x80xf32, #tpu.memory_space<vmem>>, vector<1x80xf32>
      %15 = vector.broadcast %13 : vector<1x80xf32> to vector<128x80xf32>
      %16 = arith.mulf %12, %15 : vector<128x80xf32>
      %17 = vector.broadcast %14 : vector<1x80xf32> to vector<128x80xf32>
      %18 = arith.addf %16, %17 : vector<128x80xf32>
      %c0_16 = arith.constant 0 : index
      %c0_17 = arith.constant 0 : index
      %19 = vector.load %arg7[%c0_16, %c0_17] : memref<128x80xf32, #tpu.memory_space<vmem>>, vector<128x80xf32>
      tpu.vector_store %arg7[%c0_16, %c0_17], %18 {strides = array<i32>} : memref<128x80xf32, #tpu.memory_space<vmem>>, vector<128x80xf32>,
    } else {
    }
    return
  }
  func.func @transform_0(%arg0: i32, %arg1: i32, %arg2: i32) -> (i32, i32) {
    %c0_i32 = arith.constant 0 : i32
    return %arg0, %arg2 : i32, i32
  }
  func.func @transform_1(%arg0: i32, %arg1: i32, %arg2: i32) -> (i32, i32) {
    %c0_i32 = arith.constant 0 : i32
    return %arg2, %arg1 : i32, i32
  }
  func.func @transform_2(%arg0: i32, %arg1: i32, %arg2: i32) -> (i32, i32) {
    %c0_i32 = arith.constant 0 : i32
    %c0_i32_0 = arith.constant 0 : i32
    return %c0_i32, %arg1 : i32, i32
  }
  func.func @transform_3(%arg0: i32, %arg1: i32, %arg2: i32) -> (i32, i32) {
    %c0_i32 = arith.constant 0 : i32
    %c0_i32_0 = arith.constant 0 : i32
    return %c0_i32, %arg1 : i32, i32
  }
  func.func @transform_4(%arg0: i32, %arg1: i32, %arg2: i32) -> (i32, i32) {
    %c0_i32 = arith.constant 0 : i32
    return %arg0, %arg1 : i32, i32
  }
}

</mosaic_0001>

<bundles_post_ra>
// kernel: erfnet_forward.77
= control target key start
LH: loop header
LB: loop body
LE: loop exit
PB: predicated region body
PF: predicated region fallthrough
CT: control target
= control target key end

     0   :  { %vm151_vm0 = vcmask 1044480   ;;  %vm152_vm1 = vcmask 1045504   ;;  %vm126_vm2 = vcmask 220160   ;;  %v552_v1 = vmov 65535   ;;  %s755_s1 = inlined_call_operand.vmem [shape: bf16[27,13], index: 1, kind: input, shape index: {}]   ;;  %s756_s0 = inlined_call_operand.vmem [shape: bf16[128,27], index: 0, kind: input, shape index: {}]   ;;  %s757_s2 = inlined_call_operand.vmem [shape: f32[1,13], index: 2, kind: input, shape index: {}]   ;;  %s758_s3 = inlined_call_operand.vmem [shape: f32[1,13], index: 3, kind: input, shape index: {}]   ;;  %s759_s4 = inlined_call_operand.vmem [shape: bf16[128,13], index: 4, kind: output, shape index: {}]  }
   0x1   :  { %v542_v0 = vld [vmem:[%s755_s1] sm:$0xff]   ;;  %v153_v2 = vsel %vm151_vm0, 4294967295, %v552_v1  ;;  %v543_v3 = vld [vmem:[%s755_s1 + $0x8] sm:$0x3f]   ;;  %vm22_vm3 = vcmask 105472   ;;  %v553_v10 = vmov 0.0  }
   0x2   :  { %516 = vmatprep.subr.bf16.mxu0 %v542_v0  ;;  %536 = vmatprep.subr.bf16.mxu1 %v542_v0  ;;  %v154_v4 = vsel %vm152_vm1, %v153_v2, 0  ;;  %v544_v5 = vld [vmem:[%s756_s0] sm:$0xff]   ;;  %v546_v8 = vld [vmem:[%s756_s0 + $0x8] sm:$0xff]   ;;  %25 = vst.msk [vmem:[#allocation2 + $0x10] sm:$0xff] %vm22_vm3, %v553_v10  ;;  %23 = vst.msk [vmem:[#allocation2] sm:$0xff] %vm22_vm3, %v553_v10  ;;  %vm433_vm4 = vcmask 101376  }
   0x3   :  { %517 = vmatpush3.bf16.msra.mxu0 %v542_v0  ;;  %538 = vmatpush3.bf16.msra.mxu1 %v542_v0  ;;  %v156_v6 = vand.u32 %v543_v3, %v154_v4  ;;  %v545_v7 = vld [vmem:[%s756_s0 + $0x20] sm:$0xff]   ;;  %v547_v9 = vld [vmem:[%s756_s0 + $0x28] sm:$0xff]   ;;  %24 = vst.msk [vmem:[#allocation2 + $0x8] sm:$0xff] %vm22_vm3, %v553_v10  ;;  %26 = vst.msk [vmem:[#allocation2 + $0x18] sm:$0xff] %vm22_vm3, %v553_v10 }
   0x4   :  { %520 = vmatprep.mubr.msk.bf16.mxu0 %vm126_vm2, %v544_v5  ;;  %27 = vst.msk [vmem:[#allocation2 + $0x20] sm:$0xff] %vm22_vm3, %v553_v10  ;;  %28 = vst.msk [vmem:[#allocation2 + $0x28] sm:$0xff] %vm22_vm3, %v553_v10  ;;  %528 = vmatprep.mubr.msk.bf16.mxu1 %vm126_vm2, %v545_v7  ;;  %v548_v11 = vld [vmem:[%s756_s0 + $0x10] sm:$0xff]   ;;  %v550_v13 = vld [vmem:[%s756_s0 + $0x18] sm:$0xff]  }
   0x5   :  { %518 = vmatprep.subr.bf16.mxu0 %v156_v6  ;;  %537 = vmatprep.subr.bf16.mxu1 %v156_v6  ;;  %29 = vst.msk [vmem:[#allocation2 + $0x30] sm:$0xff] %vm22_vm3, %v553_v10  ;;  %30 = vst.msk [vmem:[#allocation2 + $0x38] sm:$0xff] %vm22_vm3, %v553_v10  ;;  %v549_v12 = vld [vmem:[%s756_s0 + $0x30] sm:$0xff]   ;;  %v551_v14 = vld [vmem:[%s756_s0 + $0x38] sm:$0xff]  }
   0x6   :  { %31 = vst.msk [vmem:[#allocation2 + $0x40] sm:$0xff] %vm22_vm3, %v553_v10  ;;  %32 = vst.msk [vmem:[#allocation2 + $0x48] sm:$0xff] %vm22_vm3, %v553_v10  ;;  %v644_v43 = vld [vmem:[%s757_s2] ss:$0 sm:$0xff] }
   0x7   :  { %33 = vst.msk [vmem:[#allocation2 + $0x50] sm:$0xff] %vm22_vm3, %v553_v10  ;;  %34 = vst.msk [vmem:[#allocation2 + $0x58] sm:$0xff] %vm22_vm3, %v553_v10  ;;  %519 = vmatpush3.bf16.msra.mxu0 %v156_v6  ;;  %539 = vmatpush3.bf16.msra.mxu1 %v156_v6  ;;  %v649_v48 = vld [vmem:[%s758_s3] ss:$0 sm:$0xff] }
   0x8   :  { %35 = vst.msk [vmem:[#allocation2 + $0x60] sm:$0xff] %vm22_vm3, %v553_v10  ;;  %36 = vst.msk [vmem:[#allocation2 + $0x68] sm:$0xff] %vm22_vm3, %v553_v10 }
   0x9   :  { %37 = vst.msk [vmem:[#allocation2 + $0x70] sm:$0xff] %vm22_vm3, %v553_v10  ;;  %38 = vst.msk [vmem:[#allocation2 + $0x78] sm:$0xff] %vm22_vm3, %v553_v10  ;;  %v41_v15 = vld [vmem:[#allocation2 + $0x10] sm:$0xff]  ;;  %v39_v17 = vld [vmem:[#allocation2] sm:$0xff] }
   0xa   :  { %521 = vmatmul.mubr.msk.bf16.vlgmr.msra.gmra.mrb[0].mxu0 %vm126_vm2, %v546_v8  ;;  %529 = vmatmul.mubr.msk.bf16.vlgmr.msra.gmra.mrb[0].mxu1 %vm126_vm2, %v547_v9  ;;  %v42_v21 = vld [vmem:[#allocation2 + $0x18] sm:$0xff]  ;;  %v40_v27 = vld [vmem:[#allocation2 + $0x8] sm:$0xff] }
   0xb   :  { %524 = vmatprep.mubr.msk.bf16.mxu0 %vm126_vm2, %v548_v11  ;;  %532 = vmatprep.mubr.msk.bf16.mxu1 %vm126_vm2, %v549_v12  ;;  %v43_v41 = vld [vmem:[#allocation2 + $0x20] sm:$0xff]  ;;  %v44_v53 = vld [vmem:[#allocation2 + $0x28] sm:$0xff] }
   0xc   :  { %v45_v39 = vld [vmem:[#allocation2 + $0x30] sm:$0xff]  ;;  %v46_v46 = vld [vmem:[#allocation2 + $0x38] sm:$0xff] }
   0xd   :  { %v47_v18 = vld [vmem:[#allocation2 + $0x40] sm:$0xff]  ;;  %v48_v28 = vld [vmem:[#allocation2 + $0x48] sm:$0xff] }
   0xe   :  { %v49_v16 = vld [vmem:[#allocation2 + $0x50] sm:$0xff]  ;;  %v50_v22 = vld [vmem:[#allocation2 + $0x58] sm:$0xff] }
   0xf   :  { %v51_v42 = vld [vmem:[#allocation2 + $0x60] sm:$0xff]  ;;  %v52_v54 = vld [vmem:[#allocation2 + $0x68] sm:$0xff] }
  0x10   :  { %v53_v40 = vld [vmem:[#allocation2 + $0x70] sm:$0xff]  ;;  %v54_v47 = vld [vmem:[#allocation2 + $0x78] sm:$0xff] }
  0x12   :  { %525 = vmatmul.mubr.msk.bf16.gmra.mrb[4].mxu0 %vm126_vm2, %v550_v13  ;;  %533 = vmatmul.mubr.msk.bf16.gmra.mrb[4].mxu1 %vm126_vm2, %v551_v14 }
  0xdd   :  { %v522_v19 = vpop.f32.mrb[0].mxu0  ;;  %v530_v20 = vpop.f32.mrb[0].mxu1 }
  0xde   :  { %v257_v23 = vadd.f32 %v522_v19, %v41_v15  ;;  %v265_v24 = vadd.f32 %v530_v20, %v49_v16  ;;  %v192_v25 = vpop.f32.mrb[1].mxu0  ;;  %v224_v26 = vpop.f32.mrb[1].mxu1 }
  0xdf   :  { %v255_v29 = vadd.f32 %v192_v25, %v39_v17  ;;  %v263_v30 = vadd.f32 %v224_v26, %v47_v18  ;;  %v523_v31 = vpop.f32.mrb[2].mxu0  ;;  %v531_v32 = vpop.f32.mrb[2].mxu1 }
  0xe0   :  { %274 = vst.msk [vmem:[#allocation2 + $0x10] sm:$0xff] %vm22_vm3, %v257_v23  ;;  %282 = vst.msk [vmem:[#allocation2 + $0x50] sm:$0xff] %vm22_vm3, %v265_v24  ;;  %v258_v33 = vadd.f32 %v523_v31, %v42_v21  ;;  %v266_v34 = vadd.f32 %v531_v32, %v50_v22  ;;  %v195_v35 = vpop.f32.mrb[3].mxu0  ;;  %v227_v36 = vpop.f32.mrb[3].mxu1 }
  0xe1   :  { %272 = vst.msk [vmem:[#allocation2] sm:$0xff] %vm22_vm3, %v255_v29  ;;  %280 = vst.msk [vmem:[#allocation2 + $0x40] sm:$0xff] %vm22_vm3, %v263_v30  ;;  %v256_v37 = vadd.f32 %v195_v35, %v40_v27  ;;  %v264_v38 = vadd.f32 %v227_v36, %v48_v28 }
  0xe2   :  { %275 = vst.msk [vmem:[#allocation2 + $0x18] sm:$0xff] %vm22_vm3, %v258_v33  ;;  %283 = vst.msk [vmem:[#allocation2 + $0x58] sm:$0xff] %vm22_vm3, %v266_v34 }
  0xe3   :  { %273 = vst.msk [vmem:[#allocation2 + $0x8] sm:$0xff] %vm22_vm3, %v256_v37  ;;  %281 = vst.msk [vmem:[#allocation2 + $0x48] sm:$0xff] %vm22_vm3, %v264_v38 }
  0xe5   :  { %v526_v44 = vpop.f32.mrb[4].mxu0  ;;  %v534_v45 = vpop.f32.mrb[4].mxu1 }
  0xe6   :  { %v261_v49 = vadd.f32 %v526_v44, %v45_v39  ;;  %v269_v50 = vadd.f32 %v534_v45, %v53_v40  ;;  %v208_v51 = vpop.f32.mrb[5].mxu0  ;;  %v240_v52 = vpop.f32.mrb[5].mxu1 }
  0xe7   :  { %v293_v55 = vld [vmem:[#allocation2 + $0x10] sm:$0xff]  ;;  %v259_v57 = vadd.f32 %v208_v51, %v43_v41  ;;  %v267_v58 = vadd.f32 %v240_v52, %v51_v42  ;;  %v527_v59 = vpop.f32.mrb[6].mxu0  ;;  %v535_v60 = vpop.f32.mrb[6].mxu1 }
  0xe8   :  { %v301_v56 = vld [vmem:[#allocation2 + $0x50] sm:$0xff]  ;;  %v317_v61 = vmul.f32 %v644_v43, %v293_v55  ;;  %v291_v63 = vld [vmem:[#allocation2] sm:$0xff]  ;;  %278 = vst.msk [vmem:[#allocation2 + $0x30] sm:$0xff] %vm22_vm3, %v261_v49  ;;  %286 = vst.msk [vmem:[#allocation2 + $0x70] sm:$0xff] %vm22_vm3, %v269_v50  ;;  %v262_v1 = vadd.f32 %v527_v59, %v46_v46  ;;  %v270_v2 = vadd.f32 %v535_v60, %v54_v47  ;;  %v211_v3 = vpop.f32.mrb[7].mxu0  ;;  %v243_v4 = vpop.f32.mrb[7].mxu1 }
  0xe9   :  { %v325_v62 = vmul.f32 %v644_v43, %v301_v56  ;;  %v299_v0 = vld [vmem:[#allocation2 + $0x40] sm:$0xff]  ;;  %v315_v5 = vmul.f32 %v644_v43, %v291_v63  ;;  %v294_v7 = vld [vmem:[#allocation2 + $0x18] sm:$0xff]  ;;  %276 = vst.msk [vmem:[#allocation2 + $0x20] sm:$0xff] %vm22_vm3, %v259_v57  ;;  %284 = vst.msk [vmem:[#allocation2 + $0x60] sm:$0xff] %vm22_vm3, %v267_v58  ;;  %v260_v9 = vadd.f32 %v211_v3, %v44_v53 }
  0xea   :  { %v323_v6 = vmul.f32 %v644_v43, %v299_v0  ;;  %v302_v8 = vld [vmem:[#allocation2 + $0x58] sm:$0xff]  ;;  %v268_v10 = vadd.f32 %v243_v4, %v52_v54  ;;  %v339_v11 = vadd.f32 %v649_v48, %v317_v61  ;;  %v318_v13 = vmul.f32 %v644_v43, %v294_v7  ;;  %v292_v15 = vld [vmem:[#allocation2 + $0x8] sm:$0xff]  ;;  %279 = vst.msk [vmem:[#allocation2 + $0x38] sm:$0xff] %vm22_vm3, %v262_v1 }
  0xeb   :  { %v347_v12 = vadd.f32 %v649_v48, %v325_v62  ;;  %v326_v14 = vmul.f32 %v644_v43, %v302_v8  ;;  %v300_v16 = vld [vmem:[#allocation2 + $0x48] sm:$0xff]  ;;  %287 = vst.msk [vmem:[#allocation2 + $0x78] sm:$0xff] %vm22_vm3, %v270_v2  ;;  %v337_v17 = vadd.f32 %v649_v48, %v315_v5  ;;  %v316_v19 = vmul.f32 %v644_v43, %v292_v15 }
  0xec   :  { %v345_v18 = vadd.f32 %v649_v48, %v323_v6  ;;  %v324_v20 = vmul.f32 %v644_v43, %v300_v16  ;;  %277 = vst.msk [vmem:[#allocation2 + $0x28] sm:$0xff] %vm22_vm3, %v260_v9  ;;  %285 = vst.msk [vmem:[#allocation2 + $0x68] sm:$0xff] %vm22_vm3, %v268_v10  ;;  %v355_v21 = vmax.f32 %v339_v11, 0.0  ;;  %v340_v23 = vadd.f32 %v649_v48, %v318_v13 }
  0xed   :  { %v363_v22 = vmax.f32 %v347_v12, 0.0  ;;  %v348_v24 = vadd.f32 %v649_v48, %v326_v14  ;;  %v353_v25 = vmax.f32 %v337_v17, 0.0  ;;  %v338_v27 = vadd.f32 %v649_v48, %v316_v19 }
  0xee   :  { %v361_v26 = vmax.f32 %v345_v18, 0.0  ;;  %v346_v28 = vadd.f32 %v649_v48, %v324_v20  ;;  %v492_v29 = vpack.c.bf16 %v355_v21, %v355_v21  ;;  %v356_v31 = vmax.f32 %v340_v23, 0.0 }
  0xef   :  { %v500_v30 = vpack.c.bf16 %v363_v22, %v363_v22  ;;  %v364_v32 = vmax.f32 %v348_v24, 0.0  ;;  %v490_v33 = vpack.c.bf16 %v353_v25, %v353_v25  ;;  %v354_v35 = vmax.f32 %v338_v27, 0.0  ;;  %v297_v37 = vld [vmem:[#allocation2 + $0x30] sm:$0xff] }
  0xf0   :  { %v498_v34 = vpack.c.bf16 %v361_v26, %v361_v26  ;;  %v362_v36 = vmax.f32 %v346_v28, 0.0  ;;  %v305_v38 = vld [vmem:[#allocation2 + $0x70] sm:$0xff]  ;;  %436 = vst.msk [vmem:[%s759_s4 + $0x8] sm:$0xf] %vm433_vm4, %v492_v29  ;;  %v493_v39 = vpack.c.bf16 %v356_v31, %v356_v31  ;;  %v321_v41 = vmul.f32 %v644_v43, %v297_v37  ;;  %v295_v44 = vld [vmem:[#allocation2 + $0x20] sm:$0xff] }
  0xf1   :  { %444 = vst.msk [vmem:[%s759_s4 + $0x28] sm:$0xf] %vm433_vm4, %v500_v30  ;;  %v501_v40 = vpack.c.bf16 %v364_v32, %v364_v32  ;;  %v329_v42 = vmul.f32 %v644_v43, %v305_v38  ;;  %v303_v45 = vld [vmem:[#allocation2 + $0x60] sm:$0xff]  ;;  %434 = vst.msk [vmem:[%s759_s4] sm:$0xf] %vm433_vm4, %v490_v33  ;;  %v491_v46 = vpack.c.bf16 %v354_v35, %v354_v35  ;;  %v298_v51 = vld [vmem:[#allocation2 + $0x38] sm:$0xff] }
  0xf2   :  { %442 = vst.msk [vmem:[%s759_s4 + $0x20] sm:$0xf] %vm433_vm4, %v498_v34  ;;  %v499_v47 = vpack.c.bf16 %v362_v36, %v362_v36  ;;  %v319_v49 = vmul.f32 %v644_v43, %v295_v44  ;;  %v327_v50 = vmul.f32 %v644_v43, %v303_v45  ;;  %v306_v52 = vld [vmem:[#allocation2 + $0x78] sm:$0xff]  ;;  %437 = vst.msk [vmem:[%s759_s4 + $0xc] sm:$0xf] %vm433_vm4, %v493_v39 }
  0xf3   :  { %445 = vst.msk [vmem:[%s759_s4 + $0x2c] sm:$0xf] %vm433_vm4, %v501_v40  ;;  %v343_v53 = vadd.f32 %v649_v48, %v321_v41  ;;  %v351_v54 = vadd.f32 %v649_v48, %v329_v42  ;;  %v322_v55 = vmul.f32 %v644_v43, %v298_v51  ;;  %v330_v56 = vmul.f32 %v644_v43, %v306_v52  ;;  %v296_v57 = vld [vmem:[#allocation2 + $0x28] sm:$0xff] }
  0xf4   :  { %v304_v58 = vld [vmem:[#allocation2 + $0x68] sm:$0xff]  ;;  %435 = vst.msk [vmem:[%s759_s4 + $0x4] sm:$0xf] %vm433_vm4, %v491_v46  ;;  %443 = vst.msk [vmem:[%s759_s4 + $0x24] sm:$0xf] %vm433_vm4, %v499_v47  ;;  %v341_v59 = vadd.f32 %v649_v48, %v319_v49  ;;  %v349_v60 = vadd.f32 %v649_v48, %v327_v50  ;;  %v320_v61 = vmul.f32 %v644_v43, %v296_v57 }
  0xf5   :  { %v328_v62 = vmul.f32 %v644_v43, %v304_v58  ;;  %v359_v63 = vmax.f32 %v343_v53, 0.0  ;;  %v367_v0 = vmax.f32 %v351_v54, 0.0  ;;  %v344_v1 = vadd.f32 %v649_v48, %v322_v55 }
  0xf6   :  { %v352_v2 = vadd.f32 %v649_v48, %v330_v56  ;;  %v357_v3 = vmax.f32 %v341_v59, 0.0  ;;  %v365_v4 = vmax.f32 %v349_v60, 0.0  ;;  %v342_v5 = vadd.f32 %v649_v48, %v320_v61 }
  0xf7   :  { %v350_v6 = vadd.f32 %v649_v48, %v328_v62  ;;  %v496_v7 = vpack.c.bf16 %v359_v63, %v359_v63  ;;  %v504_v8 = vpack.c.bf16 %v367_v0, %v367_v0  ;;  %v360_v9 = vmax.f32 %v344_v1, 0.0 }
  0xf8   :  { %v368_v10 = vmax.f32 %v352_v2, 0.0  ;;  %v494_v11 = vpack.c.bf16 %v357_v3, %v357_v3  ;;  %v502_v12 = vpack.c.bf16 %v365_v4, %v365_v4  ;;  %v358_v13 = vmax.f32 %v342_v5, 0.0 }
  0xf9   :  { %v366_v43 = vmax.f32 %v350_v6, 0.0  ;;  %440 = vst.msk [vmem:[%s759_s4 + $0x18] sm:$0xf] %vm433_vm4, %v496_v7  ;;  %448 = vst.msk [vmem:[%s759_s4 + $0x38] sm:$0xf] %vm433_vm4, %v504_v8  ;;  %v497_v14 = vpack.c.bf16 %v360_v9, %v360_v9 }
  0xfa   :  { %v505_v48 = vpack.c.bf16 %v368_v10, %v368_v10  ;;  %438 = vst.msk [vmem:[%s759_s4 + $0x10] sm:$0xf] %vm433_vm4, %v494_v11  ;;  %446 = vst.msk [vmem:[%s759_s4 + $0x30] sm:$0xf] %vm433_vm4, %v502_v12  ;;  %v495_v15 = vpack.c.bf16 %v358_v13, %v358_v13 }
  0xfb   :  { %v503_v16 = vpack.c.bf16 %v366_v43, %v366_v43  ;;  %441 = vst.msk [vmem:[%s759_s4 + $0x1c] sm:$0xf] %vm433_vm4, %v497_v14 }
  0xfc   :  { %449 = vst.msk [vmem:[%s759_s4 + $0x3c] sm:$0xf] %vm433_vm4, %v505_v48  ;;  %439 = vst.msk [vmem:[%s759_s4 + $0x14] sm:$0xf] %vm433_vm4, %v495_v15 }
  0xfd   :  { %447 = vst.msk [vmem:[%s759_s4 + $0x34] sm:$0xf] %vm433_vm4, %v503_v16 }

// kernel: erfnet_forward.78
= control target key start
LH: loop header
LB: loop body
LE: loop exit
PB: predicated region body
PF: predicated region fallthrough
CT: control target
= control target key end

     0   :  { %vm277_vm0 = vcmask 19456   ;;  %s665_s0 = inlined_call_operand.vmem [shape: bf16[128,3], index: 0, kind: input, shape index: {}]   ;;  %s666_s1 = inlined_call_operand.vmem [shape: bf16[128,3], index: 1, kind: input, shape index: {}]   ;;  %s667_s2 = inlined_call_operand.vmem [shape: bf16[128,3], index: 2, kind: input, shape index: {}]   ;;  %s668_s3 = inlined_call_operand.vmem [shape: bf16[128,3], index: 3, kind: input, shape index: {}]   ;;  %s669_s4 = inlined_call_operand.vmem [shape: f32[1,3], index: 4, kind: input, shape index: {}]   ;;  %s670_s5 = inlined_call_operand.vmem [shape: f32[1,3], index: 5, kind: input, shape index: {}]   ;;  %s671_s6 = inlined_call_operand.vmem [shape: bf16[128,3], index: 6, kind: output, shape index: {}]  }
   0x1   :  { %v23_v0 = vld [vmem:[%s665_s0] sm:$0xf]  ;;  %v24_v6 = vld [vmem:[%s665_s0 + $0x4] sm:$0xf]  ;;  %v25_v12 = vld [vmem:[%s665_s0 + $0x8] sm:$0xf] }
   0x2   :  { %v39_v1 = vld [vmem:[%s666_s1] sm:$0xf]  ;;  %v40_v7 = vld [vmem:[%s666_s1 + $0x4] sm:$0xf]  ;;  %v41_v13 = vld [vmem:[%s666_s1 + $0x8] sm:$0xf] }
   0x3   :  { %v71_v2 = vld [vmem:[%s667_s2] sm:$0xf]  ;;  %v55_v3 = vmax.bf16 %v39_v1, %v23_v0  ;;  %v72_v8 = vld [vmem:[%s667_s2 + $0x4] sm:$0xf]  ;;  %v56_v10 = vmax.bf16 %v40_v7, %v24_v6  ;;  %v57_v16 = vmax.bf16 %v41_v13, %v25_v12  ;;  %v73_v17 = vld [vmem:[%s667_s2 + $0x8] sm:$0xf] }
   0x4   :  { %v87_v4 = vld [vmem:[%s668_s3] sm:$0xf]  ;;  %v88_v11 = vld [vmem:[%s668_s3 + $0x4] sm:$0xf]  ;;  %v89_v18 = vld [vmem:[%s668_s3 + $0x8] sm:$0xf] }
   0x5   :  { %v103_v5 = vmax.bf16 %v87_v4, %v71_v2  ;;  %v391_v9 = vld [vmem:[%s669_s4] ss:$0 sm:$0xff]  ;;  %v104_v15 = vmax.bf16 %v88_v11, %v72_v8  ;;  %v26_v19 = vld [vmem:[%s665_s0 + $0xc] sm:$0xf]  ;;  %v105_v21 = vmax.bf16 %v89_v18, %v73_v17  ;;  %v27_v29 = vld [vmem:[%s665_s0 + $0x10] sm:$0xf] }
   0x6   :  { %v414_v20 = vld [vmem:[%s670_s5] ss:$0 sm:$0xff]  ;;  %v42_v22 = vld [vmem:[%s666_s1 + $0xc] sm:$0xf]  ;;  %v43_v30 = vld [vmem:[%s666_s1 + $0x10] sm:$0xf] }
   0x7   :  { %v119_v14 = vmax.bf16 %v103_v5, %v55_v3  ;;  %v74_v23 = vld [vmem:[%s667_s2 + $0xc] sm:$0xf]  ;;  %v120_v26 = vmax.bf16 %v104_v15, %v56_v10  ;;  %v58_v27 = vmax.bf16 %v42_v22, %v26_v19  ;;  %v75_v31 = vld [vmem:[%s667_s2 + $0x10] sm:$0xf]  ;;  %v121_v32 = vmax.bf16 %v105_v21, %v57_v16  ;;  %v28_v35 = vld [vmem:[%s665_s0 + $0x14] sm:$0xf] }
   0x8   :  { %v90_v24 = vld [vmem:[%s668_s3 + $0xc] sm:$0xf]  ;;  %v59_v33 = vmax.bf16 %v43_v30, %v27_v29  ;;  %v91_v34 = vld [vmem:[%s668_s3 + $0x10] sm:$0xf]  ;;  %v44_v36 = vld [vmem:[%s666_s1 + $0x14] sm:$0xf] }
   0x9   :  { %v135_v25 = vunpack.c.l.bf16 %v119_v14  ;;  %v106_v28 = vmax.bf16 %v90_v24, %v74_v23  ;;  %v136_v38 = vunpack.c.l.bf16 %v120_v26  ;;  %v107_v40 = vmax.bf16 %v91_v34, %v75_v31  ;;  %v76_v41 = vld [vmem:[%s667_s2 + $0x14] sm:$0xf]  ;;  %v29_v43 = vld [vmem:[%s665_s0 + $0x18] sm:$0xf]  ;;  %v30_v54 = vld [vmem:[%s665_s0 + $0x1c] sm:$0xf] }
   0xa   :  { %v92_v42 = vld [vmem:[%s668_s3 + $0x14] sm:$0xf]  ;;  %v137_v44 = vunpack.c.l.bf16 %v121_v32  ;;  %v60_v45 = vmax.bf16 %v44_v36, %v28_v35  ;;  %v45_v47 = vld [vmem:[%s666_s1 + $0x18] sm:$0xf]  ;;  %v46_v55 = vld [vmem:[%s666_s1 + $0x1c] sm:$0xf] }
   0xb   :  { %v158_v37 = vmul.f32 %v391_v9, %v135_v25  ;;  %v122_v39 = vmax.bf16 %v106_v28, %v58_v27  ;;  %v108_v46 = vmax.bf16 %v92_v42, %v76_v41  ;;  %v77_v48 = vld [vmem:[%s667_s2 + $0x18] sm:$0xf]  ;;  %v159_v51 = vmul.f32 %v391_v9, %v136_v38  ;;  %v78_v0 = vld [vmem:[%s667_s2 + $0x1c] sm:$0xf]  ;;  %v31_v6 = vld [vmem:[%s665_s0 + $0x20] sm:$0xf] }
   0xc   :  { %v93_v49 = vld [vmem:[%s668_s3 + $0x18] sm:$0xf]  ;;  %v123_v53 = vmax.bf16 %v107_v40, %v59_v33  ;;  %v160_v56 = vmul.f32 %v391_v9, %v137_v44  ;;  %v61_v58 = vmax.bf16 %v45_v47, %v29_v43  ;;  %v94_v1 = vld [vmem:[%s668_s3 + $0x1c] sm:$0xf]  ;;  %v62_v5 = vmax.bf16 %v46_v55, %v30_v54  ;;  %v47_v7 = vld [vmem:[%s666_s1 + $0x20] sm:$0xf] }
   0xd   :  { %v181_v50 = vadd.f32 %v414_v20, %v158_v37  ;;  %v138_v52 = vunpack.c.l.bf16 %v122_v39  ;;  %v124_v57 = vmax.bf16 %v108_v46, %v60_v45  ;;  %v109_v59 = vmax.bf16 %v93_v49, %v77_v48  ;;  %v79_v8 = vld [vmem:[%s667_s2 + $0x20] sm:$0xf]  ;;  %v32_v15 = vld [vmem:[%s665_s0 + $0x24] sm:$0xf]  ;;  %v33_v28 = vld [vmem:[%s665_s0 + $0x28] sm:$0xf] }
   0xe   :  { %v182_v61 = vadd.f32 %v414_v20, %v159_v51  ;;  %v139_v63 = vunpack.c.l.bf16 %v123_v53  ;;  %v183_v2 = vadd.f32 %v414_v20, %v160_v56  ;;  %v95_v14 = vld [vmem:[%s668_s3 + $0x20] sm:$0xf]  ;;  %v110_v19 = vmax.bf16 %v94_v1, %v78_v0  ;;  %v48_v21 = vld [vmem:[%s666_s1 + $0x24] sm:$0xf]  ;;  %v49_v33 = vld [vmem:[%s666_s1 + $0x28] sm:$0xf] }
   0xf   :  { %v197_v60 = vmax.f32 %v181_v50, 0.0  ;;  %v161_v62 = vmul.f32 %v391_v9, %v138_v52  ;;  %v140_v3 = vunpack.c.l.bf16 %v124_v57  ;;  %v125_v4 = vmax.bf16 %v109_v59, %v61_v58  ;;  %v80_v22 = vld [vmem:[%s667_s2 + $0x24] sm:$0xf]  ;;  %v81_v34 = vld [vmem:[%s667_s2 + $0x28] sm:$0xf] }
  0x10   :  { %v198_v11 = vmax.f32 %v182_v61, 0.0  ;;  %v162_v13 = vmul.f32 %v391_v9, %v139_v63  ;;  %v199_v16 = vmax.f32 %v183_v2, 0.0  ;;  %v63_v26 = vmax.bf16 %v47_v7, %v31_v6  ;;  %v96_v27 = vld [vmem:[%s668_s3 + $0x24] sm:$0xf]  ;;  %v97_v35 = vld [vmem:[%s668_s3 + $0x28] sm:$0xf] }
  0x11   :  { %v316_v10 = vpack.c.bf16 %v197_v60, %v197_v60  ;;  %v184_v12 = vadd.f32 %v414_v20, %v161_v62  ;;  %v163_v17 = vmul.f32 %v391_v9, %v140_v3  ;;  %v141_v18 = vunpack.c.l.bf16 %v125_v4  ;;  %v34_v40 = vld [vmem:[%s665_s0 + $0x2c] sm:$0xf]  ;;  %v35_v52 = vld [vmem:[%s665_s0 + $0x30] sm:$0xf]  ;;  %v36_v60 = vld [vmem:[%s665_s0 + $0x34] sm:$0xf] }
  0x12   :  { %v317_v23 = vpack.c.bf16 %v198_v11, %v198_v11  ;;  %v185_v25 = vadd.f32 %v414_v20, %v162_v13  ;;  %v318_v29 = vpack.c.bf16 %v199_v16, %v199_v16  ;;  %v126_v32 = vmax.bf16 %v110_v19, %v62_v5  ;;  %v50_v41 = vld [vmem:[%s666_s1 + $0x2c] sm:$0xf]  ;;  %v51_v53 = vld [vmem:[%s666_s1 + $0x30] sm:$0xf]  ;;  %v52_v1 = vld [vmem:[%s666_s1 + $0x34] sm:$0xf] }
  0x13   :  { %278 = vst.msk [vmem:[%s671_s6] sm:$0xf] %vm277_vm0, %v316_v10  ;;  %v200_v24 = vmax.f32 %v184_v12, 0.0  ;;  %v186_v30 = vadd.f32 %v414_v20, %v163_v17  ;;  %v164_v31 = vmul.f32 %v391_v9, %v141_v18  ;;  %v111_v38 = vmax.bf16 %v95_v14, %v79_v8  ;;  %v82_v46 = vld [vmem:[%s667_s2 + $0x2c] sm:$0xf] }
  0x14   :  { %279 = vst.msk [vmem:[%s671_s6 + $0x4] sm:$0xf] %vm277_vm0, %v317_v23  ;;  %v201_v37 = vmax.f32 %v185_v25, 0.0  ;;  %v64_v39 = vmax.bf16 %v48_v21, %v32_v15  ;;  %280 = vst.msk [vmem:[%s671_s6 + $0x8] sm:$0xf] %vm277_vm0, %v318_v29  ;;  %v142_v44 = vunpack.c.l.bf16 %v126_v32  ;;  %v112_v45 = vmax.bf16 %v96_v27, %v80_v22 }
  0x15   :  { %v319_v36 = vpack.c.bf16 %v200_v24, %v200_v24  ;;  %v202_v42 = vmax.f32 %v186_v30, 0.0  ;;  %v187_v43 = vadd.f32 %v414_v20, %v164_v31  ;;  %v98_v47 = vld [vmem:[%s668_s3 + $0x2c] sm:$0xf]  ;;  %v127_v49 = vmax.bf16 %v111_v38, %v63_v26  ;;  %v83_v54 = vld [vmem:[%s667_s2 + $0x30] sm:$0xf] }
  0x16   :  { %v320_v48 = vpack.c.bf16 %v201_v37, %v201_v37  ;;  %v65_v50 = vmax.bf16 %v49_v33, %v33_v28  ;;  %v113_v51 = vmax.bf16 %v97_v35, %v81_v34  ;;  %v165_v57 = vmul.f32 %v391_v9, %v142_v44  ;;  %v99_v59 = vld [vmem:[%s668_s3 + $0x30] sm:$0xf]  ;;  %v84_v2 = vld [vmem:[%s667_s2 + $0x34] sm:$0xf]  ;;  %v37_v13 = vld [vmem:[%s665_s0 + $0x38] sm:$0xf] }
  0x17   :  { %281 = vst.msk [vmem:[%s671_s6 + $0xc] sm:$0xf] %vm277_vm0, %v319_v36  ;;  %v321_v55 = vpack.c.bf16 %v202_v42, %v202_v42  ;;  %v203_v56 = vmax.f32 %v187_v43, 0.0  ;;  %v128_v58 = vmax.bf16 %v112_v45, %v64_v39  ;;  %v143_v61 = vunpack.c.l.bf16 %v127_v49  ;;  %v100_v3 = vld [vmem:[%s668_s3 + $0x34] sm:$0xf] }
  0x18   :  { %282 = vst.msk [vmem:[%s671_s6 + $0x10] sm:$0xf] %vm277_vm0, %v320_v48  ;;  %v129_v62 = vmax.bf16 %v113_v51, %v65_v50  ;;  %v66_v63 = vmax.bf16 %v50_v41, %v34_v40  ;;  %v114_v0 = vmax.bf16 %v98_v47, %v82_v46  ;;  %v188_v5 = vadd.f32 %v414_v20, %v165_v57  ;;  %v53_v14 = vld [vmem:[%s666_s1 + $0x38] sm:$0xf]  ;;  %v38_v26 = vld [vmem:[%s665_s0 + $0x3c] sm:$0xf] }
  0x19   :  { %283 = vst.msk [vmem:[%s671_s6 + $0x14] sm:$0xf] %vm277_vm0, %v321_v55  ;;  %v322_v4 = vpack.c.bf16 %v203_v56, %v203_v56  ;;  %v144_v6 = vunpack.c.l.bf16 %v128_v58  ;;  %v67_v7 = vmax.bf16 %v51_v53, %v35_v52  ;;  %v166_v8 = vmul.f32 %v391_v9, %v143_v61  ;;  %v85_v19 = vld [vmem:[%s667_s2 + $0x38] sm:$0xf]  ;;  %v54_v27 = vld [vmem:[%s666_s1 + $0x3c] sm:$0xf] }
  0x1a   :  { %v145_v10 = vunpack.c.l.bf16 %v129_v62  ;;  %v130_v11 = vmax.bf16 %v114_v0, %v66_v63  ;;  %v115_v12 = vmax.bf16 %v99_v59, %v83_v54  ;;  %v204_v15 = vmax.f32 %v188_v5, 0.0  ;;  %v101_v25 = vld [vmem:[%s668_s3 + $0x38] sm:$0xf]  ;;  %v86_v36 = vld [vmem:[%s667_s2 + $0x3c] sm:$0xf] }
  0x1b   :  { %284 = vst.msk [vmem:[%s671_s6 + $0x18] sm:$0xf] %vm277_vm0, %v322_v4  ;;  %v167_v16 = vmul.f32 %v391_v9, %v144_v6  ;;  %v68_v17 = vmax.bf16 %v52_v1, %v36_v60  ;;  %v116_v18 = vmax.bf16 %v100_v3, %v84_v2  ;;  %v189_v21 = vadd.f32 %v414_v20, %v166_v8  ;;  %v102_v37 = vld [vmem:[%s668_s3 + $0x3c] sm:$0xf] }
  0x1c   :  { %v168_v22 = vmul.f32 %v391_v9, %v145_v10  ;;  %v146_v23 = vunpack.c.l.bf16 %v130_v11  ;;  %v131_v24 = vmax.bf16 %v115_v12, %v67_v7  ;;  %v323_v28 = vpack.c.bf16 %v204_v15, %v204_v15 }
  0x1d   :  { %v190_v29 = vadd.f32 %v414_v20, %v167_v16  ;;  %v132_v30 = vmax.bf16 %v116_v18, %v68_v17  ;;  %v69_v31 = vmax.bf16 %v53_v14, %v37_v13  ;;  %v205_v32 = vmax.f32 %v189_v21, 0.0 }
  0x1e   :  { %v191_v33 = vadd.f32 %v414_v20, %v168_v22  ;;  %v169_v34 = vmul.f32 %v391_v9, %v146_v23  ;;  %v147_v35 = vunpack.c.l.bf16 %v131_v24  ;;  %285 = vst.msk [vmem:[%s671_s6 + $0x1c] sm:$0xf] %vm277_vm0, %v323_v28  ;;  %v117_v40 = vmax.bf16 %v101_v25, %v85_v19 }
  0x1f   :  { %v206_v38 = vmax.f32 %v190_v29, 0.0  ;;  %v148_v39 = vunpack.c.l.bf16 %v132_v30  ;;  %v70_v41 = vmax.bf16 %v54_v27, %v38_v26  ;;  %v324_v42 = vpack.c.bf16 %v205_v32, %v205_v32 }
  0x20   :  { %v207_v43 = vmax.f32 %v191_v33, 0.0  ;;  %v192_v44 = vadd.f32 %v414_v20, %v169_v34  ;;  %v170_v45 = vmul.f32 %v391_v9, %v147_v35  ;;  %v133_v48 = vmax.bf16 %v117_v40, %v69_v31 }
  0x21   :  { %v325_v46 = vpack.c.bf16 %v206_v38, %v206_v38  ;;  %v171_v47 = vmul.f32 %v391_v9, %v148_v39  ;;  %v118_v49 = vmax.bf16 %v102_v37, %v86_v36  ;;  %286 = vst.msk [vmem:[%s671_s6 + $0x20] sm:$0xf] %vm277_vm0, %v324_v42 }
  0x22   :  { %v326_v50 = vpack.c.bf16 %v207_v43, %v207_v43  ;;  %v208_v51 = vmax.f32 %v192_v44, 0.0  ;;  %v193_v52 = vadd.f32 %v414_v20, %v170_v45  ;;  %v149_v54 = vunpack.c.l.bf16 %v133_v48 }
  0x23   :  { %287 = vst.msk [vmem:[%s671_s6 + $0x24] sm:$0xf] %vm277_vm0, %v325_v46  ;;  %v194_v53 = vadd.f32 %v414_v20, %v171_v47  ;;  %v134_v55 = vmax.bf16 %v118_v49, %v70_v41 }
  0x24   :  { %288 = vst.msk [vmem:[%s671_s6 + $0x28] sm:$0xf] %vm277_vm0, %v326_v50  ;;  %v327_v56 = vpack.c.bf16 %v208_v51, %v208_v51  ;;  %v209_v57 = vmax.f32 %v193_v52, 0.0  ;;  %v172_v59 = vmul.f32 %v391_v9, %v149_v54 }
  0x25   :  { %v210_v58 = vmax.f32 %v194_v53, 0.0  ;;  %v150_v60 = vunpack.c.l.bf16 %v134_v55 }
  0x26   :  { %289 = vst.msk [vmem:[%s671_s6 + $0x2c] sm:$0xf] %vm277_vm0, %v327_v56  ;;  %v328_v61 = vpack.c.bf16 %v209_v57, %v209_v57  ;;  %v195_v63 = vadd.f32 %v414_v20, %v172_v59 }
  0x27   :  { %v329_v62 = vpack.c.bf16 %v210_v58, %v210_v58  ;;  %v173_v0 = vmul.f32 %v391_v9, %v150_v60 }
  0x28   :  { %290 = vst.msk [vmem:[%s671_s6 + $0x30] sm:$0xf] %vm277_vm0, %v328_v61  ;;  %v211_v1 = vmax.f32 %v195_v63, 0.0 }
  0x29   :  { %291 = vst.msk [vmem:[%s671_s6 + $0x34] sm:$0xf] %vm277_vm0, %v329_v62  ;;  %v196_v2 = vadd.f32 %v414_v20, %v173_v0 }
  0x2a   :  { %v330_v3 = vpack.c.bf16 %v211_v1, %v211_v1 }
  0x2b   :  { %v212_v4 = vmax.f32 %v196_v2, 0.0 }
  0x2c   :  { %292 = vst.msk [vmem:[%s671_s6 + $0x38] sm:$0xf] %vm277_vm0, %v330_v3 }
  0x2d   :  { %v331_v9 = vpack.c.bf16 %v212_v4, %v212_v4 }
  0x2f   :  { %293 = vst.msk [vmem:[%s671_s6 + $0x3c] sm:$0xf] %vm277_vm0, %v331_v9 }

// kernel: erfnet_forward.80
= control target key start
LH: loop header
LB: loop body
LE: loop exit
PB: predicated region body
PF: predicated region fallthrough
CT: control target
= control target key end

     0   :  { %vm97_vm0 = vcmask 125952   ;;  %s217_s0 = inlined_call_operand.vmem [shape: bf16[32,16], index: 0, kind: input, shape index: {}]   ;;  %s218_s1 = inlined_call_operand.vmem [shape: bf16[32,16], index: 1, kind: input, shape index: {}]   ;;  %s219_s2 = inlined_call_operand.vmem [shape: bf16[32,16], index: 2, kind: input, shape index: {}]   ;;  %s220_s3 = inlined_call_operand.vmem [shape: bf16[32,16], index: 3, kind: input, shape index: {}]   ;;  %s221_s4 = inlined_call_operand.vmem [shape: f32[1,16], index: 4, kind: input, shape index: {}]   ;;  %s222_s5 = inlined_call_operand.vmem [shape: f32[1,16], index: 5, kind: input, shape index: {}]   ;;  %s223_s6 = inlined_call_operand.vmem [shape: bf16[32,16], index: 6, kind: output, shape index: {}]  }
   0x1   :  { %v23_v0 = vld [vmem:[%s217_s0] sm:$0xf]  ;;  %v24_v6 = vld [vmem:[%s217_s0 + $0x4] sm:$0xf]  ;;  %v25_v12 = vld [vmem:[%s217_s0 + $0x8] sm:$0xf] }
   0x2   :  { %v27_v1 = vld [vmem:[%s218_s1] sm:$0xf]  ;;  %v28_v7 = vld [vmem:[%s218_s1 + $0x4] sm:$0xf]  ;;  %v29_v13 = vld [vmem:[%s218_s1 + $0x8] sm:$0xf] }
   0x3   :  { %v35_v2 = vld [vmem:[%s219_s2] sm:$0xf]  ;;  %v31_v3 = vmax.bf16 %v27_v1, %v23_v0  ;;  %v36_v8 = vld [vmem:[%s219_s2 + $0x4] sm:$0xf]  ;;  %v32_v10 = vmax.bf16 %v28_v7, %v24_v6  ;;  %v33_v16 = vmax.bf16 %v29_v13, %v25_v12  ;;  %v37_v17 = vld [vmem:[%s219_s2 + $0x8] sm:$0xf] }
   0x4   :  { %v39_v4 = vld [vmem:[%s220_s3] sm:$0xf]  ;;  %v40_v11 = vld [vmem:[%s220_s3 + $0x4] sm:$0xf]  ;;  %v41_v18 = vld [vmem:[%s220_s3 + $0x8] sm:$0xf] }
   0x5   :  { %v43_v5 = vmax.bf16 %v39_v4, %v35_v2  ;;  %v106_v9 = vld [vmem:[%s221_s4] ss:$0 sm:$0xff]  ;;  %v44_v15 = vmax.bf16 %v40_v11, %v36_v8  ;;  %v26_v19 = vld [vmem:[%s217_s0 + $0xc] sm:$0xf]  ;;  %v45_v20 = vmax.bf16 %v41_v18, %v37_v17 }
   0x6   :  { %v30_v21 = vld [vmem:[%s218_s1 + $0xc] sm:$0xf]  ;;  %v107_v28 = vld [vmem:[%s222_s5] ss:$0 sm:$0xff] }
   0x7   :  { %v47_v14 = vmax.bf16 %v43_v5, %v31_v3  ;;  %v38_v22 = vld [vmem:[%s219_s2 + $0xc] sm:$0xf]  ;;  %v48_v25 = vmax.bf16 %v44_v15, %v32_v10  ;;  %v34_v26 = vmax.bf16 %v30_v21, %v26_v19  ;;  %v49_v29 = vmax.bf16 %v45_v20, %v33_v16 }
   0x8   :  { %v42_v23 = vld [vmem:[%s220_s3 + $0xc] sm:$0xf] }
   0x9   :  { %v51_v24 = vunpack.c.l.bf16 %v47_v14  ;;  %v46_v27 = vmax.bf16 %v42_v23, %v38_v22  ;;  %v52_v31 = vunpack.c.l.bf16 %v48_v25  ;;  %v53_v33 = vunpack.c.l.bf16 %v49_v29 }
   0xb   :  { %v62_v30 = vmul.f32 %v106_v9, %v51_v24  ;;  %v50_v32 = vmax.bf16 %v46_v27, %v34_v26  ;;  %v63_v35 = vmul.f32 %v106_v9, %v52_v31  ;;  %v64_v37 = vmul.f32 %v106_v9, %v53_v33 }
   0xd   :  { %v73_v34 = vadd.f32 %v107_v28, %v62_v30  ;;  %v54_v36 = vunpack.c.l.bf16 %v50_v32  ;;  %v74_v39 = vadd.f32 %v107_v28, %v63_v35  ;;  %v75_v41 = vadd.f32 %v107_v28, %v64_v37 }
   0xf   :  { %v77_v38 = vmax.f32 %v73_v34, 0.0  ;;  %v65_v40 = vmul.f32 %v106_v9, %v54_v36  ;;  %v78_v43 = vmax.f32 %v74_v39, 0.0  ;;  %v79_v45 = vmax.f32 %v75_v41, 0.0 }
  0x11   :  { %v112_v42 = vpack.c.bf16 %v77_v38, %v77_v38  ;;  %v76_v44 = vadd.f32 %v107_v28, %v65_v40  ;;  %v113_v46 = vpack.c.bf16 %v78_v43, %v78_v43  ;;  %v114_v48 = vpack.c.bf16 %v79_v45, %v79_v45 }
  0x13   :  { %98 = vst.msk [vmem:[%s223_s6] sm:$0xf] %vm97_vm0, %v112_v42  ;;  %v80_v47 = vmax.f32 %v76_v44, 0.0  ;;  %99 = vst.msk [vmem:[%s223_s6 + $0x4] sm:$0xf] %vm97_vm0, %v113_v46 }
  0x14   :  { %100 = vst.msk [vmem:[%s223_s6 + $0x8] sm:$0xf] %vm97_vm0, %v114_v48 }
  0x15   :  { %v115_v49 = vpack.c.bf16 %v80_v47, %v80_v47 }
  0x17   :  { %101 = vst.msk [vmem:[%s223_s6 + $0xc] sm:$0xf] %vm97_vm0, %v115_v49 }

// kernel: erfnet_forward.79
= control target key start
LH: loop header
LB: loop body
LE: loop exit
PB: predicated region body
PF: predicated region fallthrough
CT: control target
= control target key end

     0   :  { %vm22_vm0 = vcmask 392192   ;;  %v308_v0 = vmov 0   ;;  %v309_v2 = vmov 0.0   ;;  %vm125_vm1 = vcmask 130048   ;;  %s400_s1 = inlined_call_operand.vmem [shape: bf16[144,48], index: 1, kind: input, shape index: {}]   ;;  %s401_s0 = inlined_call_operand.vmem [shape: bf16[32,144], index: 0, kind: input, shape index: {}]   ;;  %s402_s2 = inlined_call_operand.vmem [shape: f32[1,48], index: 2, kind: input, shape index: {}]   ;;  %s403_s3 = inlined_call_operand.vmem [shape: f32[1,48], index: 3, kind: input, shape index: {}]   ;;  %s404_s4 = inlined_call_operand.vmem [shape: bf16[32,48], index: 4, kind: output, shape index: {}]  }
   0x1   :  { %132 = vmatprep.subr.bf16.mxu0 %v308_v0  ;;  %273 = vmatprep.subr.bf16.mxu1 %v308_v0  ;;  %v293_v1 = vld [vmem:[%s400_s1] sm:$0xff]   ;;  %23 = vst.msk [vmem:[#allocation2] sm:$0xff] %vm22_vm0, %v309_v2  ;;  %24 = vst.msk [vmem:[#allocation2 + $0x8] sm:$0xff] %vm22_vm0, %v309_v2  ;;  %v294_v3 = vld [vmem:[%s400_s1 + $0x8] sm:$0xff]   ;;  %vm239_vm2 = vcmask 388096  }
   0x2   :  { %25 = vst.msk [vmem:[#allocation2 + $0x10] sm:$0xff] %vm22_vm0, %v309_v2  ;;  %26 = vst.msk [vmem:[#allocation2 + $0x18] sm:$0xff] %vm22_vm0, %v309_v2  ;;  %133 = vmatpush1.bf16.msra.mxu0 %v293_v1  ;;  %282 = vmatpush1.bf16.msra.mxu1 %v293_v1  ;;  %v295_v4 = vld [vmem:[%s400_s1 + $0x10] sm:$0xff]   ;;  %v296_v5 = vld [vmem:[%s400_s1 + $0x18] sm:$0xff]  }
   0x3   :  { %134 = vmatprep.subr.bf16.mxu0 %v308_v0  ;;  %274 = vmatprep.subr.bf16.mxu1 %v308_v0  ;;  %v304_v6 = vld [vmem:[%s401_s0 + $0x4] ss:$8 sps:$4 sm:$0xff]   ;;  %v307_v7 = vld [vmem:[%s401_s0 + $0x14] ss:$8 sps:$4 sm:$0xff]   ;;  %v302_v13 = vld [vmem:[%s401_s0] ss:$8 sps:$4 sm:$0xff]  }
   0x4   :  { %261 = vmatprep.mubr.msk.bf16.mxu0 %vm125_vm1, %v304_v6  ;;  %262 = vmatprep.mubr.msk.bf16.mxu1 %vm125_vm1, %v307_v7  ;;  %v297_v8 = vld [vmem:[%s400_s1 + $0x20] sm:$0xff]   ;;  %v298_v9 = vld [vmem:[%s400_s1 + $0x28] sm:$0xff]   ;;  %v299_v10 = vld [vmem:[%s400_s1 + $0x30] sm:$0xff]  }
   0x5   :  { %v300_v11 = vld [vmem:[%s400_s1 + $0x38] sm:$0xff]   ;;  %v301_v12 = vld [vmem:[%s400_s1 + $0x40] sm:$0xff]  }
   0x6   :  { %135 = vmatpush1.bf16.msra.mxu0 %v294_v3  ;;  %283 = vmatpush1.bf16.msra.mxu1 %v294_v3  ;;  %v305_v14 = vld [vmem:[%s401_s0 + $0x10] ss:$8 sps:$4 sm:$0xff]   ;;  %v263_v31 = vld [vmem:[%s402_s2] ss:$0 sm:$0xff] }
   0x7   :  { %136 = vmatprep.subr.bf16.mxu0 %v308_v0  ;;  %275 = vmatprep.subr.bf16.mxu1 %v308_v0  ;;  %v264_v33 = vld [vmem:[%s403_s3] ss:$0 sm:$0xff] }
   0x8   :  { %v27_v15 = vld [vmem:[#allocation2] sm:$0xff]  ;;  %v28_v19 = vld [vmem:[#allocation2 + $0x8] sm:$0xff] }
   0x9   :  { %v29_v16 = vld [vmem:[#allocation2 + $0x10] sm:$0xff]  ;;  %v30_v20 = vld [vmem:[#allocation2 + $0x18] sm:$0xff] }
   0xa   :  { %137 = vmatpush1.bf16.msra.mxu0 %v295_v4  ;;  %284 = vmatpush1.bf16.msra.mxu1 %v295_v4 }
   0xb   :  { %138 = vmatprep.subr.bf16.mxu0 %v308_v0  ;;  %276 = vmatprep.subr.bf16.mxu1 %v308_v0 }
   0xe   :  { %139 = vmatpush1.bf16.msra.mxu0 %v296_v5  ;;  %285 = vmatpush1.bf16.msra.mxu1 %v296_v5 }
   0xf   :  { %140 = vmatprep.subr.bf16.mxu0 %v308_v0  ;;  %277 = vmatprep.subr.bf16.mxu1 %v308_v0 }
  0x12   :  { %141 = vmatpush1.bf16.msra.mxu0 %v297_v8  ;;  %286 = vmatpush1.bf16.msra.mxu1 %v297_v8 }
  0x13   :  { %142 = vmatprep.subr.bf16.mxu0 %v308_v0  ;;  %278 = vmatprep.subr.bf16.mxu1 %v308_v0 }
  0x16   :  { %143 = vmatpush1.bf16.msra.mxu0 %v298_v9  ;;  %287 = vmatpush1.bf16.msra.mxu1 %v298_v9 }
  0x17   :  { %144 = vmatprep.subr.bf16.mxu0 %v308_v0  ;;  %279 = vmatprep.subr.bf16.mxu1 %v308_v0 }
  0x1a   :  { %145 = vmatpush1.bf16.msra.mxu0 %v299_v10  ;;  %288 = vmatpush1.bf16.msra.mxu1 %v299_v10 }
  0x1b   :  { %146 = vmatprep.subr.bf16.mxu0 %v308_v0  ;;  %280 = vmatprep.subr.bf16.mxu1 %v308_v0 }
  0x1e   :  { %147 = vmatpush1.bf16.msra.mxu0 %v300_v11  ;;  %289 = vmatpush1.bf16.msra.mxu1 %v300_v11 }
  0x1f   :  { %148 = vmatprep.subr.bf16.mxu0 %v308_v0  ;;  %281 = vmatprep.subr.bf16.mxu1 %v308_v0 }
  0x22   :  { %149 = vmatpush1.bf16.msra.mxu0 %v301_v12  ;;  %290 = vmatpush1.bf16.msra.mxu1 %v301_v12 }
  0x25   :  { %165 = vmatmul.mubr.bf16.vlgmr.msra.gmra.mrb[0].mxu0 %v302_v13  ;;  %173 = vmatmul.mubr.bf16.vlgmr.msra.gmra.mrb[0].mxu1 %v305_v14 }
  0xf8   :  { %v166_v17 = vpop.f32.mrb[0].mxu0  ;;  %v174_v18 = vpop.f32.mrb[0].mxu1 }
  0xf9   :  { %v181_v21 = vadd.f32 %v166_v17, %v27_v15  ;;  %v183_v22 = vadd.f32 %v174_v18, %v29_v16  ;;  %v168_v23 = vpop.f32.mrb[1].mxu0  ;;  %v176_v24 = vpop.f32.mrb[1].mxu1 }
  0xfa   :  { %v169_v25 = vpop.f32.mrb[2].mxu0  ;;  %v177_v26 = vpop.f32.mrb[2].mxu1 }
  0xfb   :  { %186 = vst.msk [vmem:[#allocation2] sm:$0xff] %vm22_vm0, %v181_v21  ;;  %188 = vst.msk [vmem:[#allocation2 + $0x10] sm:$0xff] %vm22_vm0, %v183_v22  ;;  %v182_v27 = vadd.f32 %v169_v25, %v28_v19  ;;  %v184_v28 = vadd.f32 %v177_v26, %v30_v20  ;;  %v171_v29 = vpop.f32.mrb[3].mxu0  ;;  %v179_v30 = vpop.f32.mrb[3].mxu1 }
  0xfd   :  { %187 = vst.msk [vmem:[#allocation2 + $0x8] sm:$0xff] %vm22_vm0, %v182_v27  ;;  %189 = vst.msk [vmem:[#allocation2 + $0x18] sm:$0xff] %vm22_vm0, %v184_v28 }
 0x102   :  { %v193_v32 = vld [vmem:[#allocation2] sm:$0xff]  ;;  %v195_v34 = vld [vmem:[#allocation2 + $0x10] sm:$0xff] }
 0x103   :  { %v205_v35 = vmul.f32 %v263_v31, %v193_v32  ;;  %v207_v36 = vmul.f32 %v263_v31, %v195_v34 }
 0x104   :  { %v194_v37 = vld [vmem:[#allocation2 + $0x8] sm:$0xff]  ;;  %v196_v38 = vld [vmem:[#allocation2 + $0x18] sm:$0xff] }
 0x105   :  { %v215_v39 = vadd.f32 %v264_v33, %v205_v35  ;;  %v217_v40 = vadd.f32 %v264_v33, %v207_v36  ;;  %v206_v41 = vmul.f32 %v263_v31, %v194_v37  ;;  %v208_v42 = vmul.f32 %v263_v31, %v196_v38 }
 0x107   :  { %v219_v43 = vmax.f32 %v215_v39, 0.0  ;;  %v221_v44 = vmax.f32 %v217_v40, 0.0  ;;  %v216_v45 = vadd.f32 %v264_v33, %v206_v41  ;;  %v218_v46 = vadd.f32 %v264_v33, %v208_v42 }
 0x109   :  { %v269_v47 = vpack.c.bf16 %v219_v43, %v219_v43  ;;  %v271_v48 = vpack.c.bf16 %v221_v44, %v221_v44  ;;  %v220_v49 = vmax.f32 %v216_v45, 0.0  ;;  %v222_v50 = vmax.f32 %v218_v46, 0.0 }
 0x10b   :  { %240 = vst.msk [vmem:[%s404_s4] sm:$0xf] %vm239_vm2, %v269_v47  ;;  %242 = vst.msk [vmem:[%s404_s4 + $0x8] sm:$0xf] %vm239_vm2, %v271_v48  ;;  %v270_v51 = vpack.c.bf16 %v220_v49, %v220_v49  ;;  %v272_v52 = vpack.c.bf16 %v222_v50, %v222_v50 }
 0x10d   :  { %241 = vst.msk [vmem:[%s404_s4 + $0x4] sm:$0xf] %vm239_vm2, %v270_v51  ;;  %243 = vst.msk [vmem:[%s404_s4 + $0xc] sm:$0xf] %vm239_vm2, %v272_v52 }

// kernel: erfnet_forward.81
= control target key start
LH: loop header
LB: loop body
LE: loop exit
PB: predicated region body
PF: predicated region fallthrough
CT: control target
= control target key end

     0   :  { %vm22_vm0 = vcmask 523264   ;;  %v343_v0 = vmov 0   ;;  %v344_v2 = vmov 0.0   ;;  %vm262_vm1 = vcmask 519168   ;;  %s470_s1 = inlined_call_operand.vmem [shape: bf16[192,64], index: 1, kind: input, shape index: {}]   ;;  %s471_s0 = inlined_call_operand.vmem [shape: bf16[32,192], index: 0, kind: input, shape index: {}]   ;;  %s472_s2 = inlined_call_operand.vmem [shape: f32[1,64], index: 2, kind: input, shape index: {}]   ;;  %s473_s3 = inlined_call_operand.vmem [shape: f32[1,64], index: 3, kind: input, shape index: {}]   ;;  %s474_s4 = inlined_call_operand.vmem [shape: bf16[32,64], index: 4, kind: output, shape index: {}]  }
   0x1   :  { %156 = vmatprep.subr.bf16.mxu0 %v343_v0  ;;  %299 = vmatprep.subr.bf16.mxu1 %v343_v0  ;;  %v325_v1 = vld [vmem:[%s470_s1] sm:$0xff]   ;;  %23 = vst.msk [vmem:[#allocation2] sm:$0xff] %vm22_vm0, %v344_v2  ;;  %24 = vst.msk [vmem:[#allocation2 + $0x8] sm:$0xff] %vm22_vm0, %v344_v2  ;;  %v326_v3 = vld [vmem:[%s470_s1 + $0x8] sm:$0xff]  }
   0x2   :  { %25 = vst.msk [vmem:[#allocation2 + $0x10] sm:$0xff] %vm22_vm0, %v344_v2  ;;  %26 = vst.msk [vmem:[#allocation2 + $0x18] sm:$0xff] %vm22_vm0, %v344_v2  ;;  %157 = vmatpush1.bf16.msra.mxu0 %v325_v1  ;;  %311 = vmatpush1.bf16.msra.mxu1 %v325_v1  ;;  %v327_v4 = vld [vmem:[%s470_s1 + $0x10] sm:$0xff]   ;;  %v328_v5 = vld [vmem:[%s470_s1 + $0x18] sm:$0xff]  }
   0x3   :  { %158 = vmatprep.subr.bf16.mxu0 %v343_v0  ;;  %300 = vmatprep.subr.bf16.mxu1 %v343_v0  ;;  %v339_v6 = vld [vmem:[%s471_s0 + $0x4] ss:$8 sps:$4 sm:$0xff]   ;;  %v342_v8 = vld [vmem:[%s471_s0 + $0x14] ss:$8 sps:$4 sm:$0xff]   ;;  %v337_v16 = vld [vmem:[%s471_s0] ss:$8 sps:$4 sm:$0xff]  }
   0x4   :  { %v329_v7 = vld [vmem:[%s470_s1 + $0x20] sm:$0xff]   ;;  %287 = vmatprep.mubr.msk.bf16.mxu0 %vm22_vm0, %v339_v6  ;;  %288 = vmatprep.mubr.msk.bf16.mxu1 %vm22_vm0, %v342_v8  ;;  %v330_v9 = vld [vmem:[%s470_s1 + $0x28] sm:$0xff]   ;;  %v331_v10 = vld [vmem:[%s470_s1 + $0x30] sm:$0xff]  }
   0x5   :  { %v332_v11 = vld [vmem:[%s470_s1 + $0x38] sm:$0xff]   ;;  %v333_v12 = vld [vmem:[%s470_s1 + $0x40] sm:$0xff]   ;;  %v334_v13 = vld [vmem:[%s470_s1 + $0x48] sm:$0xff]  }
   0x6   :  { %159 = vmatpush1.bf16.msra.mxu0 %v326_v3  ;;  %312 = vmatpush1.bf16.msra.mxu1 %v326_v3  ;;  %v335_v14 = vld [vmem:[%s470_s1 + $0x50] sm:$0xff]   ;;  %v336_v15 = vld [vmem:[%s470_s1 + $0x58] sm:$0xff]   ;;  %v289_v34 = vld [vmem:[%s472_s2] ss:$0 sm:$0xff] }
   0x7   :  { %160 = vmatprep.subr.bf16.mxu0 %v343_v0  ;;  %301 = vmatprep.subr.bf16.mxu1 %v343_v0  ;;  %v340_v17 = vld [vmem:[%s471_s0 + $0x10] ss:$8 sps:$4 sm:$0xff]   ;;  %v290_v36 = vld [vmem:[%s473_s3] ss:$0 sm:$0xff] }
   0x8   :  { %v27_v18 = vld [vmem:[#allocation2] sm:$0xff]  ;;  %v28_v22 = vld [vmem:[#allocation2 + $0x8] sm:$0xff] }
   0x9   :  { %v29_v19 = vld [vmem:[#allocation2 + $0x10] sm:$0xff]  ;;  %v30_v23 = vld [vmem:[#allocation2 + $0x18] sm:$0xff] }
   0xa   :  { %161 = vmatpush1.bf16.msra.mxu0 %v327_v4  ;;  %313 = vmatpush1.bf16.msra.mxu1 %v327_v4 }
   0xb   :  { %162 = vmatprep.subr.bf16.mxu0 %v343_v0  ;;  %302 = vmatprep.subr.bf16.mxu1 %v343_v0 }
   0xe   :  { %163 = vmatpush1.bf16.msra.mxu0 %v328_v5  ;;  %314 = vmatpush1.bf16.msra.mxu1 %v328_v5 }
   0xf   :  { %164 = vmatprep.subr.bf16.mxu0 %v343_v0  ;;  %303 = vmatprep.subr.bf16.mxu1 %v343_v0 }
  0x12   :  { %165 = vmatpush1.bf16.msra.mxu0 %v329_v7  ;;  %315 = vmatpush1.bf16.msra.mxu1 %v329_v7 }
  0x13   :  { %166 = vmatprep.subr.bf16.mxu0 %v343_v0  ;;  %304 = vmatprep.subr.bf16.mxu1 %v343_v0 }
  0x16   :  { %167 = vmatpush1.bf16.msra.mxu0 %v330_v9  ;;  %316 = vmatpush1.bf16.msra.mxu1 %v330_v9 }
  0x17   :  { %168 = vmatprep.subr.bf16.mxu0 %v343_v0  ;;  %305 = vmatprep.subr.bf16.mxu1 %v343_v0 }
  0x1a   :  { %169 = vmatpush1.bf16.msra.mxu0 %v331_v10  ;;  %317 = vmatpush1.bf16.msra.mxu1 %v331_v10 }
  0x1b   :  { %170 = vmatprep.subr.bf16.mxu0 %v343_v0  ;;  %306 = vmatprep.subr.bf16.mxu1 %v343_v0 }
  0x1e   :  { %171 = vmatpush1.bf16.msra.mxu0 %v332_v11  ;;  %318 = vmatpush1.bf16.msra.mxu1 %v332_v11 }
  0x1f   :  { %172 = vmatprep.subr.bf16.mxu0 %v343_v0  ;;  %307 = vmatprep.subr.bf16.mxu1 %v343_v0 }
  0x22   :  { %173 = vmatpush1.bf16.msra.mxu0 %v333_v12  ;;  %319 = vmatpush1.bf16.msra.mxu1 %v333_v12 }
  0x23   :  { %174 = vmatprep.subr.bf16.mxu0 %v343_v0  ;;  %308 = vmatprep.subr.bf16.mxu1 %v343_v0 }
  0x26   :  { %175 = vmatpush1.bf16.msra.mxu0 %v334_v13  ;;  %320 = vmatpush1.bf16.msra.mxu1 %v334_v13 }
  0x27   :  { %176 = vmatprep.subr.bf16.mxu0 %v343_v0  ;;  %309 = vmatprep.subr.bf16.mxu1 %v343_v0 }
  0x2a   :  { %177 = vmatpush1.bf16.msra.mxu0 %v335_v14  ;;  %321 = vmatpush1.bf16.msra.mxu1 %v335_v14 }
  0x2b   :  { %178 = vmatprep.subr.bf16.mxu0 %v343_v0  ;;  %310 = vmatprep.subr.bf16.mxu1 %v343_v0 }
  0x2e   :  { %179 = vmatpush1.bf16.msra.mxu0 %v336_v15  ;;  %322 = vmatpush1.bf16.msra.mxu1 %v336_v15 }
  0x31   :  { %189 = vmatmul.mubr.bf16.vlgmr.msra.gmra.mrb[0].mxu0 %v337_v16  ;;  %197 = vmatmul.mubr.bf16.vlgmr.msra.gmra.mrb[0].mxu1 %v340_v17 }
 0x104   :  { %v190_v20 = vpop.f32.mrb[0].mxu0  ;;  %v198_v21 = vpop.f32.mrb[0].mxu1 }
 0x105   :  { %v205_v24 = vadd.f32 %v190_v20, %v27_v18  ;;  %v207_v25 = vadd.f32 %v198_v21, %v29_v19  ;;  %v192_v26 = vpop.f32.mrb[1].mxu0  ;;  %v200_v27 = vpop.f32.mrb[1].mxu1 }
 0x106   :  { %v193_v28 = vpop.f32.mrb[2].mxu0  ;;  %v201_v29 = vpop.f32.mrb[2].mxu1 }
 0x107   :  { %209 = vst.msk [vmem:[#allocation2] sm:$0xff] %vm22_vm0, %v205_v24  ;;  %211 = vst.msk [vmem:[#allocation2 + $0x10] sm:$0xff] %vm22_vm0, %v207_v25  ;;  %v206_v30 = vadd.f32 %v193_v28, %v28_v22  ;;  %v208_v31 = vadd.f32 %v201_v29, %v30_v23  ;;  %v195_v32 = vpop.f32.mrb[3].mxu0  ;;  %v203_v33 = vpop.f32.mrb[3].mxu1 }
 0x109   :  { %210 = vst.msk [vmem:[#allocation2 + $0x8] sm:$0xff] %vm22_vm0, %v206_v30  ;;  %212 = vst.msk [vmem:[#allocation2 + $0x18] sm:$0xff] %vm22_vm0, %v208_v31 }
 0x10e   :  { %v216_v35 = vld [vmem:[#allocation2] sm:$0xff]  ;;  %v218_v37 = vld [vmem:[#allocation2 + $0x10] sm:$0xff] }
 0x10f   :  { %v228_v38 = vmul.f32 %v289_v34, %v216_v35  ;;  %v230_v39 = vmul.f32 %v289_v34, %v218_v37 }
 0x110   :  { %v217_v40 = vld [vmem:[#allocation2 + $0x8] sm:$0xff]  ;;  %v219_v41 = vld [vmem:[#allocation2 + $0x18] sm:$0xff] }
 0x111   :  { %v238_v42 = vadd.f32 %v290_v36, %v228_v38  ;;  %v240_v43 = vadd.f32 %v290_v36, %v230_v39  ;;  %v229_v44 = vmul.f32 %v289_v34, %v217_v40  ;;  %v231_v45 = vmul.f32 %v289_v34, %v219_v41 }
 0x113   :  { %v242_v46 = vmax.f32 %v238_v42, 0.0  ;;  %v244_v47 = vmax.f32 %v240_v43, 0.0  ;;  %v239_v48 = vadd.f32 %v290_v36, %v229_v44  ;;  %v241_v49 = vadd.f32 %v290_v36, %v231_v45 }
 0x115   :  { %v295_v50 = vpack.c.bf16 %v242_v46, %v242_v46  ;;  %v297_v51 = vpack.c.bf16 %v244_v47, %v244_v47  ;;  %v243_v52 = vmax.f32 %v239_v48, 0.0  ;;  %v245_v53 = vmax.f32 %v241_v49, 0.0 }
 0x117   :  { %263 = vst.msk [vmem:[%s474_s4] sm:$0xf] %vm262_vm1, %v295_v50  ;;  %265 = vst.msk [vmem:[%s474_s4 + $0x8] sm:$0xf] %vm262_vm1, %v297_v51  ;;  %v296_v54 = vpack.c.bf16 %v243_v52, %v243_v52  ;;  %v298_v55 = vpack.c.bf16 %v245_v53, %v245_v53 }
 0x119   :  { %264 = vst.msk [vmem:[%s474_s4 + $0x4] sm:$0xf] %vm262_vm1, %v296_v54  ;;  %266 = vst.msk [vmem:[%s474_s4 + $0xc] sm:$0xf] %vm262_vm1, %v298_v55 }

// kernel: erfnet_forward.84
= control target key start
LH: loop header
LB: loop body
LE: loop exit
PB: predicated region body
PF: predicated region fallthrough
CT: control target
= control target key end

     0   :  { %vm25_vm0 = vcmask 523264   ;;  %v367_v0 = vmov 0   ;;  %v368_v2 = vmov 0.0   ;;  %vm277_vm1 = vcmask 519168   ;;  %s505_s1 = inlined_call_operand.vmem [shape: bf16[192,64], index: 1, kind: input, shape index: {}]   ;;  %s506_s0 = inlined_call_operand.vmem [shape: bf16[32,192], index: 0, kind: input, shape index: {}]   ;;  %s507_s2 = inlined_call_operand.vmem [shape: f32[1,64], index: 2, kind: input, shape index: {}]   ;;  %s508_s4 = inlined_call_operand.vmem [shape: bf16[32,64], index: 4, kind: input, shape index: {}]   ;;  %s509_s3 = inlined_call_operand.vmem [shape: f32[1,64], index: 3, kind: input, shape index: {}]   ;;  %s510_s5 = inlined_call_operand.vmem [shape: bf16[32,64], index: 5, kind: output, shape index: {}]  }
   0x1   :  { %159 = vmatprep.subr.bf16.mxu0 %v367_v0  ;;  %323 = vmatprep.subr.bf16.mxu1 %v367_v0  ;;  %v349_v1 = vld [vmem:[%s505_s1] sm:$0xff]   ;;  %26 = vst.msk [vmem:[#allocation2] sm:$0xff] %vm25_vm0, %v368_v2  ;;  %27 = vst.msk [vmem:[#allocation2 + $0x8] sm:$0xff] %vm25_vm0, %v368_v2  ;;  %v350_v3 = vld [vmem:[%s505_s1 + $0x8] sm:$0xff]  }
   0x2   :  { %28 = vst.msk [vmem:[#allocation2 + $0x10] sm:$0xff] %vm25_vm0, %v368_v2  ;;  %29 = vst.msk [vmem:[#allocation2 + $0x18] sm:$0xff] %vm25_vm0, %v368_v2  ;;  %160 = vmatpush1.bf16.msra.mxu0 %v349_v1  ;;  %335 = vmatpush1.bf16.msra.mxu1 %v349_v1  ;;  %v351_v4 = vld [vmem:[%s505_s1 + $0x10] sm:$0xff]   ;;  %v352_v5 = vld [vmem:[%s505_s1 + $0x18] sm:$0xff]  }
   0x3   :  { %161 = vmatprep.subr.bf16.mxu0 %v367_v0  ;;  %324 = vmatprep.subr.bf16.mxu1 %v367_v0  ;;  %v363_v6 = vld [vmem:[%s506_s0 + $0x4] ss:$8 sps:$4 sm:$0xff]   ;;  %v366_v8 = vld [vmem:[%s506_s0 + $0x14] ss:$8 sps:$4 sm:$0xff]   ;;  %v361_v16 = vld [vmem:[%s506_s0] ss:$8 sps:$4 sm:$0xff]  }
   0x4   :  { %v353_v7 = vld [vmem:[%s505_s1 + $0x20] sm:$0xff]   ;;  %302 = vmatprep.mubr.msk.bf16.mxu0 %vm25_vm0, %v363_v6  ;;  %303 = vmatprep.mubr.msk.bf16.mxu1 %vm25_vm0, %v366_v8  ;;  %v354_v9 = vld [vmem:[%s505_s1 + $0x28] sm:$0xff]   ;;  %v355_v10 = vld [vmem:[%s505_s1 + $0x30] sm:$0xff]  }
   0x5   :  { %v356_v11 = vld [vmem:[%s505_s1 + $0x38] sm:$0xff]   ;;  %v357_v12 = vld [vmem:[%s505_s1 + $0x40] sm:$0xff]   ;;  %v358_v13 = vld [vmem:[%s505_s1 + $0x48] sm:$0xff]  }
   0x6   :  { %162 = vmatpush1.bf16.msra.mxu0 %v350_v3  ;;  %336 = vmatpush1.bf16.msra.mxu1 %v350_v3  ;;  %v359_v14 = vld [vmem:[%s505_s1 + $0x50] sm:$0xff]   ;;  %v360_v15 = vld [vmem:[%s505_s1 + $0x58] sm:$0xff]   ;;  %v304_v34 = vld [vmem:[%s507_s2] ss:$0 sm:$0xff] }
   0x7   :  { %163 = vmatprep.subr.bf16.mxu0 %v367_v0  ;;  %325 = vmatprep.subr.bf16.mxu1 %v367_v0  ;;  %v364_v17 = vld [vmem:[%s506_s0 + $0x10] ss:$8 sps:$4 sm:$0xff]   ;;  %v315_v35 = vld [vmem:[%s508_s4] sm:$0xff]   ;;  %v322_v36 = vld [vmem:[%s508_s4 + $0x8] sm:$0xff]  }
   0x8   :  { %v30_v18 = vld [vmem:[#allocation2] sm:$0xff]  ;;  %v31_v22 = vld [vmem:[#allocation2 + $0x8] sm:$0xff]  ;;  %v316_v40 = vunpack.c.l.bf16 %v315_v35  ;;  %v320_v42 = vunpack.c.l.bf16 %v322_v36  ;;  %v317_v45 = vunpack.c.h.bf16 %v315_v35  ;;  %v321_v47 = vunpack.c.h.bf16 %v322_v36 }
   0x9   :  { %v32_v19 = vld [vmem:[#allocation2 + $0x10] sm:$0xff]  ;;  %v33_v23 = vld [vmem:[#allocation2 + $0x18] sm:$0xff]  ;;  %v305_v38 = vld [vmem:[%s509_s3] ss:$0 sm:$0xff] }
   0xa   :  { %164 = vmatpush1.bf16.msra.mxu0 %v351_v4  ;;  %337 = vmatpush1.bf16.msra.mxu1 %v351_v4 }
   0xb   :  { %165 = vmatprep.subr.bf16.mxu0 %v367_v0  ;;  %326 = vmatprep.subr.bf16.mxu1 %v367_v0 }
   0xe   :  { %166 = vmatpush1.bf16.msra.mxu0 %v352_v5  ;;  %338 = vmatpush1.bf16.msra.mxu1 %v352_v5 }
   0xf   :  { %167 = vmatprep.subr.bf16.mxu0 %v367_v0  ;;  %327 = vmatprep.subr.bf16.mxu1 %v367_v0 }
  0x12   :  { %168 = vmatpush1.bf16.msra.mxu0 %v353_v7  ;;  %339 = vmatpush1.bf16.msra.mxu1 %v353_v7 }
  0x13   :  { %169 = vmatprep.subr.bf16.mxu0 %v367_v0  ;;  %328 = vmatprep.subr.bf16.mxu1 %v367_v0 }
  0x16   :  { %170 = vmatpush1.bf16.msra.mxu0 %v354_v9  ;;  %340 = vmatpush1.bf16.msra.mxu1 %v354_v9 }
  0x17   :  { %171 = vmatprep.subr.bf16.mxu0 %v367_v0  ;;  %329 = vmatprep.subr.bf16.mxu1 %v367_v0 }
  0x1a   :  { %172 = vmatpush1.bf16.msra.mxu0 %v355_v10  ;;  %341 = vmatpush1.bf16.msra.mxu1 %v355_v10 }
  0x1b   :  { %173 = vmatprep.subr.bf16.mxu0 %v367_v0  ;;  %330 = vmatprep.subr.bf16.mxu1 %v367_v0 }
  0x1e   :  { %174 = vmatpush1.bf16.msra.mxu0 %v356_v11  ;;  %342 = vmatpush1.bf16.msra.mxu1 %v356_v11 }
  0x1f   :  { %175 = vmatprep.subr.bf16.mxu0 %v367_v0  ;;  %331 = vmatprep.subr.bf16.mxu1 %v367_v0 }
  0x22   :  { %176 = vmatpush1.bf16.msra.mxu0 %v357_v12  ;;  %343 = vmatpush1.bf16.msra.mxu1 %v357_v12 }
  0x23   :  { %177 = vmatprep.subr.bf16.mxu0 %v367_v0  ;;  %332 = vmatprep.subr.bf16.mxu1 %v367_v0 }
  0x26   :  { %178 = vmatpush1.bf16.msra.mxu0 %v358_v13  ;;  %344 = vmatpush1.bf16.msra.mxu1 %v358_v13 }
  0x27   :  { %179 = vmatprep.subr.bf16.mxu0 %v367_v0  ;;  %333 = vmatprep.subr.bf16.mxu1 %v367_v0 }
  0x2a   :  { %180 = vmatpush1.bf16.msra.mxu0 %v359_v14  ;;  %345 = vmatpush1.bf16.msra.mxu1 %v359_v14 }
  0x2b   :  { %181 = vmatprep.subr.bf16.mxu0 %v367_v0  ;;  %334 = vmatprep.subr.bf16.mxu1 %v367_v0 }
  0x2e   :  { %182 = vmatpush1.bf16.msra.mxu0 %v360_v15  ;;  %346 = vmatpush1.bf16.msra.mxu1 %v360_v15 }
  0x31   :  { %192 = vmatmul.mubr.bf16.vlgmr.msra.gmra.mrb[0].mxu0 %v361_v16  ;;  %200 = vmatmul.mubr.bf16.vlgmr.msra.gmra.mrb[0].mxu1 %v364_v17 }
 0x104   :  { %v193_v20 = vpop.f32.mrb[0].mxu0  ;;  %v201_v21 = vpop.f32.mrb[0].mxu1 }
 0x105   :  { %v208_v24 = vadd.f32 %v193_v20, %v30_v18  ;;  %v210_v25 = vadd.f32 %v201_v21, %v32_v19  ;;  %v195_v26 = vpop.f32.mrb[1].mxu0  ;;  %v203_v27 = vpop.f32.mrb[1].mxu1 }
 0x106   :  { %v196_v28 = vpop.f32.mrb[2].mxu0  ;;  %v204_v29 = vpop.f32.mrb[2].mxu1 }
 0x107   :  { %212 = vst.msk [vmem:[#allocation2] sm:$0xff] %vm25_vm0, %v208_v24  ;;  %214 = vst.msk [vmem:[#allocation2 + $0x10] sm:$0xff] %vm25_vm0, %v210_v25  ;;  %v209_v30 = vadd.f32 %v196_v28, %v31_v22  ;;  %v211_v31 = vadd.f32 %v204_v29, %v33_v23  ;;  %v198_v32 = vpop.f32.mrb[3].mxu0  ;;  %v206_v33 = vpop.f32.mrb[3].mxu1 }
 0x109   :  { %213 = vst.msk [vmem:[#allocation2 + $0x8] sm:$0xff] %vm25_vm0, %v209_v30  ;;  %215 = vst.msk [vmem:[#allocation2 + $0x18] sm:$0xff] %vm25_vm0, %v211_v31 }
 0x10e   :  { %v219_v37 = vld [vmem:[#allocation2] sm:$0xff]  ;;  %v221_v39 = vld [vmem:[#allocation2 + $0x10] sm:$0xff] }
 0x10f   :  { %v235_v41 = vmul.f32 %v304_v34, %v219_v37  ;;  %v237_v43 = vmul.f32 %v304_v34, %v221_v39 }
 0x110   :  { %v220_v44 = vld [vmem:[#allocation2 + $0x8] sm:$0xff]  ;;  %v222_v46 = vld [vmem:[#allocation2 + $0x18] sm:$0xff] }
 0x111   :  { %v245_v48 = vadd.f32 %v305_v38, %v235_v41  ;;  %v247_v49 = vadd.f32 %v305_v38, %v237_v43  ;;  %v236_v50 = vmul.f32 %v304_v34, %v220_v44  ;;  %v238_v51 = vmul.f32 %v304_v34, %v222_v46 }
 0x113   :  { %v253_v52 = vadd.f32 %v316_v40, %v245_v48  ;;  %v255_v53 = vadd.f32 %v320_v42, %v247_v49  ;;  %v246_v54 = vadd.f32 %v305_v38, %v236_v50  ;;  %v248_v55 = vadd.f32 %v305_v38, %v238_v51 }
 0x115   :  { %v257_v56 = vmax.f32 %v253_v52, 0.0  ;;  %v259_v57 = vmax.f32 %v255_v53, 0.0  ;;  %v254_v58 = vadd.f32 %v317_v45, %v246_v54  ;;  %v256_v59 = vadd.f32 %v321_v47, %v248_v55 }
 0x117   :  { %v310_v60 = vpack.c.bf16 %v257_v56, %v257_v56  ;;  %v312_v61 = vpack.c.bf16 %v259_v57, %v259_v57  ;;  %v258_v62 = vmax.f32 %v254_v58, 0.0  ;;  %v260_v63 = vmax.f32 %v256_v59, 0.0 }
 0x119   :  { %278 = vst.msk [vmem:[%s510_s5] sm:$0xf] %vm277_vm1, %v310_v60  ;;  %280 = vst.msk [vmem:[%s510_s5 + $0x8] sm:$0xf] %vm277_vm1, %v312_v61  ;;  %v311_v0 = vpack.c.bf16 %v258_v62, %v258_v62  ;;  %v313_v1 = vpack.c.bf16 %v260_v63, %v260_v63 }
 0x11b   :  { %279 = vst.msk [vmem:[%s510_s5 + $0x4] sm:$0xf] %vm277_vm1, %v311_v0  ;;  %281 = vst.msk [vmem:[%s510_s5 + $0xc] sm:$0xf] %vm277_vm1, %v313_v1 }

// kernel: erfnet_forward.101
= control target key start
LH: loop header
LB: loop body
LE: loop exit
PB: predicated region body
PF: predicated region fallthrough
CT: control target
= control target key end

     0   :  { %vm22_vm0 = vcmask 523264   ;;  %v635_v1 = vmov 0.0   ;;  %vm636_vm1 = vmmov 0   ;;  %vm481_vm2 = vcmask 519168   ;;  %s797_s1 = inlined_call_operand.vmem [shape: bf16[576,64], index: 1, kind: input, shape index: {}]   ;;  %s798_s0 = inlined_call_operand.vmem [shape: bf16[8,576], index: 0, kind: input, shape index: {}]   ;;  %s799_s2 = inlined_call_operand.vmem [shape: f32[1,64], index: 2, kind: input, shape index: {}]   ;;  %s800_s3 = inlined_call_operand.vmem [shape: f32[1,64], index: 3, kind: input, shape index: {}]   ;;  %s801_s4 = inlined_call_operand.vmem [shape: bf16[8,64], index: 4, kind: output, shape index: {}]  }
   0x1   :  { %v594_v0 = vld [vmem:[%s797_s1 + $0x40] sm:$0xff]   ;;  %23 = vst.msk [vmem:[#allocation2] sm:$0xff] %vm22_vm0, %v635_v1  ;;  %v598_v5 = vld [vmem:[%s797_s1 + $0x48] sm:$0xff]   ;;  %v602_v9 = vld [vmem:[%s797_s1 + $0x50] sm:$0xff]  }
   0x2   :  { %v595_v2 = vld [vmem:[%s797_s1 + $0xc0] sm:$0xff]   ;;  %531 = vmatprep.subr.bf16.mxu0 %v594_v0  ;;  %v599_v6 = vld [vmem:[%s797_s1 + $0xc8] sm:$0xff]   ;;  %v603_v10 = vld [vmem:[%s797_s1 + $0xd0] sm:$0xff]  }
   0x3   :  { %v596_v3 = vld [vmem:[%s797_s1] sm:$0xff]   ;;  %553 = vmatprep.subr.bf16.mxu1 %v595_v2  ;;  %v600_v7 = vld [vmem:[%s797_s1 + $0x8] sm:$0xff]   ;;  %v604_v11 = vld [vmem:[%s797_s1 + $0x10] sm:$0xff]  }
   0x4   :  { %v597_v4 = vld [vmem:[%s797_s1 + $0x80] sm:$0xff]   ;;  %532 = vmatpush3.bf16.msra.mxu0 %v596_v3  ;;  %v601_v8 = vld [vmem:[%s797_s1 + $0x88] sm:$0xff]   ;;  %v605_v12 = vld [vmem:[%s797_s1 + $0x90] sm:$0xff]  }
   0x5   :  { %554 = vmatpush3.bf16.msra.mxu1 %v597_v4  ;;  %533 = vmatprep.subr.bf16.mxu0 %v598_v5  ;;  %v606_v13 = vld [vmem:[%s797_s1 + $0x58] sm:$0xff]   ;;  %v610_v17 = vld [vmem:[%s797_s1 + $0x60] sm:$0xff]   ;;  %v614_v21 = vld [vmem:[%s797_s1 + $0x68] sm:$0xff]  }
   0x6   :  { %555 = vmatprep.subr.bf16.mxu1 %v599_v6  ;;  %v607_v14 = vld [vmem:[%s797_s1 + $0xd8] sm:$0xff]   ;;  %v611_v18 = vld [vmem:[%s797_s1 + $0xe0] sm:$0xff]   ;;  %v615_v22 = vld [vmem:[%s797_s1 + $0xe8] sm:$0xff]  }
   0x7   :  { %v608_v15 = vld [vmem:[%s797_s1 + $0x18] sm:$0xff]   ;;  %v612_v19 = vld [vmem:[%s797_s1 + $0x20] sm:$0xff]   ;;  %v616_v23 = vld [vmem:[%s797_s1 + $0x28] sm:$0xff]  }
   0x8   :  { %534 = vmatpush3.bf16.msra.mxu0 %v600_v7  ;;  %v609_v16 = vld [vmem:[%s797_s1 + $0x98] sm:$0xff]   ;;  %v613_v20 = vld [vmem:[%s797_s1 + $0xa0] sm:$0xff]   ;;  %v617_v24 = vld [vmem:[%s797_s1 + $0xa8] sm:$0xff]  }
   0x9   :  { %556 = vmatpush3.bf16.msra.mxu1 %v601_v8  ;;  %535 = vmatprep.subr.bf16.mxu0 %v602_v9  ;;  %v618_v25 = vld [vmem:[%s797_s1 + $0x70] sm:$0xff]   ;;  %v622_v29 = vld [vmem:[%s797_s1 + $0x78] sm:$0xff]   ;;  %v25_v33 = vld [vmem:[%s798_s0] sm:$0xff] }
   0xa   :  { %557 = vmatprep.subr.bf16.mxu1 %v603_v10  ;;  %v619_v26 = vld [vmem:[%s797_s1 + $0xf0] sm:$0xff]   ;;  %v623_v30 = vld [vmem:[%s797_s1 + $0xf8] sm:$0xff]   ;;  %v487_v34 = vcombine.low %v25_v33, %v25_v33  ;;  %v488_v35 = vcombine.high %v25_v33, %v25_v33  ;;  %v26_v36 = vld [vmem:[%s798_s0 + $0x8] sm:$0xff] }
   0xb   :  { %v620_v27 = vld [vmem:[%s797_s1 + $0x30] sm:$0xff]   ;;  %v624_v31 = vld [vmem:[%s797_s1 + $0x38] sm:$0xff]   ;;  %v489_v37 = vcombine.low %v26_v36, %v26_v36  ;;  %v490_v38 = vcombine.high %v26_v36, %v26_v36  ;;  %v631_v39 = vld [vmem:[%s797_s1 + $0x100] sm:$0xff]  }
   0xc   :  { %536 = vmatpush3.bf16.msra.mxu0 %v604_v11  ;;  %v621_v28 = vld [vmem:[%s797_s1 + $0xb0] sm:$0xff]   ;;  %v625_v32 = vld [vmem:[%s797_s1 + $0xb8] sm:$0xff]   ;;  %369 = vmatprep.mubr.bf16.mxu0 %v488_v35  ;;  %v632_v40 = vld [vmem:[%s797_s1 + $0x108] sm:$0xff]  }
   0xd   :  { %558 = vmatpush3.bf16.msra.mxu1 %v605_v12  ;;  %537 = vmatprep.subr.bf16.mxu0 %v606_v13  ;;  %v633_v41 = vld [vmem:[%s797_s1 + $0x110] sm:$0xff]   ;;  %v634_v42 = vld [vmem:[%s797_s1 + $0x118] sm:$0xff]   ;;  %v24_v55 = vld [vmem:[#allocation2] sm:$0xff] }
   0xe   :  { %559 = vmatprep.subr.bf16.mxu1 %v607_v14  ;;  %409 = vmatprep.mubr.bf16.mxu1 %v490_v38  ;;  %v628_v43 = vld [vmem:[%s798_s0 + $0x10] ss:$0 sps:$4 sm:$0xff]   ;;  %v529_v62 = vld [vmem:[%s799_s2] ss:$0 sm:$0xff] }
   0xf   :  { %v530_v0 = vld [vmem:[%s800_s3] ss:$0 sm:$0xff] }
  0x10   :  { %538 = vmatpush3.bf16.msra.mxu0 %v608_v15 }
  0x11   :  { %560 = vmatpush3.bf16.msra.mxu1 %v609_v16  ;;  %539 = vmatprep.subr.bf16.mxu0 %v610_v17 }
  0x12   :  { %561 = vmatprep.subr.bf16.mxu1 %v611_v18 }
  0x14   :  { %540 = vmatpush3.bf16.msra.mxu0 %v612_v19 }
  0x15   :  { %562 = vmatpush3.bf16.msra.mxu1 %v613_v20  ;;  %541 = vmatprep.subr.bf16.mxu0 %v614_v21 }
  0x16   :  { %563 = vmatprep.subr.bf16.mxu1 %v615_v22 }
  0x18   :  { %542 = vmatpush3.bf16.msra.mxu0 %v616_v23 }
  0x19   :  { %564 = vmatpush3.bf16.msra.mxu1 %v617_v24  ;;  %543 = vmatprep.subr.bf16.mxu0 %v618_v25 }
  0x1a   :  { %565 = vmatprep.subr.bf16.mxu1 %v619_v26 }
  0x1c   :  { %544 = vmatpush3.bf16.msra.mxu0 %v620_v27 }
  0x1d   :  { %566 = vmatpush3.bf16.msra.mxu1 %v621_v28  ;;  %545 = vmatprep.subr.bf16.mxu0 %v622_v29 }
  0x1e   :  { %567 = vmatprep.subr.bf16.mxu1 %v623_v30 }
  0x20   :  { %546 = vmatpush3.bf16.msra.mxu0 %v624_v31 }
  0x21   :  { %568 = vmatpush3.bf16.msra.mxu1 %v625_v32  ;;  %580 = vmatprep.subr.bf16.mxu0 %v635_v1 }
  0x23   :  { %370 = vmatmul.mubr.bf16.vlgmr.msra.gmra.mrb[0].mxu0 %v487_v34 }
  0x24   :  { %410 = vmatmul.mubr.bf16.vlgmr.msra.gmra.mrb[0].mxu1 %v489_v37  ;;  %581 = vmatpush3.bf16.msra.mxu0 %v631_v39 }
  0x25   :  { %582 = vmatprep.subr.bf16.mxu0 %v635_v1  ;;  %588 = vmatprep.mubr.msk.bf16.mxu0 %vm636_vm1, %v635_v1 }
  0x28   :  { %583 = vmatpush3.bf16.msra.mxu0 %v632_v40 }
  0x29   :  { %584 = vmatprep.subr.bf16.mxu0 %v635_v1 }
  0x2c   :  { %585 = vmatpush3.bf16.msra.mxu0 %v633_v41 }
  0x2d   :  { %586 = vmatprep.subr.bf16.mxu0 %v635_v1 }
  0x30   :  { %587 = vmatpush3.bf16.msra.mxu0 %v634_v42 }
  0x33   :  { %589 = vmatmul.mubr.msk.bf16.vlgmr.msra.gmra.mrb[4].mxu0 %vm22_vm0, %v628_v43 }
  0xf6   :  { %v547_v44 = vpop.f32.mrb[0].mxu0 }
  0xf7   :  { %v569_v45 = vpop.f32.mrb[0].mxu1  ;;  %v548_v46 = vpop.f32.mrb[1].mxu0 }
  0xf8   :  { %v549_v47 = vadd.f32 %v548_v46, %v547_v44  ;;  %v570_v48 = vpop.f32.mrb[1].mxu1  ;;  %v550_v49 = vpop.f32.mrb[2].mxu0 }
  0xf9   :  { %v571_v50 = vadd.f32 %v570_v48, %v569_v45  ;;  %v551_v51 = vpop.f32.mrb[3].mxu0  ;;  %v572_v52 = vpop.f32.mrb[2].mxu1 }
  0xfa   :  { %v573_v53 = vpop.f32.mrb[3].mxu1 }
  0xfb   :  { %v412_v54 = vadd.f32 %v571_v50, %v549_v47 }
 0x106   :  { %v451_v56 = vpop.f32.mrb[4].mxu0 }
 0x107   :  { %v452_v57 = vadd.f32 %v451_v56, %v412_v54  ;;  %v590_v58 = vpop.f32.mrb[5].mxu0 }
 0x108   :  { %v454_v59 = vpop.f32.mrb[6].mxu0 }
 0x109   :  { %v457_v60 = vadd.f32 %v452_v57, %v24_v55  ;;  %v591_v61 = vpop.f32.mrb[7].mxu0 }
 0x10b   :  { %458 = vst.msk [vmem:[#allocation2] sm:$0xff] %vm22_vm0, %v457_v60 }
 0x112   :  { %v462_v63 = vld [vmem:[#allocation2] sm:$0xff] }
 0x113   :  { %v471_v1 = vmul.f32 %v529_v62, %v462_v63 }
 0x115   :  { %v478_v2 = vadd.f32 %v530_v0, %v471_v1 }
 0x117   :  { %v479_v3 = vmax.f32 %v478_v2, 0.0 }
 0x119   :  { %v480_v4 = vpack.c.bf16 %v479_v3, %v479_v3 }
 0x11b   :  { %482 = vst.msk [vmem:[%s801_s4] sm:$0xf] %vm481_vm2, %v480_v4 }

// kernel: erfnet_forward.102
= control target key start
LH: loop header
LB: loop body
LE: loop exit
PB: predicated region body
PF: predicated region fallthrough
CT: control target
= control target key end

     0   :  { %vm49_vm0 = vcmask 519168   ;;  %s113_s0 = inlined_call_operand.vmem [shape: bf16[8,64], index: 0, kind: input, shape index: {}]   ;;  %s114_s1 = inlined_call_operand.vmem [shape: bf16[8,64], index: 1, kind: input, shape index: {}]   ;;  %s115_s2 = inlined_call_operand.vmem [shape: bf16[8,64], index: 2, kind: input, shape index: {}]   ;;  %s116_s3 = inlined_call_operand.vmem [shape: bf16[8,64], index: 3, kind: input, shape index: {}]   ;;  %s117_s4 = inlined_call_operand.vmem [shape: f32[1,64], index: 4, kind: input, shape index: {}]   ;;  %s118_s5 = inlined_call_operand.vmem [shape: f32[1,64], index: 5, kind: input, shape index: {}]   ;;  %s119_s6 = inlined_call_operand.vmem [shape: bf16[8,64], index: 6, kind: output, shape index: {}]  }
   0x1   :  { %v23_v0 = vld [vmem:[%s113_s0] sm:$0xf] }
   0x2   :  { %v24_v1 = vld [vmem:[%s114_s1] sm:$0xf] }
   0x3   :  { %v26_v2 = vld [vmem:[%s115_s2] sm:$0xf]  ;;  %v25_v3 = vmax.bf16 %v24_v1, %v23_v0 }
   0x4   :  { %v27_v4 = vld [vmem:[%s116_s3] sm:$0xf] }
   0x5   :  { %v28_v5 = vmax.bf16 %v27_v4, %v26_v2  ;;  %v55_v7 = vld [vmem:[%s117_s4] ss:$0 sm:$0xff] }
   0x6   :  { %v56_v9 = vld [vmem:[%s118_s5] ss:$0 sm:$0xff] }
   0x7   :  { %v29_v6 = vmax.bf16 %v28_v5, %v25_v3 }
   0x9   :  { %v30_v8 = vunpack.c.l.bf16 %v29_v6 }
   0xb   :  { %v38_v10 = vmul.f32 %v55_v7, %v30_v8 }
   0xd   :  { %v46_v11 = vadd.f32 %v56_v9, %v38_v10 }
   0xf   :  { %v47_v12 = vmax.f32 %v46_v11, 0.0 }
  0x11   :  { %v48_v13 = vpack.c.bf16 %v47_v12, %v47_v12 }
  0x13   :  { %50 = vst.msk [vmem:[%s119_s6] sm:$0xf] %vm49_vm0, %v48_v13 }

// kernel: erfnet_forward.103
= control target key start
LH: loop header
LB: loop body
LE: loop exit
PB: predicated region body
PF: predicated region fallthrough
CT: control target
= control target key end

     0   :  { %v447_v1 = vmov 0.0   ;;  %vm448_vm0 = vmmov 0   ;;  %s561_s1 = inlined_call_operand.vmem [shape: bf16[384,128], index: 1, kind: input, shape index: {}]   ;;  %s562_s0 = inlined_call_operand.vmem [shape: bf16[8,384], index: 0, kind: input, shape index: {}]   ;;  %s563_s2 = inlined_call_operand.vmem [shape: f32[1,128], index: 2, kind: input, shape index: {}]   ;;  %s564_s3 = inlined_call_operand.vmem [shape: f32[1,128], index: 3, kind: input, shape index: {}]   ;;  %s565_s4 = inlined_call_operand.vmem [shape: bf16[8,128], index: 4, kind: output, shape index: {}]  }
   0x1   :  { %v420_v0 = vld [vmem:[%s561_s1 + $0x40] sm:$0xff]   ;;  %398 = vmatprep.subr.bf16.mxu1 %v447_v1  ;;  %414 = vmatprep.mubr.msk.bf16.mxu1 %vm448_vm0, %v447_v1  ;;  %v423_v4 = vld [vmem:[%s561_s1 + $0x48] sm:$0xff]   ;;  %v426_v7 = vld [vmem:[%s561_s1 + $0x50] sm:$0xff]  }
   0x2   :  { %v421_v2 = vld [vmem:[%s561_s1] sm:$0xff]   ;;  %367 = vmatprep.subr.bf16.mxu0 %v420_v0  ;;  %v424_v5 = vld [vmem:[%s561_s1 + $0x8] sm:$0xff]   ;;  %v427_v8 = vld [vmem:[%s561_s1 + $0x10] sm:$0xff]  }
   0x3   :  { %v422_v3 = vld [vmem:[%s561_s1 + $0x80] sm:$0xff]   ;;  %368 = vmatpush3.bf16.msra.mxu0 %v421_v2  ;;  %v425_v6 = vld [vmem:[%s561_s1 + $0x88] sm:$0xff]   ;;  %v428_v9 = vld [vmem:[%s561_s1 + $0x90] sm:$0xff]  }
   0x4   :  { %399 = vmatpush3.bf16.msra.mxu1 %v422_v3  ;;  %369 = vmatprep.subr.bf16.mxu0 %v423_v4  ;;  %v429_v10 = vld [vmem:[%s561_s1 + $0x58] sm:$0xff]   ;;  %v432_v13 = vld [vmem:[%s561_s1 + $0x60] sm:$0xff]   ;;  %v435_v16 = vld [vmem:[%s561_s1 + $0x68] sm:$0xff]  }
   0x5   :  { %400 = vmatprep.subr.bf16.mxu1 %v447_v1  ;;  %v430_v11 = vld [vmem:[%s561_s1 + $0x18] sm:$0xff]   ;;  %v433_v14 = vld [vmem:[%s561_s1 + $0x20] sm:$0xff]   ;;  %v436_v17 = vld [vmem:[%s561_s1 + $0x28] sm:$0xff]  }
   0x6   :  { %v431_v12 = vld [vmem:[%s561_s1 + $0x98] sm:$0xff]   ;;  %v434_v15 = vld [vmem:[%s561_s1 + $0xa0] sm:$0xff]   ;;  %v437_v18 = vld [vmem:[%s561_s1 + $0xa8] sm:$0xff]  }
   0x7   :  { %370 = vmatpush3.bf16.msra.mxu0 %v424_v5  ;;  %v438_v19 = vld [vmem:[%s561_s1 + $0x70] sm:$0xff]   ;;  %v441_v22 = vld [vmem:[%s561_s1 + $0x78] sm:$0xff]   ;;  %v24_v23 = vld [vmem:[%s562_s0] sm:$0xff] }
   0x8   :  { %401 = vmatpush3.bf16.msra.mxu1 %v425_v6  ;;  %371 = vmatprep.subr.bf16.mxu0 %v426_v7  ;;  %v439_v20 = vld [vmem:[%s561_s1 + $0x30] sm:$0xff]   ;;  %v339_v24 = vcombine.high %v24_v23, %v24_v23  ;;  %v442_v25 = vld [vmem:[%s561_s1 + $0x38] sm:$0xff]   ;;  %v338_v27 = vcombine.low %v24_v23, %v24_v23  ;;  %v446_v28 = vld [vmem:[%s562_s0 + $0x8] ss:$0 sps:$4 sm:$0xff]  }
   0x9   :  { %402 = vmatprep.subr.bf16.mxu1 %v447_v1  ;;  %v440_v21 = vld [vmem:[%s561_s1 + $0xb0] sm:$0xff]   ;;  %v443_v26 = vld [vmem:[%s561_s1 + $0xb8] sm:$0xff]   ;;  %v365_v35 = vld [vmem:[%s563_s2] ss:$0 sm:$0xff] }
   0xa   :  { %261 = vmatprep.mubr.bf16.mxu0 %v339_v24  ;;  %v366_v40 = vld [vmem:[%s564_s3] ss:$0 sm:$0xff] }
   0xb   :  { %372 = vmatpush3.bf16.msra.mxu0 %v427_v8 }
   0xc   :  { %403 = vmatpush3.bf16.msra.mxu1 %v428_v9  ;;  %373 = vmatprep.subr.bf16.mxu0 %v429_v10 }
   0xd   :  { %404 = vmatprep.subr.bf16.mxu1 %v447_v1 }
   0xf   :  { %374 = vmatpush3.bf16.msra.mxu0 %v430_v11 }
  0x10   :  { %405 = vmatpush3.bf16.msra.mxu1 %v431_v12  ;;  %375 = vmatprep.subr.bf16.mxu0 %v432_v13 }
  0x11   :  { %406 = vmatprep.subr.bf16.mxu1 %v447_v1 }
  0x13   :  { %376 = vmatpush3.bf16.msra.mxu0 %v433_v14 }
  0x14   :  { %407 = vmatpush3.bf16.msra.mxu1 %v434_v15  ;;  %377 = vmatprep.subr.bf16.mxu0 %v435_v16 }
  0x15   :  { %408 = vmatprep.subr.bf16.mxu1 %v447_v1 }
  0x17   :  { %378 = vmatpush3.bf16.msra.mxu0 %v436_v17 }
  0x18   :  { %409 = vmatpush3.bf16.msra.mxu1 %v437_v18  ;;  %379 = vmatprep.subr.bf16.mxu0 %v438_v19 }
  0x19   :  { %410 = vmatprep.subr.bf16.mxu1 %v447_v1 }
  0x1b   :  { %380 = vmatpush3.bf16.msra.mxu0 %v439_v20 }
  0x1c   :  { %411 = vmatpush3.bf16.msra.mxu1 %v440_v21  ;;  %381 = vmatprep.subr.bf16.mxu0 %v441_v22 }
  0x1d   :  { %412 = vmatprep.subr.bf16.mxu1 %v447_v1 }
  0x1f   :  { %382 = vmatpush3.bf16.msra.mxu0 %v442_v25 }
  0x20   :  { %413 = vmatpush3.bf16.msra.mxu1 %v443_v26 }
  0x22   :  { %262 = vmatmul.mubr.bf16.vlgmr.msra.gmra.mrb[0].mxu0 %v338_v27 }
  0x23   :  { %415 = vmatmul.mubr.bf16.vlgmr.msra.gmra.mrb[0].mxu1 %v446_v28 }
  0xf5   :  { %v383_v29 = vpop.f32.mrb[0].mxu0 }
  0xf6   :  { %v303_v30 = vpop.f32.mrb[0].mxu1  ;;  %v384_v31 = vpop.f32.mrb[1].mxu0 }
  0xf7   :  { %v385_v32 = vadd.f32 %v384_v31, %v383_v29  ;;  %v416_v33 = vpop.f32.mrb[1].mxu1  ;;  %v386_v34 = vpop.f32.mrb[2].mxu0 }
  0xf8   :  { %v306_v36 = vpop.f32.mrb[2].mxu1  ;;  %v387_v37 = vpop.f32.mrb[3].mxu0 }
  0xf9   :  { %v304_v38 = vadd.f32 %v385_v32, %v303_v30  ;;  %v417_v39 = vpop.f32.mrb[3].mxu1 }
  0xfb   :  { %v323_v41 = vmul.f32 %v365_v35, %v304_v38 }
  0xfd   :  { %v330_v42 = vadd.f32 %v366_v40, %v323_v41 }
  0xff   :  { %v331_v43 = vmax.f32 %v330_v42, 0.0 }
 0x101   :  { %v332_v44 = vpack.c.bf16 %v331_v43, %v331_v43 }
 0x103   :  { %333 = vst [vmem:[%s565_s4] sm:$0xf] %v332_v44 }

// kernel: tile.28
= control target key start
LH: loop header
LB: loop body
LE: loop exit
PB: predicated region body
PF: predicated region fallthrough
CT: control target
= control target key end

     0   :  { %s22_s0 = inlined_call_operand.vmem [shape: f32[64], index: 0, kind: input, shape index: {}]   ;;  %s23_s1 = inlined_call_operand.vmem [shape: f32[4,64], index: 1, kind: output, shape index: {}]  }
   0x1   :  { %v4_v0 = vld [vmem:[%s22_s0] ss:$0 sm:$0xff] }
   0x2   :  { %5 = vst [vmem:[%s23_s1] sm:$0xf] %v4_v0 }

// kernel: tile.33
= control target key start
LH: loop header
LB: loop body
LE: loop exit
PB: predicated region body
PF: predicated region fallthrough
CT: control target
= control target key end

     0   :  { %s6_s8 = smov 3  ;;  %vm8_vm0 = vcmask 523264   ;;  %s30_s9 = smov 64   ;;  %vm15_vm1 = vcmask 1048064   ;;  %s50_s0 = inlined_call_operand.vmem [shape: f32[4,64], index: 0, kind: input, shape index: {}]   ;;  %s51_s1 = inlined_call_operand.vmem [shape: f32[1,256], index: 1, kind: output, shape index: {}]  }
   0x1   :  { %v4_v0 = vld [vmem:[%s50_s0] sm:$0xf]  ;;  %s11_s0 = smov 3 }
   0x2   :  { %5 = vst [vmem:[#allocation1] sm:$0xf] %v4_v0 }
   0x9   :  { %v12_v1 = vld [vmem:[#allocation1 + $0x1] ss:$2 sm:%s11_s0]   ;;  %v7_v2 = vld [vmem:[#allocation1] ss:$2 sm:%s6_s8]  }
   0xa   :  { %13 = vrot.lane.b32.xlu0 %v12_v1, %s30_s9  ;;  %9 = vst.msk [vmem:[#allocation0] ss:$8 sm:$0x3] %vm8_vm0, %v7_v2  }
  0x7c   :  { %v14_v3 = vpop.permute.xlu0 %13  }
  0x7d   :  { %16 = vst.msk [vmem:[#allocation0] ss:$8 sm:$0x3] %vm15_vm1, %v14_v3  }
  0x84   :  { %v20_v4 = vld [vmem:[#allocation0] sm:$0x1]  ;;  %v24_v5 = vld [vmem:[#allocation0 + $0x8] sm:$0x1] }
  0x85   :  { %22 = vst [vmem:[%s51_s1] sm:$0x1] %v20_v4  ;;  %28 = vst [vmem:[%s51_s1 + $0x1] sm:$0x1] %v24_v5 }

// kernel: erfnet_forward.106
= control target key start
LH: loop header
LB: loop body
LE: loop exit
PB: predicated region body
PF: predicated region fallthrough
CT: control target
= control target key end

     0   :  { %v453_v1 = vmov 0.0   ;;  %vm454_vm0 = vmmov 0   ;;  %s575_s1 = inlined_call_operand.vmem [shape: bf16[384,128], index: 1, kind: input, shape index: {}]   ;;  %s576_s0 = inlined_call_operand.vmem [shape: bf16[8,384], index: 0, kind: input, shape index: {}]   ;;  %s577_s2 = inlined_call_operand.vmem [shape: f32[1,128], index: 2, kind: input, shape index: {}]   ;;  %s578_s4 = inlined_call_operand.vmem [shape: bf16[8,128], index: 4, kind: input, shape index: {}]   ;;  %s579_s3 = inlined_call_operand.vmem [shape: f32[1,128], index: 3, kind: input, shape index: {}]   ;;  %s580_s5 = inlined_call_operand.vmem [shape: bf16[8,128], index: 5, kind: output, shape index: {}]  }
   0x1   :  { %v426_v0 = vld [vmem:[%s575_s1 + $0x40] sm:$0xff]   ;;  %404 = vmatprep.subr.bf16.mxu1 %v453_v1  ;;  %420 = vmatprep.mubr.msk.bf16.mxu1 %vm454_vm0, %v453_v1  ;;  %v429_v4 = vld [vmem:[%s575_s1 + $0x48] sm:$0xff]   ;;  %v432_v7 = vld [vmem:[%s575_s1 + $0x50] sm:$0xff]  }
   0x2   :  { %v427_v2 = vld [vmem:[%s575_s1] sm:$0xff]   ;;  %373 = vmatprep.subr.bf16.mxu0 %v426_v0  ;;  %v430_v5 = vld [vmem:[%s575_s1 + $0x8] sm:$0xff]   ;;  %v433_v8 = vld [vmem:[%s575_s1 + $0x10] sm:$0xff]  }
   0x3   :  { %v428_v3 = vld [vmem:[%s575_s1 + $0x80] sm:$0xff]   ;;  %374 = vmatpush3.bf16.msra.mxu0 %v427_v2  ;;  %v431_v6 = vld [vmem:[%s575_s1 + $0x88] sm:$0xff]   ;;  %v434_v9 = vld [vmem:[%s575_s1 + $0x90] sm:$0xff]  }
   0x4   :  { %405 = vmatpush3.bf16.msra.mxu1 %v428_v3  ;;  %375 = vmatprep.subr.bf16.mxu0 %v429_v4  ;;  %v435_v10 = vld [vmem:[%s575_s1 + $0x58] sm:$0xff]   ;;  %v438_v13 = vld [vmem:[%s575_s1 + $0x60] sm:$0xff]   ;;  %v441_v16 = vld [vmem:[%s575_s1 + $0x68] sm:$0xff]  }
   0x5   :  { %406 = vmatprep.subr.bf16.mxu1 %v453_v1  ;;  %v436_v11 = vld [vmem:[%s575_s1 + $0x18] sm:$0xff]   ;;  %v439_v14 = vld [vmem:[%s575_s1 + $0x20] sm:$0xff]   ;;  %v442_v17 = vld [vmem:[%s575_s1 + $0x28] sm:$0xff]  }
   0x6   :  { %v437_v12 = vld [vmem:[%s575_s1 + $0x98] sm:$0xff]   ;;  %v440_v15 = vld [vmem:[%s575_s1 + $0xa0] sm:$0xff]   ;;  %v443_v18 = vld [vmem:[%s575_s1 + $0xa8] sm:$0xff]  }
   0x7   :  { %376 = vmatpush3.bf16.msra.mxu0 %v430_v5  ;;  %v444_v19 = vld [vmem:[%s575_s1 + $0x70] sm:$0xff]   ;;  %v447_v22 = vld [vmem:[%s575_s1 + $0x78] sm:$0xff]   ;;  %v27_v23 = vld [vmem:[%s576_s0] sm:$0xff] }
   0x8   :  { %407 = vmatpush3.bf16.msra.mxu1 %v431_v6  ;;  %377 = vmatprep.subr.bf16.mxu0 %v432_v7  ;;  %v445_v20 = vld [vmem:[%s575_s1 + $0x30] sm:$0xff]   ;;  %v345_v24 = vcombine.high %v27_v23, %v27_v23  ;;  %v448_v25 = vld [vmem:[%s575_s1 + $0x38] sm:$0xff]   ;;  %v344_v27 = vcombine.low %v27_v23, %v27_v23  ;;  %v452_v28 = vld [vmem:[%s576_s0 + $0x8] ss:$0 sps:$4 sm:$0xff]  }
   0x9   :  { %408 = vmatprep.subr.bf16.mxu1 %v453_v1  ;;  %v446_v21 = vld [vmem:[%s575_s1 + $0xb0] sm:$0xff]   ;;  %v449_v26 = vld [vmem:[%s575_s1 + $0xb8] sm:$0xff]   ;;  %v371_v35 = vld [vmem:[%s577_s2] ss:$0 sm:$0xff] }
   0xa   :  { %264 = vmatprep.mubr.bf16.mxu0 %v345_v24  ;;  %v320_v36 = vld [vmem:[%s578_s4] sm:$0xf] }
   0xb   :  { %378 = vmatpush3.bf16.msra.mxu0 %v433_v8  ;;  %v372_v41 = vld [vmem:[%s579_s3] ss:$0 sm:$0xff]  ;;  %v335_v43 = vunpack.c.l.bf16 %v320_v36 }
   0xc   :  { %409 = vmatpush3.bf16.msra.mxu1 %v434_v9  ;;  %379 = vmatprep.subr.bf16.mxu0 %v435_v10 }
   0xd   :  { %410 = vmatprep.subr.bf16.mxu1 %v453_v1 }
   0xf   :  { %380 = vmatpush3.bf16.msra.mxu0 %v436_v11 }
  0x10   :  { %411 = vmatpush3.bf16.msra.mxu1 %v437_v12  ;;  %381 = vmatprep.subr.bf16.mxu0 %v438_v13 }
  0x11   :  { %412 = vmatprep.subr.bf16.mxu1 %v453_v1 }
  0x13   :  { %382 = vmatpush3.bf16.msra.mxu0 %v439_v14 }
  0x14   :  { %413 = vmatpush3.bf16.msra.mxu1 %v440_v15  ;;  %383 = vmatprep.subr.bf16.mxu0 %v441_v16 }
  0x15   :  { %414 = vmatprep.subr.bf16.mxu1 %v453_v1 }
  0x17   :  { %384 = vmatpush3.bf16.msra.mxu0 %v442_v17 }
  0x18   :  { %415 = vmatpush3.bf16.msra.mxu1 %v443_v18  ;;  %385 = vmatprep.subr.bf16.mxu0 %v444_v19 }
  0x19   :  { %416 = vmatprep.subr.bf16.mxu1 %v453_v1 }
  0x1b   :  { %386 = vmatpush3.bf16.msra.mxu0 %v445_v20 }
  0x1c   :  { %417 = vmatpush3.bf16.msra.mxu1 %v446_v21  ;;  %387 = vmatprep.subr.bf16.mxu0 %v447_v22 }
  0x1d   :  { %418 = vmatprep.subr.bf16.mxu1 %v453_v1 }
  0x1f   :  { %388 = vmatpush3.bf16.msra.mxu0 %v448_v25 }
  0x20   :  { %419 = vmatpush3.bf16.msra.mxu1 %v449_v26 }
  0x22   :  { %265 = vmatmul.mubr.bf16.vlgmr.msra.gmra.mrb[0].mxu0 %v344_v27 }
  0x23   :  { %421 = vmatmul.mubr.bf16.vlgmr.msra.gmra.mrb[0].mxu1 %v452_v28 }
  0xf5   :  { %v389_v29 = vpop.f32.mrb[0].mxu0 }
  0xf6   :  { %v306_v30 = vpop.f32.mrb[0].mxu1  ;;  %v390_v31 = vpop.f32.mrb[1].mxu0 }
  0xf7   :  { %v391_v32 = vadd.f32 %v390_v31, %v389_v29  ;;  %v422_v33 = vpop.f32.mrb[1].mxu1  ;;  %v392_v34 = vpop.f32.mrb[2].mxu0 }
  0xf8   :  { %v309_v37 = vpop.f32.mrb[2].mxu1  ;;  %v393_v38 = vpop.f32.mrb[3].mxu0 }
  0xf9   :  { %v307_v39 = vadd.f32 %v391_v32, %v306_v30  ;;  %v423_v40 = vpop.f32.mrb[3].mxu1 }
  0xfb   :  { %v327_v42 = vmul.f32 %v371_v35, %v307_v39 }
  0xfd   :  { %v334_v44 = vadd.f32 %v372_v41, %v327_v42 }
  0xff   :  { %v336_v45 = vadd.f32 %v335_v43, %v334_v44 }
 0x101   :  { %v337_v46 = vmax.f32 %v336_v45, 0.0 }
 0x103   :  { %v338_v47 = vpack.c.bf16 %v337_v46, %v337_v46 }
 0x105   :  { %339 = vst [vmem:[%s580_s5] sm:$0xf] %v338_v47 }

// kernel: tile.38
= control target key start
LH: loop header
LB: loop body
LE: loop exit
PB: predicated region body
PF: predicated region fallthrough
CT: control target
= control target key end

     0   :  { %s22_s0 = inlined_call_operand.vmem [shape: f32[16], index: 0, kind: input, shape index: {}]   ;;  %s23_s1 = inlined_call_operand.vmem [shape: f32[4,16], index: 1, kind: output, shape index: {}]  }
   0x1   :  { %v4_v0 = vld [vmem:[%s22_s0] ss:$0 sm:$0xff] }
   0x2   :  { %5 = vst [vmem:[%s23_s1] sm:$0xf] %v4_v0 }

// kernel: tile.43
= control target key start
LH: loop header
LB: loop body
LE: loop exit
PB: predicated region body
PF: predicated region fallthrough
CT: control target
= control target key end

     0   :  { %vm7_vm0 = vcmask 130048   ;;  %s37_s8 = smov 16   ;;  %s38_s9 = smov 32   ;;  %vm13_vm1 = vcmask 523648   ;;  %vm19_vm2 = vcmask 392448   ;;  %vm25_vm3 = vcmask 261248   ;;  %s55_s0 = inlined_call_operand.vmem [shape: f32[4,16], index: 0, kind: input, shape index: {}]   ;;  %s56_s1 = inlined_call_operand.vmem [shape: f32[1,64], index: 1, kind: output, shape index: {}]  }
   0x1   :  { %v4_v0 = vld [vmem:[%s55_s0] sm:$0xf]  ;;  %s36_s0 = smov 48  }
   0x2   :  { %5 = vst [vmem:[#allocation1] sm:$0xf] %v4_v0 }
   0x9   :  { %v10_v1 = vld [vmem:[#allocation1 + $0x3] sm:$0x1]   ;;  %v22_v2 = vld [vmem:[#allocation1 + $0x1] sm:$0x1]   ;;  %v6_v3 = vld [vmem:[#allocation1] sm:$0x1]  }
   0xa   :  { %11 = vrot.lane.b32.xlu0 %v10_v1, %s36_s0  ;;  %23 = vrot.lane.b32.xlu1 %v22_v2, %s37_s8  ;;  %v16_v4 = vld [vmem:[#allocation1 + $0x2] sm:$0x1]   ;;  %8 = vst.msk [vmem:[#allocation0] sm:$0x1] %vm7_vm0, %v6_v3  }
   0xe   :  { %17 = vrot.lane.b32.xlu0 %v16_v4, %s38_s9 }
  0x7c   :  { %v12_v5 = vpop.permute.xlu0 %11   ;;  %v24_v6 = vpop.permute.xlu1 %23  }
  0x7d   :  { %14 = vst.msk [vmem:[#allocation0] sm:$0x1] %vm13_vm1, %v12_v5  }
  0x80   :  { %v18_v7 = vpop.permute.xlu0 %17  }
  0x81   :  { %20 = vst.msk [vmem:[#allocation0] sm:$0x1] %vm19_vm2, %v18_v7  }
  0x82   :  { %26 = vst.msk [vmem:[#allocation0] sm:$0x1] %vm25_vm3, %v24_v6  }
  0x89   :  { %v30_v8 = vld [vmem:[#allocation0] sm:$0x1] }
  0x8a   :  { %32 = vst [vmem:[%s56_s1] sm:$0x1] %v30_v8 }

// kernel: erfnet_forward.135
= control target key start
LH: loop header
LB: loop body
LE: loop exit
PB: predicated region body
PF: predicated region fallthrough
CT: control target
= control target key end

     0   :  { %s963_s1 = inlined_call_operand.vmem [shape: bf16[512,256], index: 1, kind: input, shape index: {}]   ;;  %s964_s0 = inlined_call_operand.vmem [shape: bf16[8,512], index: 0, kind: input, shape index: {}]   ;;  %s965_s2 = inlined_call_operand.vmem [shape: f32[1,256], index: 2, kind: input, shape index: {}]   ;;  %s966_s3 = inlined_call_operand.vmem [shape: f32[1,256], index: 3, kind: input, shape index: {}]   ;;  %s967_s4 = inlined_call_operand.vmem [shape: bf16[8,256], index: 4, kind: output, shape index: {}]  }
   0x1   :  { %v631_v0 = vld [vmem:[%s963_s1 + $0x4] ss:$8 sps:$4 sm:$0xff]   ;;  %v635_v2 = vld [vmem:[%s963_s1] ss:$8 sps:$4 sm:$0xff]   ;;  %v637_v4 = vld [vmem:[%s963_s1 + $0x14] ss:$8 sps:$4 sm:$0xff]  }
   0x2   :  { %v633_v1 = vld [vmem:[%s963_s1 + $0x104] ss:$8 sps:$4 sm:$0xff]   ;;  %425 = vmatprep.subr.bf16.mxu1 %v631_v0  ;;  %v636_v3 = vld [vmem:[%s963_s1 + $0x100] ss:$8 sps:$4 sm:$0xff]   ;;  %v639_v5 = vld [vmem:[%s963_s1 + $0x114] ss:$8 sps:$4 sm:$0xff]  }
   0x3   :  { %466 = vmatprep.subr.bf16.mxu0 %v633_v1  ;;  %426 = vmatpush1.bf16.msra.mxu1 %v635_v2  ;;  %v641_v6 = vld [vmem:[%s963_s1 + $0x10] ss:$8 sps:$4 sm:$0xff]   ;;  %v643_v8 = vld [vmem:[%s963_s1 + $0x24] ss:$8 sps:$4 sm:$0xff]   ;;  %v647_v10 = vld [vmem:[%s963_s1 + $0x20] ss:$8 sps:$4 sm:$0xff]  }
   0x4   :  { %467 = vmatpush1.bf16.msra.mxu0 %v636_v3  ;;  %427 = vmatprep.subr.bf16.mxu1 %v637_v4  ;;  %v642_v7 = vld [vmem:[%s963_s1 + $0x110] ss:$8 sps:$4 sm:$0xff]   ;;  %v645_v9 = vld [vmem:[%s963_s1 + $0x124] ss:$8 sps:$4 sm:$0xff]   ;;  %v648_v11 = vld [vmem:[%s963_s1 + $0x120] ss:$8 sps:$4 sm:$0xff]  }
   0x5   :  { %468 = vmatprep.subr.bf16.mxu0 %v639_v5  ;;  %v649_v12 = vld [vmem:[%s963_s1 + $0x34] ss:$8 sps:$4 sm:$0xff]   ;;  %v653_v14 = vld [vmem:[%s963_s1 + $0x30] ss:$8 sps:$4 sm:$0xff]   ;;  %v655_v16 = vld [vmem:[%s963_s1 + $0x44] ss:$8 sps:$4 sm:$0xff]  }
   0x6   :  { %v651_v13 = vld [vmem:[%s963_s1 + $0x134] ss:$8 sps:$4 sm:$0xff]   ;;  %v654_v15 = vld [vmem:[%s963_s1 + $0x130] ss:$8 sps:$4 sm:$0xff]   ;;  %v657_v17 = vld [vmem:[%s963_s1 + $0x144] ss:$8 sps:$4 sm:$0xff]  }
   0x7   :  { %428 = vmatpush1.bf16.msra.mxu1 %v641_v6  ;;  %v659_v18 = vld [vmem:[%s963_s1 + $0x40] ss:$8 sps:$4 sm:$0xff]   ;;  %v661_v20 = vld [vmem:[%s963_s1 + $0x54] ss:$8 sps:$4 sm:$0xff]   ;;  %v665_v22 = vld [vmem:[%s963_s1 + $0x50] ss:$8 sps:$4 sm:$0xff]   ;;  %v519_v6 = vlaneseq }
   0x8   :  { %469 = vmatpush1.bf16.msra.mxu0 %v642_v7  ;;  %429 = vmatprep.subr.bf16.mxu1 %v643_v8  ;;  %v660_v19 = vld [vmem:[%s963_s1 + $0x140] ss:$8 sps:$4 sm:$0xff]   ;;  %v663_v21 = vld [vmem:[%s963_s1 + $0x154] ss:$8 sps:$4 sm:$0xff]   ;;  %v666_v23 = vld [vmem:[%s963_s1 + $0x150] ss:$8 sps:$4 sm:$0xff]  }
   0x9   :  { %470 = vmatprep.subr.bf16.mxu0 %v645_v9  ;;  %v667_v24 = vld [vmem:[%s963_s1 + $0x64] ss:$8 sps:$4 sm:$0xff]   ;;  %v671_v26 = vld [vmem:[%s963_s1 + $0x60] ss:$8 sps:$4 sm:$0xff]   ;;  %v673_v28 = vld [vmem:[%s963_s1 + $0x74] ss:$8 sps:$4 sm:$0xff]  }
   0xa   :  { %v669_v25 = vld [vmem:[%s963_s1 + $0x164] ss:$8 sps:$4 sm:$0xff]   ;;  %v672_v27 = vld [vmem:[%s963_s1 + $0x160] ss:$8 sps:$4 sm:$0xff]   ;;  %v675_v29 = vld [vmem:[%s963_s1 + $0x174] ss:$8 sps:$4 sm:$0xff]  }
   0xb   :  { %430 = vmatpush1.bf16.msra.mxu1 %v647_v10  ;;  %v677_v30 = vld [vmem:[%s963_s1 + $0x70] ss:$8 sps:$4 sm:$0xff]   ;;  %v679_v32 = vld [vmem:[%s963_s1 + $0x84] ss:$8 sps:$4 sm:$0xff]   ;;  %v683_v34 = vld [vmem:[%s963_s1 + $0x80] ss:$8 sps:$4 sm:$0xff]  }
   0xc   :  { %471 = vmatpush1.bf16.msra.mxu0 %v648_v11  ;;  %431 = vmatprep.subr.bf16.mxu1 %v649_v12  ;;  %v678_v31 = vld [vmem:[%s963_s1 + $0x170] ss:$8 sps:$4 sm:$0xff]   ;;  %v681_v33 = vld [vmem:[%s963_s1 + $0x184] ss:$8 sps:$4 sm:$0xff]   ;;  %v684_v35 = vld [vmem:[%s963_s1 + $0x180] ss:$8 sps:$4 sm:$0xff]  }
   0xd   :  { %472 = vmatprep.subr.bf16.mxu0 %v651_v13  ;;  %v685_v36 = vld [vmem:[%s963_s1 + $0x94] ss:$8 sps:$4 sm:$0xff]   ;;  %v689_v38 = vld [vmem:[%s963_s1 + $0x90] ss:$8 sps:$4 sm:$0xff]   ;;  %v691_v40 = vld [vmem:[%s963_s1 + $0xa4] ss:$8 sps:$4 sm:$0xff]  }
   0xe   :  { %v687_v37 = vld [vmem:[%s963_s1 + $0x194] ss:$8 sps:$4 sm:$0xff]   ;;  %v690_v39 = vld [vmem:[%s963_s1 + $0x190] ss:$8 sps:$4 sm:$0xff]   ;;  %v693_v41 = vld [vmem:[%s963_s1 + $0x1a4] ss:$8 sps:$4 sm:$0xff]  }
   0xf   :  { %432 = vmatpush1.bf16.msra.mxu1 %v653_v14  ;;  %v695_v42 = vld [vmem:[%s963_s1 + $0xa0] ss:$8 sps:$4 sm:$0xff]   ;;  %v697_v44 = vld [vmem:[%s963_s1 + $0xb4] ss:$8 sps:$4 sm:$0xff]   ;;  %v701_v49 = vld [vmem:[%s963_s1 + $0xb0] ss:$8 sps:$4 sm:$0xff]  }
  0x10   :  { %473 = vmatpush1.bf16.msra.mxu0 %v654_v15  ;;  %433 = vmatprep.subr.bf16.mxu1 %v655_v16  ;;  %v696_v43 = vld [vmem:[%s963_s1 + $0x1a0] ss:$8 sps:$4 sm:$0xff]   ;;  %v699_v45 = vld [vmem:[%s963_s1 + $0x1b4] ss:$8 sps:$4 sm:$0xff]   ;;  %v702_v50 = vld [vmem:[%s963_s1 + $0x1b0] ss:$8 sps:$4 sm:$0xff]  }
  0x11   :  { %474 = vmatprep.subr.bf16.mxu0 %v657_v17  ;;  %v25_v46 = vld [vmem:[%s964_s0] sm:$0xff]  ;;  %v26_v48 = vld [vmem:[%s964_s0 + $0x8] sm:$0xff]  ;;  %v709_v56 = vld [vmem:[%s963_s1 + $0xd4] ss:$8 sps:$4 sm:$0xff]   ;;  %v520_v7 = vshrl.u32 %v519_v6, 7 }
  0x12   :  { %v560_v47 = vcombine.high %v25_v46, %v25_v46  ;;  %v562_v51 = vcombine.high %v26_v48, %v26_v48  ;;  %v703_v52 = vld [vmem:[%s963_s1 + $0xc4] ss:$8 sps:$4 sm:$0xff]   ;;  %v707_v54 = vld [vmem:[%s963_s1 + $0xc0] ss:$8 sps:$4 sm:$0xff]   ;;  %v711_v57 = vld [vmem:[%s963_s1 + $0x1d4] ss:$8 sps:$4 sm:$0xff]   ;;  %v559_v4 = vcombine.low %v25_v46, %v25_v46  ;;  %v561_v5 = vcombine.low %v26_v48, %v26_v48 }
  0x13   :  { %434 = vmatpush1.bf16.msra.mxu1 %v659_v18  ;;  %v705_v53 = vld [vmem:[%s963_s1 + $0x1c4] ss:$8 sps:$4 sm:$0xff]   ;;  %v708_v55 = vld [vmem:[%s963_s1 + $0x1c0] ss:$8 sps:$4 sm:$0xff]   ;;  %v713_v58 = vld [vmem:[%s963_s1 + $0xd0] ss:$8 sps:$4 sm:$0xff]  }
  0x14   :  { %475 = vmatpush1.bf16.msra.mxu0 %v660_v19  ;;  %435 = vmatprep.subr.bf16.mxu1 %v661_v20  ;;  %v714_v59 = vld [vmem:[%s963_s1 + $0x1d0] ss:$8 sps:$4 sm:$0xff]   ;;  %v715_v60 = vld [vmem:[%s963_s1 + $0xe4] ss:$8 sps:$4 sm:$0xff]   ;;  %v719_v62 = vld [vmem:[%s963_s1 + $0xe0] ss:$8 sps:$4 sm:$0xff]  }
  0x15   :  { %476 = vmatprep.subr.bf16.mxu0 %v663_v21  ;;  %457 = vmatprep.mubr.bf16.mxu1 %v560_v47  ;;  %v717_v61 = vld [vmem:[%s963_s1 + $0x1e4] ss:$8 sps:$4 sm:$0xff]   ;;  %v720_v63 = vld [vmem:[%s963_s1 + $0x1e0] ss:$8 sps:$4 sm:$0xff]   ;;  %v721_v0 = vld [vmem:[%s963_s1 + $0xf4] ss:$8 sps:$4 sm:$0xff]  }
  0x16   :  { %498 = vmatprep.mubr.bf16.mxu0 %v562_v51  ;;  %v723_v1 = vld [vmem:[%s963_s1 + $0x1f4] ss:$8 sps:$4 sm:$0xff]   ;;  %v725_v2 = vld [vmem:[%s963_s1 + $0xf0] ss:$8 sps:$4 sm:$0xff]   ;;  %v521_v8 = vsub.s32 0, %v520_v7  ;;  %v525_v10 = vsub.s32 1, %v520_v7 }
  0x17   :  { %436 = vmatpush1.bf16.msra.mxu1 %v665_v22  ;;  %v726_v3 = vld [vmem:[%s963_s1 + $0x1f0] ss:$8 sps:$4 sm:$0xff]   ;;  %v516_v9 = vld [vmem:[%s965_s2] sm:$0x3] }
  0x18   :  { %477 = vmatpush1.bf16.msra.mxu0 %v666_v23  ;;  %437 = vmatprep.subr.bf16.mxu1 %v667_v24  ;;  %v517_v11 = vld [vmem:[%s966_s3] sm:$0x3]  ;;  %v522_v12 = vrot.slane %v516_v9, %v521_v8  ;;  %v526_v15 = vrot.slane %v516_v9, %v525_v10 }
  0x19   :  { %478 = vmatprep.subr.bf16.mxu0 %v669_v25  ;;  %v535_v17 = vrot.slane %v517_v11, %v521_v8  ;;  %v539_v21 = vrot.slane %v517_v11, %v525_v10 }
  0x1b   :  { %438 = vmatpush1.bf16.msra.mxu1 %v671_v26 }
  0x1c   :  { %479 = vmatpush1.bf16.msra.mxu0 %v672_v27  ;;  %439 = vmatprep.subr.bf16.mxu1 %v673_v28 }
  0x1d   :  { %480 = vmatprep.subr.bf16.mxu0 %v675_v29 }
  0x1f   :  { %440 = vmatpush1.bf16.msra.mxu1 %v677_v30 }
  0x20   :  { %481 = vmatpush1.bf16.msra.mxu0 %v678_v31  ;;  %441 = vmatprep.subr.bf16.mxu1 %v679_v32 }
  0x21   :  { %482 = vmatprep.subr.bf16.mxu0 %v681_v33 }
  0x23   :  { %442 = vmatpush1.bf16.msra.mxu1 %v683_v34 }
  0x24   :  { %483 = vmatpush1.bf16.msra.mxu0 %v684_v35  ;;  %443 = vmatprep.subr.bf16.mxu1 %v685_v36 }
  0x25   :  { %484 = vmatprep.subr.bf16.mxu0 %v687_v37 }
  0x27   :  { %444 = vmatpush1.bf16.msra.mxu1 %v689_v38 }
  0x28   :  { %485 = vmatpush1.bf16.msra.mxu0 %v690_v39  ;;  %445 = vmatprep.subr.bf16.mxu1 %v691_v40 }
  0x29   :  { %486 = vmatprep.subr.bf16.mxu0 %v693_v41 }
  0x2b   :  { %446 = vmatpush1.bf16.msra.mxu1 %v695_v42 }
  0x2c   :  { %487 = vmatpush1.bf16.msra.mxu0 %v696_v43  ;;  %447 = vmatprep.subr.bf16.mxu1 %v697_v44 }
  0x2d   :  { %488 = vmatprep.subr.bf16.mxu0 %v699_v45 }
  0x2f   :  { %448 = vmatpush1.bf16.msra.mxu1 %v701_v49 }
  0x30   :  { %489 = vmatpush1.bf16.msra.mxu0 %v702_v50  ;;  %449 = vmatprep.subr.bf16.mxu1 %v703_v52 }
  0x31   :  { %490 = vmatprep.subr.bf16.mxu0 %v705_v53 }
  0x33   :  { %450 = vmatpush1.bf16.msra.mxu1 %v707_v54 }
  0x34   :  { %491 = vmatpush1.bf16.msra.mxu0 %v708_v55  ;;  %451 = vmatprep.subr.bf16.mxu1 %v709_v56 }
  0x35   :  { %492 = vmatprep.subr.bf16.mxu0 %v711_v57 }
  0x37   :  { %452 = vmatpush1.bf16.msra.mxu1 %v713_v58 }
  0x38   :  { %493 = vmatpush1.bf16.msra.mxu0 %v714_v59  ;;  %453 = vmatprep.subr.bf16.mxu1 %v715_v60 }
  0x39   :  { %494 = vmatprep.subr.bf16.mxu0 %v717_v61 }
  0x3b   :  { %454 = vmatpush1.bf16.msra.mxu1 %v719_v62 }
  0x3c   :  { %495 = vmatpush1.bf16.msra.mxu0 %v720_v63  ;;  %455 = vmatprep.subr.bf16.mxu1 %v721_v0 }
  0x3d   :  { %496 = vmatprep.subr.bf16.mxu0 %v723_v1 }
  0x3f   :  { %456 = vmatpush1.bf16.msra.mxu1 %v725_v2 }
  0x40   :  { %497 = vmatpush1.bf16.msra.mxu0 %v726_v3 }
  0x42   :  { %458 = vmatmul.mubr.bf16.vlgmr.msra.gmra.mrb[0].mxu1 %v559_v4 }
  0x43   :  { %499 = vmatmul.mubr.bf16.vlgmr.msra.gmra.mrb[0].mxu0 %v561_v5 }
 0x115   :  { %v459_v13 = vpop.f32.mrb[0].mxu1 }
 0x116   :  { %v500_v14 = vpop.f32.mrb[0].mxu0  ;;  %v461_v18 = vpop.f32.mrb[1].mxu1 }
 0x117   :  { %v501_v16 = vadd.f32 %v500_v14, %v459_v13  ;;  %v502_v19 = vpop.f32.mrb[1].mxu0  ;;  %v463_v22 = vpop.f32.mrb[2].mxu1 }
 0x118   :  { %v503_v20 = vadd.f32 %v502_v19, %v461_v18  ;;  %v504_v23 = vpop.f32.mrb[2].mxu0  ;;  %v464_v25 = vpop.f32.mrb[3].mxu1 }
 0x119   :  { %v529_v24 = vmul.f32 %v522_v12, %v501_v16  ;;  %v505_v26 = vpop.f32.mrb[3].mxu0 }
 0x11a   :  { %v530_v27 = vmul.f32 %v526_v15, %v503_v20 }
 0x11b   :  { %v542_v28 = vadd.f32 %v535_v17, %v529_v24 }
 0x11c   :  { %v543_v29 = vadd.f32 %v539_v21, %v530_v27 }
 0x11d   :  { %v544_v30 = vmax.f32 %v542_v28, 0.0 }
 0x11e   :  { %v545_v31 = vmax.f32 %v543_v29, 0.0 }
 0x120   :  { %v628_v32 = vpack.c.bf16 %v545_v31, %v544_v30 }
 0x122   :  { %554 = vst [vmem:[%s967_s4] sm:$0xff] %v628_v32 }

// kernel: erfnet_forward.144
= control target key start
LH: loop header
LB: loop body
LE: loop exit
PB: predicated region body
PF: predicated region fallthrough
CT: control target
= control target key end

     0   :  { %vm22_vm0 = vcmask 523264   ;;  %v396_v20 = vmov 0.0   ;;  %vm290_vm1 = vcmask 519168   ;;  %s508_s1 = inlined_call_operand.vmem [shape: bf16[256,64], index: 1, kind: input, shape index: {}]   ;;  %s509_s0 = inlined_call_operand.vmem [shape: bf16[32,256], index: 0, kind: input, shape index: {}]   ;;  %s510_s2 = inlined_call_operand.vmem [shape: f32[1,64], index: 2, kind: input, shape index: {}]   ;;  %s511_s3 = inlined_call_operand.vmem [shape: f32[1,64], index: 3, kind: input, shape index: {}]   ;;  %s512_s4 = inlined_call_operand.vmem [shape: bf16[32,64], index: 4, kind: output, shape index: {}]  }
   0x1   :  { %v374_v0 = vld [vmem:[%s508_s1 + $0x40] sm:$0xff]   ;;  %v376_v2 = vld [vmem:[%s508_s1 + $0x48] sm:$0xff]   ;;  %v378_v4 = vld [vmem:[%s508_s1 + $0x50] sm:$0xff]   ;;  %23 = vst.msk [vmem:[#allocation2] sm:$0xff] %vm22_vm0, %v396_v20 }
   0x2   :  { %v375_v1 = vld [vmem:[%s508_s1] sm:$0xff]   ;;  %329 = vmatprep.subr.bf16.mxu0 %v374_v0  ;;  %357 = vmatprep.subr.bf16.mxu1 %v374_v0  ;;  %v377_v3 = vld [vmem:[%s508_s1 + $0x8] sm:$0xff]   ;;  %v379_v5 = vld [vmem:[%s508_s1 + $0x10] sm:$0xff]   ;;  %24 = vst.msk [vmem:[#allocation2 + $0x8] sm:$0xff] %vm22_vm0, %v396_v20 }
   0x3   :  { %330 = vmatpush3.bf16.msra.mxu0 %v375_v1  ;;  %365 = vmatpush3.bf16.msra.mxu1 %v375_v1  ;;  %v380_v6 = vld [vmem:[%s508_s1 + $0x58] sm:$0xff]   ;;  %v382_v8 = vld [vmem:[%s508_s1 + $0x60] sm:$0xff]   ;;  %v384_v10 = vld [vmem:[%s508_s1 + $0x68] sm:$0xff]   ;;  %25 = vst.msk [vmem:[#allocation2 + $0x10] sm:$0xff] %vm22_vm0, %v396_v20 }
   0x4   :  { %331 = vmatprep.subr.bf16.mxu0 %v376_v2  ;;  %358 = vmatprep.subr.bf16.mxu1 %v376_v2  ;;  %v381_v7 = vld [vmem:[%s508_s1 + $0x18] sm:$0xff]   ;;  %v383_v9 = vld [vmem:[%s508_s1 + $0x20] sm:$0xff]   ;;  %v385_v13 = vld [vmem:[%s508_s1 + $0x28] sm:$0xff]   ;;  %26 = vst.msk [vmem:[#allocation2 + $0x18] sm:$0xff] %vm22_vm0, %v396_v20 }
   0x5   :  { %v392_v11 = vld [vmem:[%s509_s0 + $0x4] ss:$8 sps:$4 sm:$0xff]   ;;  %v395_v12 = vld [vmem:[%s509_s0 + $0x14] ss:$8 sps:$4 sm:$0xff]   ;;  %v390_v18 = vld [vmem:[%s509_s0] ss:$8 sps:$4 sm:$0xff]  }
   0x6   :  { %v386_v14 = vld [vmem:[%s508_s1 + $0x70] sm:$0xff]   ;;  %215 = vmatprep.mubr.bf16.mxu0 %v392_v11  ;;  %223 = vmatprep.mubr.bf16.mxu1 %v395_v12  ;;  %v388_v16 = vld [vmem:[%s508_s1 + $0x78] sm:$0xff]   ;;  %v319_v41 = vld [vmem:[%s510_s2] ss:$0 sm:$0xff] }
   0x7   :  { %332 = vmatpush3.bf16.msra.mxu0 %v377_v3  ;;  %366 = vmatpush3.bf16.msra.mxu1 %v377_v3  ;;  %v387_v15 = vld [vmem:[%s508_s1 + $0x30] sm:$0xff]   ;;  %v389_v17 = vld [vmem:[%s508_s1 + $0x38] sm:$0xff]   ;;  %v320_v43 = vld [vmem:[%s511_s3] ss:$0 sm:$0xff] }
   0x8   :  { %333 = vmatprep.subr.bf16.mxu0 %v378_v4  ;;  %359 = vmatprep.subr.bf16.mxu1 %v378_v4  ;;  %v393_v19 = vld [vmem:[%s509_s0 + $0x10] ss:$8 sps:$4 sm:$0xff]   ;;  %v27_v23 = vld [vmem:[#allocation2] sm:$0xff] }
   0x9   :  { %v28_v31 = vld [vmem:[#allocation2 + $0x8] sm:$0xff] }
   0xa   :  { %v29_v25 = vld [vmem:[#allocation2 + $0x10] sm:$0xff] }
   0xb   :  { %334 = vmatpush3.bf16.msra.mxu0 %v379_v5  ;;  %367 = vmatpush3.bf16.msra.mxu1 %v379_v5  ;;  %v30_v33 = vld [vmem:[#allocation2 + $0x18] sm:$0xff] }
   0xc   :  { %335 = vmatprep.subr.bf16.mxu0 %v380_v6  ;;  %360 = vmatprep.subr.bf16.mxu1 %v380_v6 }
   0xf   :  { %336 = vmatpush3.bf16.msra.mxu0 %v381_v7  ;;  %368 = vmatpush3.bf16.msra.mxu1 %v381_v7 }
  0x10   :  { %337 = vmatprep.subr.bf16.mxu0 %v382_v8  ;;  %361 = vmatprep.subr.bf16.mxu1 %v382_v8 }
  0x13   :  { %338 = vmatpush3.bf16.msra.mxu0 %v383_v9  ;;  %369 = vmatpush3.bf16.msra.mxu1 %v383_v9 }
  0x14   :  { %339 = vmatprep.subr.bf16.mxu0 %v384_v10  ;;  %362 = vmatprep.subr.bf16.mxu1 %v384_v10 }
  0x17   :  { %340 = vmatpush3.bf16.msra.mxu0 %v385_v13  ;;  %370 = vmatpush3.bf16.msra.mxu1 %v385_v13 }
  0x18   :  { %341 = vmatprep.subr.bf16.mxu0 %v386_v14  ;;  %363 = vmatprep.subr.bf16.mxu1 %v386_v14 }
  0x1b   :  { %342 = vmatpush3.bf16.msra.mxu0 %v387_v15  ;;  %371 = vmatpush3.bf16.msra.mxu1 %v387_v15 }
  0x1c   :  { %343 = vmatprep.subr.bf16.mxu0 %v388_v16  ;;  %364 = vmatprep.subr.bf16.mxu1 %v388_v16 }
  0x1f   :  { %344 = vmatpush3.bf16.msra.mxu0 %v389_v17  ;;  %372 = vmatpush3.bf16.msra.mxu1 %v389_v17 }
  0x22   :  { %216 = vmatmul.mubr.bf16.vlgmr.msra.gmra.mrb[0].mxu0 %v390_v18  ;;  %224 = vmatmul.mubr.bf16.vlgmr.msra.gmra.mrb[0].mxu1 %v393_v19 }
  0xf5   :  { %v345_v21 = vpop.f32.mrb[0].mxu0  ;;  %v351_v22 = vpop.f32.mrb[0].mxu1 }
  0xf6   :  { %v346_v24 = vpop.f32.mrb[1].mxu0  ;;  %v352_v26 = vpop.f32.mrb[1].mxu1 }
  0xf7   :  { %v347_v27 = vadd.f32 %v346_v24, %v345_v21  ;;  %v353_v28 = vadd.f32 %v352_v26, %v351_v22  ;;  %v348_v29 = vpop.f32.mrb[2].mxu0  ;;  %v354_v30 = vpop.f32.mrb[2].mxu1 }
  0xf8   :  { %v349_v32 = vpop.f32.mrb[3].mxu0  ;;  %v355_v34 = vpop.f32.mrb[3].mxu1 }
  0xf9   :  { %v232_v35 = vadd.f32 %v347_v27, %v27_v23  ;;  %v234_v36 = vadd.f32 %v353_v28, %v29_v25  ;;  %v350_v37 = vadd.f32 %v349_v32, %v348_v29  ;;  %v356_v38 = vadd.f32 %v355_v34, %v354_v30 }
  0xfb   :  { %237 = vst.msk [vmem:[#allocation2] sm:$0xff] %vm22_vm0, %v232_v35  ;;  %239 = vst.msk [vmem:[#allocation2 + $0x10] sm:$0xff] %vm22_vm0, %v234_v36  ;;  %v233_v39 = vadd.f32 %v350_v37, %v28_v31  ;;  %v235_v40 = vadd.f32 %v356_v38, %v30_v33 }
  0xfd   :  { %238 = vst.msk [vmem:[#allocation2 + $0x8] sm:$0xff] %vm22_vm0, %v233_v39  ;;  %240 = vst.msk [vmem:[#allocation2 + $0x18] sm:$0xff] %vm22_vm0, %v235_v40 }
 0x102   :  { %v244_v42 = vld [vmem:[#allocation2] sm:$0xff]  ;;  %v246_v44 = vld [vmem:[#allocation2 + $0x10] sm:$0xff] }
 0x103   :  { %v256_v45 = vmul.f32 %v319_v41, %v244_v42  ;;  %v258_v46 = vmul.f32 %v319_v41, %v246_v44 }
 0x104   :  { %v245_v47 = vld [vmem:[#allocation2 + $0x8] sm:$0xff]  ;;  %v247_v48 = vld [vmem:[#allocation2 + $0x18] sm:$0xff] }
 0x105   :  { %v266_v49 = vadd.f32 %v320_v43, %v256_v45  ;;  %v268_v50 = vadd.f32 %v320_v43, %v258_v46  ;;  %v257_v51 = vmul.f32 %v319_v41, %v245_v47  ;;  %v259_v52 = vmul.f32 %v319_v41, %v247_v48 }
 0x107   :  { %v270_v53 = vmax.f32 %v266_v49, 0.0  ;;  %v272_v54 = vmax.f32 %v268_v50, 0.0  ;;  %v267_v55 = vadd.f32 %v320_v43, %v257_v51  ;;  %v269_v56 = vadd.f32 %v320_v43, %v259_v52 }
 0x109   :  { %v325_v57 = vpack.c.bf16 %v270_v53, %v270_v53  ;;  %v327_v58 = vpack.c.bf16 %v272_v54, %v272_v54  ;;  %v271_v59 = vmax.f32 %v267_v55, 0.0  ;;  %v273_v60 = vmax.f32 %v269_v56, 0.0 }
 0x10b   :  { %291 = vst.msk [vmem:[%s512_s4] sm:$0xf] %vm290_vm1, %v325_v57  ;;  %293 = vst.msk [vmem:[%s512_s4 + $0x8] sm:$0xf] %vm290_vm1, %v327_v58  ;;  %v326_v61 = vpack.c.bf16 %v271_v59, %v271_v59  ;;  %v328_v62 = vpack.c.bf16 %v273_v60, %v273_v60 }
 0x10d   :  { %292 = vst.msk [vmem:[%s512_s4 + $0x4] sm:$0xf] %vm290_vm1, %v326_v61  ;;  %294 = vst.msk [vmem:[%s512_s4 + $0xc] sm:$0xf] %vm290_vm1, %v328_v62 }

// kernel: tile.48
= control target key start
LH: loop header
LB: loop body
LE: loop exit
PB: predicated region body
PF: predicated region fallthrough
CT: control target
= control target key end

     0   :  { %s22_s0 = inlined_call_operand.vmem [shape: f32[20], index: 0, kind: input, shape index: {}]   ;;  %s23_s1 = inlined_call_operand.vmem [shape: f32[4,20], index: 1, kind: output, shape index: {}]  }
   0x1   :  { %v4_v0 = vld [vmem:[%s22_s0] ss:$0 sm:$0xff] }
   0x2   :  { %5 = vst [vmem:[%s23_s1] sm:$0xf] %v4_v0 }

// kernel: tile.49
= control target key start
LH: loop header
LB: loop body
LE: loop exit
PB: predicated region body
PF: predicated region fallthrough
CT: control target
= control target key end

     0   :  { %vm7_vm0 = vcmask 162816   ;;  %s37_s8 = smov 20   ;;  %s38_s9 = smov 40   ;;  %vm13_vm1 = vcmask 654816   ;;  %vm19_vm2 = vcmask 490816   ;;  %vm25_vm3 = vcmask 326816   ;;  %s55_s0 = inlined_call_operand.vmem [shape: f32[4,20], index: 0, kind: input, shape index: {}]   ;;  %s56_s1 = inlined_call_operand.vmem [shape: f32[1,80], index: 1, kind: output, shape index: {}]  }
   0x1   :  { %v4_v0 = vld [vmem:[%s55_s0] sm:$0xf]  ;;  %s36_s0 = smov 60  }
   0x2   :  { %5 = vst [vmem:[#allocation1] sm:$0xf] %v4_v0 }
   0x9   :  { %v10_v1 = vld [vmem:[#allocation1 + $0x3] sm:$0x1]   ;;  %v22_v2 = vld [vmem:[#allocation1 + $0x1] sm:$0x1]   ;;  %v6_v3 = vld [vmem:[#allocation1] sm:$0x1]  }
   0xa   :  { %11 = vrot.lane.b32.xlu0 %v10_v1, %s36_s0  ;;  %23 = vrot.lane.b32.xlu1 %v22_v2, %s37_s8  ;;  %v16_v4 = vld [vmem:[#allocation1 + $0x2] sm:$0x1]   ;;  %8 = vst.msk [vmem:[#allocation0] sm:$0x1] %vm7_vm0, %v6_v3  }
   0xe   :  { %17 = vrot.lane.b32.xlu0 %v16_v4, %s38_s9 }
  0x7c   :  { %v12_v5 = vpop.permute.xlu0 %11   ;;  %v24_v6 = vpop.permute.xlu1 %23  }
  0x7d   :  { %14 = vst.msk [vmem:[#allocation0] sm:$0x1] %vm13_vm1, %v12_v5  }
  0x80   :  { %v18_v7 = vpop.permute.xlu0 %17  }
  0x81   :  { %20 = vst.msk [vmem:[#allocation0] sm:$0x1] %vm19_vm2, %v18_v7  }
  0x82   :  { %26 = vst.msk [vmem:[#allocation0] sm:$0x1] %vm25_vm3, %v24_v6  }
  0x89   :  { %v30_v8 = vld [vmem:[#allocation0] sm:$0x1] }
  0x8a   :  { %32 = vst [vmem:[%s56_s1] sm:$0x1] %v30_v8 }

// kernel: erfnet_forward.145
= control target key start
LH: loop header
LB: loop body
LE: loop exit
PB: predicated region body
PF: predicated region fallthrough
CT: control target
= control target key end

     0   :  { %vm22_vm0 = vcmask 130048   ;;  %v560_v1 = vmov 0.0   ;;  %vm135_vm1 = vcmask 392192   ;;  %vm435_vm2 = vcmask 125952   ;;  %s765_s1 = inlined_call_operand.vmem [shape: bf16[48,16], index: 1, kind: input, shape index: {}]   ;;  %s766_s0 = inlined_call_operand.vmem [shape: bf16[128,48], index: 0, kind: input, shape index: {}]   ;;  %s767_s2 = inlined_call_operand.vmem [shape: f32[1,16], index: 2, kind: input, shape index: {}]   ;;  %s768_s3 = inlined_call_operand.vmem [shape: f32[1,16], index: 3, kind: input, shape index: {}]   ;;  %s769_s4 = inlined_call_operand.vmem [shape: bf16[128,16], index: 4, kind: output, shape index: {}]  }
   0x1   :  { %v549_v0 = vld [vmem:[%s765_s1] sm:$0xff]   ;;  %25 = vst.msk [vmem:[#allocation2 + $0x10] sm:$0xff] %vm22_vm0, %v560_v1  ;;  %23 = vst.msk [vmem:[#allocation2] sm:$0xff] %vm22_vm0, %v560_v1  ;;  %v550_v2 = vld [vmem:[%s765_s1 + $0x8] sm:$0xff]  }
   0x2   :  { %24 = vst.msk [vmem:[#allocation2 + $0x8] sm:$0xff] %vm22_vm0, %v560_v1  ;;  %26 = vst.msk [vmem:[#allocation2 + $0x18] sm:$0xff] %vm22_vm0, %v560_v1  ;;  %520 = vmatprep.subr.bf16.mxu0 %v549_v0  ;;  %542 = vmatprep.subr.bf16.mxu1 %v549_v0  ;;  %v551_v3 = vld [vmem:[%s765_s1 + $0x10] sm:$0xff]   ;;  %v552_v4 = vld [vmem:[%s766_s0] sm:$0xff]  }
   0x3   :  { %27 = vst.msk [vmem:[#allocation2 + $0x20] sm:$0xff] %vm22_vm0, %v560_v1  ;;  %28 = vst.msk [vmem:[#allocation2 + $0x28] sm:$0xff] %vm22_vm0, %v560_v1  ;;  %521 = vmatpush3.bf16.msra.mxu0 %v549_v0  ;;  %545 = vmatpush3.bf16.msra.mxu1 %v549_v0  ;;  %v553_v5 = vld [vmem:[%s766_s0 + $0x20] sm:$0xff]   ;;  %v554_v6 = vld [vmem:[%s766_s0 + $0x8] sm:$0xff]  }
   0x4   :  { %29 = vst.msk [vmem:[#allocation2 + $0x30] sm:$0xff] %vm22_vm0, %v560_v1  ;;  %30 = vst.msk [vmem:[#allocation2 + $0x38] sm:$0xff] %vm22_vm0, %v560_v1  ;;  %522 = vmatprep.subr.bf16.mxu0 %v550_v2  ;;  %543 = vmatprep.subr.bf16.mxu1 %v550_v2  ;;  %v555_v7 = vld [vmem:[%s766_s0 + $0x28] sm:$0xff]   ;;  %v556_v8 = vld [vmem:[%s766_s0 + $0x10] sm:$0xff]  }
   0x5   :  { %31 = vst.msk [vmem:[#allocation2 + $0x40] sm:$0xff] %vm22_vm0, %v560_v1  ;;  %32 = vst.msk [vmem:[#allocation2 + $0x48] sm:$0xff] %vm22_vm0, %v560_v1  ;;  %526 = vmatprep.mubr.msk.bf16.mxu0 %vm135_vm1, %v552_v4  ;;  %534 = vmatprep.mubr.msk.bf16.mxu1 %vm135_vm1, %v553_v5  ;;  %v557_v9 = vld [vmem:[%s766_s0 + $0x30] sm:$0xff]   ;;  %v558_v10 = vld [vmem:[%s766_s0 + $0x18] sm:$0xff]  }
   0x6   :  { %33 = vst.msk [vmem:[#allocation2 + $0x50] sm:$0xff] %vm22_vm0, %v560_v1  ;;  %34 = vst.msk [vmem:[#allocation2 + $0x58] sm:$0xff] %vm22_vm0, %v560_v1  ;;  %v559_v11 = vld [vmem:[%s766_s0 + $0x38] sm:$0xff]   ;;  %v654_v40 = vld [vmem:[%s767_s2] ss:$0 sm:$0xff] }
   0x7   :  { %35 = vst.msk [vmem:[#allocation2 + $0x60] sm:$0xff] %vm22_vm0, %v560_v1  ;;  %36 = vst.msk [vmem:[#allocation2 + $0x68] sm:$0xff] %vm22_vm0, %v560_v1  ;;  %523 = vmatpush3.bf16.msra.mxu0 %v550_v2  ;;  %546 = vmatpush3.bf16.msra.mxu1 %v550_v2  ;;  %v659_v45 = vld [vmem:[%s768_s3] ss:$0 sm:$0xff] }
   0x8   :  { %37 = vst.msk [vmem:[#allocation2 + $0x70] sm:$0xff] %vm22_vm0, %v560_v1  ;;  %38 = vst.msk [vmem:[#allocation2 + $0x78] sm:$0xff] %vm22_vm0, %v560_v1  ;;  %524 = vmatprep.subr.bf16.mxu0 %v551_v3  ;;  %544 = vmatprep.subr.bf16.mxu1 %v551_v3  ;;  %v41_v12 = vld [vmem:[#allocation2 + $0x10] sm:$0xff]  ;;  %v39_v14 = vld [vmem:[#allocation2] sm:$0xff] }
   0x9   :  { %v42_v18 = vld [vmem:[#allocation2 + $0x18] sm:$0xff]  ;;  %v40_v24 = vld [vmem:[#allocation2 + $0x8] sm:$0xff] }
   0xa   :  { %v43_v38 = vld [vmem:[#allocation2 + $0x20] sm:$0xff]  ;;  %v44_v50 = vld [vmem:[#allocation2 + $0x28] sm:$0xff] }
   0xb   :  { %525 = vmatpush3.bf16.msra.mxu0 %v551_v3  ;;  %547 = vmatpush3.bf16.msra.mxu1 %v551_v3  ;;  %v45_v36 = vld [vmem:[#allocation2 + $0x30] sm:$0xff]  ;;  %v46_v43 = vld [vmem:[#allocation2 + $0x38] sm:$0xff] }
   0xc   :  { %v47_v15 = vld [vmem:[#allocation2 + $0x40] sm:$0xff]  ;;  %v48_v25 = vld [vmem:[#allocation2 + $0x48] sm:$0xff] }
   0xd   :  { %v49_v13 = vld [vmem:[#allocation2 + $0x50] sm:$0xff]  ;;  %v50_v19 = vld [vmem:[#allocation2 + $0x58] sm:$0xff] }
   0xe   :  { %527 = vmatmul.mubr.msk.bf16.vlgmr.msra.gmra.mrb[0].mxu0 %vm135_vm1, %v554_v6  ;;  %535 = vmatmul.mubr.msk.bf16.vlgmr.msra.gmra.mrb[0].mxu1 %vm135_vm1, %v555_v7  ;;  %v51_v39 = vld [vmem:[#allocation2 + $0x60] sm:$0xff]  ;;  %v52_v51 = vld [vmem:[#allocation2 + $0x68] sm:$0xff] }
   0xf   :  { %530 = vmatprep.mubr.msk.bf16.mxu0 %vm135_vm1, %v556_v8  ;;  %538 = vmatprep.mubr.msk.bf16.mxu1 %vm135_vm1, %v557_v9  ;;  %v53_v37 = vld [vmem:[#allocation2 + $0x70] sm:$0xff]  ;;  %v54_v44 = vld [vmem:[#allocation2 + $0x78] sm:$0xff] }
  0x16   :  { %531 = vmatmul.mubr.msk.bf16.gmra.mrb[4].mxu0 %vm135_vm1, %v558_v10  ;;  %539 = vmatmul.mubr.msk.bf16.gmra.mrb[4].mxu1 %vm135_vm1, %v559_v11 }
  0xe1   :  { %v528_v16 = vpop.f32.mrb[0].mxu0  ;;  %v536_v17 = vpop.f32.mrb[0].mxu1 }
  0xe2   :  { %v259_v20 = vadd.f32 %v528_v16, %v41_v12  ;;  %v267_v21 = vadd.f32 %v536_v17, %v49_v13  ;;  %v194_v22 = vpop.f32.mrb[1].mxu0  ;;  %v226_v23 = vpop.f32.mrb[1].mxu1 }
  0xe3   :  { %v257_v26 = vadd.f32 %v194_v22, %v39_v14  ;;  %v265_v27 = vadd.f32 %v226_v23, %v47_v15  ;;  %v529_v28 = vpop.f32.mrb[2].mxu0  ;;  %v537_v29 = vpop.f32.mrb[2].mxu1 }
  0xe4   :  { %276 = vst.msk [vmem:[#allocation2 + $0x10] sm:$0xff] %vm22_vm0, %v259_v20  ;;  %284 = vst.msk [vmem:[#allocation2 + $0x50] sm:$0xff] %vm22_vm0, %v267_v21  ;;  %v260_v30 = vadd.f32 %v529_v28, %v42_v18  ;;  %v268_v31 = vadd.f32 %v537_v29, %v50_v19  ;;  %v197_v32 = vpop.f32.mrb[3].mxu0  ;;  %v229_v33 = vpop.f32.mrb[3].mxu1 }
  0xe5   :  { %274 = vst.msk [vmem:[#allocation2] sm:$0xff] %vm22_vm0, %v257_v26  ;;  %282 = vst.msk [vmem:[#allocation2 + $0x40] sm:$0xff] %vm22_vm0, %v265_v27  ;;  %v258_v34 = vadd.f32 %v197_v32, %v40_v24  ;;  %v266_v35 = vadd.f32 %v229_v33, %v48_v25 }
  0xe6   :  { %277 = vst.msk [vmem:[#allocation2 + $0x18] sm:$0xff] %vm22_vm0, %v260_v30  ;;  %285 = vst.msk [vmem:[#allocation2 + $0x58] sm:$0xff] %vm22_vm0, %v268_v31 }
  0xe7   :  { %275 = vst.msk [vmem:[#allocation2 + $0x8] sm:$0xff] %vm22_vm0, %v258_v34  ;;  %283 = vst.msk [vmem:[#allocation2 + $0x48] sm:$0xff] %vm22_vm0, %v266_v35 }
  0xe9   :  { %v532_v41 = vpop.f32.mrb[4].mxu0  ;;  %v540_v42 = vpop.f32.mrb[4].mxu1 }
  0xea   :  { %v263_v46 = vadd.f32 %v532_v41, %v45_v36  ;;  %v271_v47 = vadd.f32 %v540_v42, %v53_v37  ;;  %v210_v48 = vpop.f32.mrb[5].mxu0  ;;  %v242_v49 = vpop.f32.mrb[5].mxu1 }
  0xeb   :  { %v295_v52 = vld [vmem:[#allocation2 + $0x10] sm:$0xff]  ;;  %v261_v54 = vadd.f32 %v210_v48, %v43_v38  ;;  %v269_v55 = vadd.f32 %v242_v49, %v51_v39  ;;  %v533_v56 = vpop.f32.mrb[6].mxu0  ;;  %v541_v57 = vpop.f32.mrb[6].mxu1 }
  0xec   :  { %v303_v53 = vld [vmem:[#allocation2 + $0x50] sm:$0xff]  ;;  %v319_v58 = vmul.f32 %v654_v40, %v295_v52  ;;  %v293_v60 = vld [vmem:[#allocation2] sm:$0xff]  ;;  %280 = vst.msk [vmem:[#allocation2 + $0x30] sm:$0xff] %vm22_vm0, %v263_v46  ;;  %288 = vst.msk [vmem:[#allocation2 + $0x70] sm:$0xff] %vm22_vm0, %v271_v47  ;;  %v264_v62 = vadd.f32 %v533_v56, %v46_v43  ;;  %v272_v63 = vadd.f32 %v541_v57, %v54_v44  ;;  %v213_v0 = vpop.f32.mrb[7].mxu0  ;;  %v245_v1 = vpop.f32.mrb[7].mxu1 }
  0xed   :  { %v327_v59 = vmul.f32 %v654_v40, %v303_v53  ;;  %v301_v61 = vld [vmem:[#allocation2 + $0x40] sm:$0xff]  ;;  %v317_v2 = vmul.f32 %v654_v40, %v293_v60  ;;  %v296_v4 = vld [vmem:[#allocation2 + $0x18] sm:$0xff]  ;;  %278 = vst.msk [vmem:[#allocation2 + $0x20] sm:$0xff] %vm22_vm0, %v261_v54  ;;  %286 = vst.msk [vmem:[#allocation2 + $0x60] sm:$0xff] %vm22_vm0, %v269_v55  ;;  %v262_v6 = vadd.f32 %v213_v0, %v44_v50 }
  0xee   :  { %v325_v3 = vmul.f32 %v654_v40, %v301_v61  ;;  %v304_v5 = vld [vmem:[#allocation2 + $0x58] sm:$0xff]  ;;  %v270_v7 = vadd.f32 %v245_v1, %v52_v51  ;;  %v341_v8 = vadd.f32 %v659_v45, %v319_v58  ;;  %v320_v10 = vmul.f32 %v654_v40, %v296_v4  ;;  %v294_v12 = vld [vmem:[#allocation2 + $0x8] sm:$0xff]  ;;  %281 = vst.msk [vmem:[#allocation2 + $0x38] sm:$0xff] %vm22_vm0, %v264_v62 }
  0xef   :  { %v349_v9 = vadd.f32 %v659_v45, %v327_v59  ;;  %v328_v11 = vmul.f32 %v654_v40, %v304_v5  ;;  %v302_v13 = vld [vmem:[#allocation2 + $0x48] sm:$0xff]  ;;  %289 = vst.msk [vmem:[#allocation2 + $0x78] sm:$0xff] %vm22_vm0, %v272_v63  ;;  %v339_v14 = vadd.f32 %v659_v45, %v317_v2  ;;  %v318_v16 = vmul.f32 %v654_v40, %v294_v12 }
  0xf0   :  { %v347_v15 = vadd.f32 %v659_v45, %v325_v3  ;;  %v326_v17 = vmul.f32 %v654_v40, %v302_v13  ;;  %279 = vst.msk [vmem:[#allocation2 + $0x28] sm:$0xff] %vm22_vm0, %v262_v6  ;;  %287 = vst.msk [vmem:[#allocation2 + $0x68] sm:$0xff] %vm22_vm0, %v270_v7  ;;  %v357_v18 = vmax.f32 %v341_v8, 0.0  ;;  %v342_v20 = vadd.f32 %v659_v45, %v320_v10 }
  0xf1   :  { %v365_v19 = vmax.f32 %v349_v9, 0.0  ;;  %v350_v21 = vadd.f32 %v659_v45, %v328_v11  ;;  %v355_v22 = vmax.f32 %v339_v14, 0.0  ;;  %v340_v24 = vadd.f32 %v659_v45, %v318_v16 }
  0xf2   :  { %v363_v23 = vmax.f32 %v347_v15, 0.0  ;;  %v348_v25 = vadd.f32 %v659_v45, %v326_v17  ;;  %v495_v26 = vpack.c.bf16 %v357_v18, %v357_v18  ;;  %v358_v28 = vmax.f32 %v342_v20, 0.0 }
  0xf3   :  { %v503_v27 = vpack.c.bf16 %v365_v19, %v365_v19  ;;  %v366_v29 = vmax.f32 %v350_v21, 0.0  ;;  %v493_v30 = vpack.c.bf16 %v355_v22, %v355_v22  ;;  %v356_v32 = vmax.f32 %v340_v24, 0.0  ;;  %v299_v34 = vld [vmem:[#allocation2 + $0x30] sm:$0xff] }
  0xf4   :  { %v501_v31 = vpack.c.bf16 %v363_v23, %v363_v23  ;;  %v364_v33 = vmax.f32 %v348_v25, 0.0  ;;  %v307_v35 = vld [vmem:[#allocation2 + $0x70] sm:$0xff]  ;;  %438 = vst.msk [vmem:[%s769_s4 + $0x8] sm:$0xf] %vm435_vm2, %v495_v26  ;;  %v496_v36 = vpack.c.bf16 %v358_v28, %v358_v28  ;;  %v323_v38 = vmul.f32 %v654_v40, %v299_v34  ;;  %v297_v41 = vld [vmem:[#allocation2 + $0x20] sm:$0xff] }
  0xf5   :  { %446 = vst.msk [vmem:[%s769_s4 + $0x28] sm:$0xf] %vm435_vm2, %v503_v27  ;;  %v504_v37 = vpack.c.bf16 %v366_v29, %v366_v29  ;;  %v331_v39 = vmul.f32 %v654_v40, %v307_v35  ;;  %v305_v42 = vld [vmem:[#allocation2 + $0x60] sm:$0xff]  ;;  %436 = vst.msk [vmem:[%s769_s4] sm:$0xf] %vm435_vm2, %v493_v30  ;;  %v494_v43 = vpack.c.bf16 %v356_v32, %v356_v32  ;;  %v300_v48 = vld [vmem:[#allocation2 + $0x38] sm:$0xff] }
  0xf6   :  { %444 = vst.msk [vmem:[%s769_s4 + $0x20] sm:$0xf] %vm435_vm2, %v501_v31  ;;  %v502_v44 = vpack.c.bf16 %v364_v33, %v364_v33  ;;  %v321_v46 = vmul.f32 %v654_v40, %v297_v41  ;;  %v329_v47 = vmul.f32 %v654_v40, %v305_v42  ;;  %v308_v49 = vld [vmem:[#allocation2 + $0x78] sm:$0xff]  ;;  %439 = vst.msk [vmem:[%s769_s4 + $0xc] sm:$0xf] %vm435_vm2, %v496_v36 }
  0xf7   :  { %447 = vst.msk [vmem:[%s769_s4 + $0x2c] sm:$0xf] %vm435_vm2, %v504_v37  ;;  %v345_v50 = vadd.f32 %v659_v45, %v323_v38  ;;  %v353_v51 = vadd.f32 %v659_v45, %v331_v39  ;;  %v324_v52 = vmul.f32 %v654_v40, %v300_v48  ;;  %v332_v53 = vmul.f32 %v654_v40, %v308_v49  ;;  %v298_v54 = vld [vmem:[#allocation2 + $0x28] sm:$0xff] }
  0xf8   :  { %v306_v55 = vld [vmem:[#allocation2 + $0x68] sm:$0xff]  ;;  %437 = vst.msk [vmem:[%s769_s4 + $0x4] sm:$0xf] %vm435_vm2, %v494_v43  ;;  %445 = vst.msk [vmem:[%s769_s4 + $0x24] sm:$0xf] %vm435_vm2, %v502_v44  ;;  %v343_v56 = vadd.f32 %v659_v45, %v321_v46  ;;  %v351_v57 = vadd.f32 %v659_v45, %v329_v47  ;;  %v322_v58 = vmul.f32 %v654_v40, %v298_v54 }
  0xf9   :  { %v330_v59 = vmul.f32 %v654_v40, %v306_v55  ;;  %v361_v60 = vmax.f32 %v345_v50, 0.0  ;;  %v369_v61 = vmax.f32 %v353_v51, 0.0  ;;  %v346_v62 = vadd.f32 %v659_v45, %v324_v52 }
  0xfa   :  { %v354_v63 = vadd.f32 %v659_v45, %v332_v53  ;;  %v359_v0 = vmax.f32 %v343_v56, 0.0  ;;  %v367_v1 = vmax.f32 %v351_v57, 0.0  ;;  %v344_v2 = vadd.f32 %v659_v45, %v322_v58 }
  0xfb   :  { %v352_v3 = vadd.f32 %v659_v45, %v330_v59  ;;  %v499_v4 = vpack.c.bf16 %v361_v60, %v361_v60  ;;  %v507_v5 = vpack.c.bf16 %v369_v61, %v369_v61  ;;  %v362_v6 = vmax.f32 %v346_v62, 0.0 }
  0xfc   :  { %v370_v7 = vmax.f32 %v354_v63, 0.0  ;;  %v497_v8 = vpack.c.bf16 %v359_v0, %v359_v0  ;;  %v505_v9 = vpack.c.bf16 %v367_v1, %v367_v1  ;;  %v360_v10 = vmax.f32 %v344_v2, 0.0 }
  0xfd   :  { %v368_v40 = vmax.f32 %v352_v3, 0.0  ;;  %442 = vst.msk [vmem:[%s769_s4 + $0x18] sm:$0xf] %vm435_vm2, %v499_v4  ;;  %450 = vst.msk [vmem:[%s769_s4 + $0x38] sm:$0xf] %vm435_vm2, %v507_v5  ;;  %v500_v11 = vpack.c.bf16 %v362_v6, %v362_v6 }
  0xfe   :  { %v508_v45 = vpack.c.bf16 %v370_v7, %v370_v7  ;;  %440 = vst.msk [vmem:[%s769_s4 + $0x10] sm:$0xf] %vm435_vm2, %v497_v8  ;;  %448 = vst.msk [vmem:[%s769_s4 + $0x30] sm:$0xf] %vm435_vm2, %v505_v9  ;;  %v498_v12 = vpack.c.bf16 %v360_v10, %v360_v10 }
  0xff   :  { %v506_v13 = vpack.c.bf16 %v368_v40, %v368_v40  ;;  %443 = vst.msk [vmem:[%s769_s4 + $0x1c] sm:$0xf] %vm435_vm2, %v500_v11 }
 0x100   :  { %451 = vst.msk [vmem:[%s769_s4 + $0x3c] sm:$0xf] %vm435_vm2, %v508_v45  ;;  %441 = vst.msk [vmem:[%s769_s4 + $0x14] sm:$0xf] %vm435_vm2, %v498_v12 }
 0x101   :  { %449 = vst.msk [vmem:[%s769_s4 + $0x34] sm:$0xf] %vm435_vm2, %v506_v13 }

// kernel: erfnet_forward.148
= control target key start
LH: loop header
LB: loop body
LE: loop exit
PB: predicated region body
PF: predicated region fallthrough
CT: control target
= control target key end

     0   :  { %vm25_vm0 = vcmask 130048   ;;  %v650_v1 = vmov 0.0   ;;  %vm138_vm1 = vcmask 392192   ;;  %vm486_vm2 = vcmask 125952   ;;  %s948_s1 = inlined_call_operand.vmem [shape: bf16[48,16], index: 1, kind: input, shape index: {}]   ;;  %s949_s0 = inlined_call_operand.vmem [shape: bf16[128,48], index: 0, kind: input, shape index: {}]   ;;  %s950_s4 = inlined_call_operand.vmem [shape: bf16[128,16], index: 4, kind: input, shape index: {}]   ;;  %s951_s2 = inlined_call_operand.vmem [shape: f32[1,16], index: 2, kind: input, shape index: {}]   ;;  %s952_s3 = inlined_call_operand.vmem [shape: f32[1,16], index: 3, kind: input, shape index: {}]   ;;  %s953_s5 = inlined_call_operand.vmem [shape: bf16[128,16], index: 5, kind: output, shape index: {}]  }
   0x1   :  { %v639_v0 = vld [vmem:[%s948_s1] sm:$0xff]   ;;  %28 = vst.msk [vmem:[#allocation2 + $0x10] sm:$0xff] %vm25_vm0, %v650_v1  ;;  %26 = vst.msk [vmem:[#allocation2] sm:$0xff] %vm25_vm0, %v650_v1  ;;  %v640_v2 = vld [vmem:[%s948_s1 + $0x8] sm:$0xff]  }
   0x2   :  { %27 = vst.msk [vmem:[#allocation2 + $0x8] sm:$0xff] %vm25_vm0, %v650_v1  ;;  %29 = vst.msk [vmem:[#allocation2 + $0x18] sm:$0xff] %vm25_vm0, %v650_v1  ;;  %610 = vmatprep.subr.bf16.mxu0 %v639_v0  ;;  %632 = vmatprep.subr.bf16.mxu1 %v639_v0  ;;  %v641_v3 = vld [vmem:[%s948_s1 + $0x10] sm:$0xff]   ;;  %v642_v4 = vld [vmem:[%s949_s0] sm:$0xff]  }
   0x3   :  { %30 = vst.msk [vmem:[#allocation2 + $0x20] sm:$0xff] %vm25_vm0, %v650_v1  ;;  %31 = vst.msk [vmem:[#allocation2 + $0x28] sm:$0xff] %vm25_vm0, %v650_v1  ;;  %611 = vmatpush3.bf16.msra.mxu0 %v639_v0  ;;  %635 = vmatpush3.bf16.msra.mxu1 %v639_v0  ;;  %v643_v5 = vld [vmem:[%s949_s0 + $0x20] sm:$0xff]   ;;  %v644_v6 = vld [vmem:[%s949_s0 + $0x8] sm:$0xff]  }
   0x4   :  { %32 = vst.msk [vmem:[#allocation2 + $0x30] sm:$0xff] %vm25_vm0, %v650_v1  ;;  %33 = vst.msk [vmem:[#allocation2 + $0x38] sm:$0xff] %vm25_vm0, %v650_v1  ;;  %612 = vmatprep.subr.bf16.mxu0 %v640_v2  ;;  %633 = vmatprep.subr.bf16.mxu1 %v640_v2  ;;  %v645_v7 = vld [vmem:[%s949_s0 + $0x28] sm:$0xff]   ;;  %v646_v8 = vld [vmem:[%s949_s0 + $0x10] sm:$0xff]  }
   0x5   :  { %34 = vst.msk [vmem:[#allocation2 + $0x40] sm:$0xff] %vm25_vm0, %v650_v1  ;;  %35 = vst.msk [vmem:[#allocation2 + $0x48] sm:$0xff] %vm25_vm0, %v650_v1  ;;  %616 = vmatprep.mubr.msk.bf16.mxu0 %vm138_vm1, %v642_v4  ;;  %624 = vmatprep.mubr.msk.bf16.mxu1 %vm138_vm1, %v643_v5  ;;  %v647_v9 = vld [vmem:[%s949_s0 + $0x30] sm:$0xff]   ;;  %v648_v10 = vld [vmem:[%s949_s0 + $0x18] sm:$0xff]  }
   0x6   :  { %36 = vst.msk [vmem:[#allocation2 + $0x50] sm:$0xff] %vm25_vm0, %v650_v1  ;;  %37 = vst.msk [vmem:[#allocation2 + $0x58] sm:$0xff] %vm25_vm0, %v650_v1  ;;  %v649_v11 = vld [vmem:[%s949_s0 + $0x38] sm:$0xff]   ;;  %v741_v26 = vld [vmem:[%s950_s4 + $0x8] sm:$0xff]  }
   0x7   :  { %38 = vst.msk [vmem:[#allocation2 + $0x60] sm:$0xff] %vm25_vm0, %v650_v1  ;;  %39 = vst.msk [vmem:[#allocation2 + $0x68] sm:$0xff] %vm25_vm0, %v650_v1  ;;  %613 = vmatpush3.bf16.msra.mxu0 %v640_v2  ;;  %636 = vmatpush3.bf16.msra.mxu1 %v640_v2  ;;  %v748_v31 = vld [vmem:[%s950_s4 + $0x28] sm:$0xff]   ;;  %v753_v32 = vld [vmem:[%s950_s4] sm:$0xff]   ;;  %v566_v44 = vunpack.c.l.bf16 %v741_v26  ;;  %v567_v50 = vunpack.c.h.bf16 %v741_v26 }
   0x8   :  { %40 = vst.msk [vmem:[#allocation2 + $0x70] sm:$0xff] %vm25_vm0, %v650_v1  ;;  %41 = vst.msk [vmem:[#allocation2 + $0x78] sm:$0xff] %vm25_vm0, %v650_v1  ;;  %614 = vmatprep.subr.bf16.mxu0 %v641_v3  ;;  %634 = vmatprep.subr.bf16.mxu1 %v641_v3  ;;  %v44_v12 = vld [vmem:[#allocation2 + $0x10] sm:$0xff]  ;;  %v42_v14 = vld [vmem:[#allocation2] sm:$0xff]  ;;  %v582_v45 = vunpack.c.l.bf16 %v748_v31  ;;  %v562_v46 = vunpack.c.l.bf16 %v753_v32  ;;  %v583_v51 = vunpack.c.h.bf16 %v748_v31  ;;  %v563_v52 = vunpack.c.h.bf16 %v753_v32 }
   0x9   :  { %v45_v18 = vld [vmem:[#allocation2 + $0x18] sm:$0xff]  ;;  %v43_v24 = vld [vmem:[#allocation2 + $0x8] sm:$0xff]  ;;  %v758_v33 = vld [vmem:[%s950_s4 + $0x20] sm:$0xff]  }
   0xa   :  { %v765_v40 = vld [vmem:[%s950_s4 + $0x18] sm:$0xff]   ;;  %v777_v42 = vld [vmem:[%s950_s4 + $0x10] sm:$0xff]   ;;  %v578_v47 = vunpack.c.l.bf16 %v758_v33  ;;  %v579_v53 = vunpack.c.h.bf16 %v758_v33  ;;  %v46_v54 = vld [vmem:[#allocation2 + $0x20] sm:$0xff] }
   0xb   :  { %615 = vmatpush3.bf16.msra.mxu0 %v641_v3  ;;  %637 = vmatpush3.bf16.msra.mxu1 %v641_v3  ;;  %v772_v41 = vld [vmem:[%s950_s4 + $0x38] sm:$0xff]   ;;  %v782_v43 = vld [vmem:[%s950_s4 + $0x30] sm:$0xff]   ;;  %v797_v56 = vld [vmem:[%s951_s2] ss:$0 sm:$0xff]  ;;  %v574_v58 = vunpack.c.l.bf16 %v765_v40  ;;  %v570_v61 = vunpack.c.l.bf16 %v777_v42  ;;  %v575_v5 = vunpack.c.h.bf16 %v765_v40 }
   0xc   :  { %v50_v15 = vld [vmem:[#allocation2 + $0x40] sm:$0xff]  ;;  %v51_v25 = vld [vmem:[#allocation2 + $0x48] sm:$0xff]  ;;  %v48_v48 = vld [vmem:[#allocation2 + $0x30] sm:$0xff]  ;;  %v590_v60 = vunpack.c.l.bf16 %v772_v41  ;;  %v586_v62 = vunpack.c.l.bf16 %v782_v43 }
   0xd   :  { %v52_v13 = vld [vmem:[#allocation2 + $0x50] sm:$0xff]  ;;  %v53_v19 = vld [vmem:[#allocation2 + $0x58] sm:$0xff] }
   0xe   :  { %617 = vmatmul.mubr.msk.bf16.vlgmr.msra.gmra.mrb[0].mxu0 %vm138_vm1, %v644_v6  ;;  %625 = vmatmul.mubr.msk.bf16.vlgmr.msra.gmra.mrb[0].mxu1 %vm138_vm1, %v645_v7  ;;  %v54_v55 = vld [vmem:[#allocation2 + $0x60] sm:$0xff]  ;;  %v49_v63 = vld [vmem:[#allocation2 + $0x38] sm:$0xff]  ;;  %v591_v6 = vunpack.c.h.bf16 %v772_v41  ;;  %v47_v7 = vld [vmem:[#allocation2 + $0x28] sm:$0xff] }
   0xf   :  { %620 = vmatprep.mubr.msk.bf16.mxu0 %vm138_vm1, %v646_v8  ;;  %628 = vmatprep.mubr.msk.bf16.mxu1 %vm138_vm1, %v647_v9  ;;  %v56_v49 = vld [vmem:[#allocation2 + $0x70] sm:$0xff]  ;;  %v57_v0 = vld [vmem:[#allocation2 + $0x78] sm:$0xff]  ;;  %v55_v8 = vld [vmem:[#allocation2 + $0x68] sm:$0xff] }
  0x16   :  { %621 = vmatmul.mubr.msk.bf16.gmra.mrb[4].mxu0 %vm138_vm1, %v648_v10  ;;  %629 = vmatmul.mubr.msk.bf16.gmra.mrb[4].mxu1 %vm138_vm1, %v649_v11  ;;  %v808_v10 = vld [vmem:[%s952_s3] ss:$0 sm:$0xff] }
  0xe1   :  { %v618_v16 = vpop.f32.mrb[0].mxu0  ;;  %v626_v17 = vpop.f32.mrb[0].mxu1 }
  0xe2   :  { %v262_v20 = vadd.f32 %v618_v16, %v44_v12  ;;  %v270_v21 = vadd.f32 %v626_v17, %v52_v13  ;;  %v197_v22 = vpop.f32.mrb[1].mxu0  ;;  %v229_v23 = vpop.f32.mrb[1].mxu1  ;;  %v571_v16 = vunpack.c.h.bf16 %v777_v42  ;;  %v587_v17 = vunpack.c.h.bf16 %v782_v43 }
  0xe3   :  { %v260_v27 = vadd.f32 %v197_v22, %v42_v14  ;;  %v268_v28 = vadd.f32 %v229_v23, %v50_v15  ;;  %v619_v29 = vpop.f32.mrb[2].mxu0  ;;  %v627_v30 = vpop.f32.mrb[2].mxu1 }
  0xe4   :  { %279 = vst.msk [vmem:[#allocation2 + $0x10] sm:$0xff] %vm25_vm0, %v262_v20  ;;  %287 = vst.msk [vmem:[#allocation2 + $0x50] sm:$0xff] %vm25_vm0, %v270_v21  ;;  %v263_v34 = vadd.f32 %v619_v29, %v45_v18  ;;  %v271_v35 = vadd.f32 %v627_v30, %v53_v19  ;;  %v200_v36 = vpop.f32.mrb[3].mxu0  ;;  %v232_v37 = vpop.f32.mrb[3].mxu1 }
  0xe5   :  { %277 = vst.msk [vmem:[#allocation2] sm:$0xff] %vm25_vm0, %v260_v27  ;;  %285 = vst.msk [vmem:[#allocation2 + $0x40] sm:$0xff] %vm25_vm0, %v268_v28  ;;  %v261_v38 = vadd.f32 %v200_v36, %v43_v24  ;;  %v269_v39 = vadd.f32 %v232_v37, %v51_v25 }
  0xe6   :  { %280 = vst.msk [vmem:[#allocation2 + $0x18] sm:$0xff] %vm25_vm0, %v263_v34  ;;  %288 = vst.msk [vmem:[#allocation2 + $0x58] sm:$0xff] %vm25_vm0, %v271_v35 }
  0xe7   :  { %278 = vst.msk [vmem:[#allocation2 + $0x8] sm:$0xff] %vm25_vm0, %v261_v38  ;;  %286 = vst.msk [vmem:[#allocation2 + $0x48] sm:$0xff] %vm25_vm0, %v269_v39 }
  0xe9   :  { %v622_v57 = vpop.f32.mrb[4].mxu0  ;;  %v630_v59 = vpop.f32.mrb[4].mxu1 }
  0xea   :  { %v266_v1 = vadd.f32 %v622_v57, %v48_v48  ;;  %v274_v2 = vadd.f32 %v630_v59, %v56_v49  ;;  %v213_v3 = vpop.f32.mrb[5].mxu0  ;;  %v245_v4 = vpop.f32.mrb[5].mxu1 }
  0xeb   :  { %v298_v9 = vld [vmem:[#allocation2 + $0x10] sm:$0xff]  ;;  %v264_v12 = vadd.f32 %v213_v3, %v46_v54  ;;  %v272_v13 = vadd.f32 %v245_v4, %v54_v55  ;;  %v623_v14 = vpop.f32.mrb[6].mxu0  ;;  %v631_v15 = vpop.f32.mrb[6].mxu1 }
  0xec   :  { %v306_v11 = vld [vmem:[#allocation2 + $0x50] sm:$0xff]  ;;  %v338_v18 = vmul.f32 %v797_v56, %v298_v9  ;;  %v296_v20 = vld [vmem:[#allocation2] sm:$0xff]  ;;  %283 = vst.msk [vmem:[#allocation2 + $0x30] sm:$0xff] %vm25_vm0, %v266_v1  ;;  %291 = vst.msk [vmem:[#allocation2 + $0x70] sm:$0xff] %vm25_vm0, %v274_v2  ;;  %v267_v22 = vadd.f32 %v623_v14, %v49_v63  ;;  %v275_v23 = vadd.f32 %v631_v15, %v57_v0  ;;  %v216_v24 = vpop.f32.mrb[7].mxu0  ;;  %v248_v25 = vpop.f32.mrb[7].mxu1 }
  0xed   :  { %v346_v19 = vmul.f32 %v797_v56, %v306_v11  ;;  %v304_v21 = vld [vmem:[#allocation2 + $0x40] sm:$0xff]  ;;  %v336_v27 = vmul.f32 %v797_v56, %v296_v20  ;;  %v299_v29 = vld [vmem:[#allocation2 + $0x18] sm:$0xff]  ;;  %281 = vst.msk [vmem:[#allocation2 + $0x20] sm:$0xff] %vm25_vm0, %v264_v12  ;;  %289 = vst.msk [vmem:[#allocation2 + $0x60] sm:$0xff] %vm25_vm0, %v272_v13  ;;  %v265_v34 = vadd.f32 %v216_v24, %v47_v7 }
  0xee   :  { %v344_v28 = vmul.f32 %v797_v56, %v304_v21  ;;  %v307_v30 = vld [vmem:[#allocation2 + $0x58] sm:$0xff]  ;;  %v273_v35 = vadd.f32 %v248_v25, %v55_v8  ;;  %v360_v36 = vadd.f32 %v808_v10, %v338_v18  ;;  %v339_v38 = vmul.f32 %v797_v56, %v299_v29  ;;  %v297_v48 = vld [vmem:[#allocation2 + $0x8] sm:$0xff]  ;;  %284 = vst.msk [vmem:[#allocation2 + $0x38] sm:$0xff] %vm25_vm0, %v267_v22 }
  0xef   :  { %v368_v37 = vadd.f32 %v808_v10, %v346_v19  ;;  %v347_v39 = vmul.f32 %v797_v56, %v307_v30  ;;  %v305_v49 = vld [vmem:[#allocation2 + $0x48] sm:$0xff]  ;;  %292 = vst.msk [vmem:[#allocation2 + $0x78] sm:$0xff] %vm25_vm0, %v275_v23  ;;  %v358_v54 = vadd.f32 %v808_v10, %v336_v27  ;;  %v337_v57 = vmul.f32 %v797_v56, %v297_v48 }
  0xf0   :  { %v366_v55 = vadd.f32 %v808_v10, %v344_v28  ;;  %v345_v59 = vmul.f32 %v797_v56, %v305_v49  ;;  %282 = vst.msk [vmem:[#allocation2 + $0x28] sm:$0xff] %vm25_vm0, %v265_v34  ;;  %290 = vst.msk [vmem:[#allocation2 + $0x68] sm:$0xff] %vm25_vm0, %v273_v35  ;;  %v392_v63 = vadd.f32 %v566_v44, %v360_v36 }
  0xf1   :  { %v400_v0 = vadd.f32 %v582_v45, %v368_v37  ;;  %v361_v1 = vadd.f32 %v808_v10, %v339_v38  ;;  %v369_v2 = vadd.f32 %v808_v10, %v347_v39  ;;  %v390_v3 = vadd.f32 %v562_v46, %v358_v54 }
  0xf2   :  { %v398_v4 = vadd.f32 %v578_v47, %v366_v55  ;;  %v359_v7 = vadd.f32 %v808_v10, %v337_v57  ;;  %v367_v8 = vadd.f32 %v808_v10, %v345_v59  ;;  %v408_v9 = vmax.f32 %v392_v63, 0.0 }
  0xf3   :  { %v416_v11 = vmax.f32 %v400_v0, 0.0  ;;  %v393_v44 = vadd.f32 %v567_v50, %v361_v1  ;;  %v401_v45 = vadd.f32 %v583_v51, %v369_v2  ;;  %v406_v12 = vmax.f32 %v390_v3, 0.0  ;;  %v302_v14 = vld [vmem:[#allocation2 + $0x30] sm:$0xff] }
  0xf4   :  { %v414_v13 = vmax.f32 %v398_v4, 0.0  ;;  %v391_v46 = vadd.f32 %v563_v52, %v359_v7  ;;  %v399_v47 = vadd.f32 %v579_v53, %v367_v8  ;;  %v310_v15 = vld [vmem:[#allocation2 + $0x70] sm:$0xff]  ;;  %v546_v18 = vpack.c.bf16 %v408_v9, %v408_v9  ;;  %v300_v22 = vld [vmem:[#allocation2 + $0x20] sm:$0xff] }
  0xf5   :  { %v554_v19 = vpack.c.bf16 %v416_v11, %v416_v11  ;;  %v409_v20 = vmax.f32 %v393_v44, 0.0  ;;  %v417_v21 = vmax.f32 %v401_v45, 0.0  ;;  %v308_v26 = vld [vmem:[#allocation2 + $0x60] sm:$0xff]  ;;  %v544_v50 = vpack.c.bf16 %v406_v12, %v406_v12  ;;  %v303_v24 = vld [vmem:[#allocation2 + $0x38] sm:$0xff] }
  0xf6   :  { %v552_v23 = vpack.c.bf16 %v414_v13, %v414_v13  ;;  %v407_v31 = vmax.f32 %v391_v46, 0.0  ;;  %v415_v51 = vmax.f32 %v399_v47, 0.0  ;;  %v311_v25 = vld [vmem:[#allocation2 + $0x78] sm:$0xff]  ;;  %489 = vst.msk [vmem:[%s953_s5 + $0x8] sm:$0xf] %vm486_vm2, %v546_v18  ;;  %v342_v52 = vmul.f32 %v797_v56, %v302_v14 }
  0xf7   :  { %497 = vst.msk [vmem:[%s953_s5 + $0x28] sm:$0xf] %vm486_vm2, %v554_v19  ;;  %v547_v32 = vpack.c.bf16 %v409_v20, %v409_v20  ;;  %v555_v33 = vpack.c.bf16 %v417_v21, %v417_v21  ;;  %v350_v53 = vmul.f32 %v797_v56, %v310_v15  ;;  %v301_v27 = vld [vmem:[#allocation2 + $0x28] sm:$0xff]  ;;  %487 = vst.msk [vmem:[%s953_s5] sm:$0xf] %vm486_vm2, %v544_v50 }
  0xf8   :  { %v309_v28 = vld [vmem:[#allocation2 + $0x68] sm:$0xff]  ;;  %495 = vst.msk [vmem:[%s953_s5 + $0x20] sm:$0xf] %vm486_vm2, %v552_v23  ;;  %v545_v29 = vpack.c.bf16 %v407_v31, %v407_v31  ;;  %v553_v30 = vpack.c.bf16 %v415_v51, %v415_v51  ;;  %v340_v34 = vmul.f32 %v797_v56, %v300_v22  ;;  %v348_v35 = vmul.f32 %v797_v56, %v308_v26 }
  0xf9   :  { %490 = vst.msk [vmem:[%s953_s5 + $0xc] sm:$0xf] %vm486_vm2, %v547_v32  ;;  %498 = vst.msk [vmem:[%s953_s5 + $0x2c] sm:$0xf] %vm486_vm2, %v555_v33  ;;  %v364_v36 = vadd.f32 %v808_v10, %v342_v52  ;;  %v372_v37 = vadd.f32 %v808_v10, %v350_v53  ;;  %v343_v38 = vmul.f32 %v797_v56, %v303_v24 }
  0xfa   :  { %v351_v39 = vmul.f32 %v797_v56, %v311_v25  ;;  %488 = vst.msk [vmem:[%s953_s5 + $0x4] sm:$0xf] %vm486_vm2, %v545_v29  ;;  %496 = vst.msk [vmem:[%s953_s5 + $0x24] sm:$0xf] %vm486_vm2, %v553_v30  ;;  %v362_v48 = vadd.f32 %v808_v10, %v340_v34  ;;  %v370_v49 = vadd.f32 %v808_v10, %v348_v35 }
  0xfb   :  { %v341_v54 = vmul.f32 %v797_v56, %v301_v27  ;;  %v349_v55 = vmul.f32 %v797_v56, %v309_v28  ;;  %v396_v57 = vadd.f32 %v574_v58, %v364_v36  ;;  %v404_v59 = vadd.f32 %v590_v60, %v372_v37 }
  0xfc   :  { %v365_v63 = vadd.f32 %v808_v10, %v343_v38  ;;  %v373_v0 = vadd.f32 %v808_v10, %v351_v39  ;;  %v394_v1 = vadd.f32 %v570_v61, %v362_v48  ;;  %v402_v2 = vadd.f32 %v586_v62, %v370_v49 }
  0xfd   :  { %v363_v3 = vadd.f32 %v808_v10, %v341_v54  ;;  %v371_v56 = vadd.f32 %v808_v10, %v349_v55  ;;  %v412_v4 = vmax.f32 %v396_v57, 0.0  ;;  %v420_v7 = vmax.f32 %v404_v59, 0.0 }
  0xfe   :  { %v397_v58 = vadd.f32 %v575_v5, %v365_v63  ;;  %v405_v60 = vadd.f32 %v591_v6, %v373_v0  ;;  %v410_v8 = vmax.f32 %v394_v1, 0.0  ;;  %v418_v9 = vmax.f32 %v402_v2, 0.0 }
  0xff   :  { %v395_v61 = vadd.f32 %v571_v16, %v363_v3  ;;  %v403_v62 = vadd.f32 %v587_v17, %v371_v56  ;;  %v550_v11 = vpack.c.bf16 %v412_v4, %v412_v4  ;;  %v558_v44 = vpack.c.bf16 %v420_v7, %v420_v7 }
 0x100   :  { %v413_v45 = vmax.f32 %v397_v58, 0.0  ;;  %v421_v10 = vmax.f32 %v405_v60, 0.0  ;;  %v548_v12 = vpack.c.bf16 %v410_v8, %v410_v8  ;;  %v556_v13 = vpack.c.bf16 %v418_v9, %v418_v9 }
 0x101   :  { %v411_v46 = vmax.f32 %v395_v61, 0.0  ;;  %v419_v40 = vmax.f32 %v403_v62, 0.0  ;;  %493 = vst.msk [vmem:[%s953_s5 + $0x18] sm:$0xf] %vm486_vm2, %v550_v11  ;;  %501 = vst.msk [vmem:[%s953_s5 + $0x38] sm:$0xf] %vm486_vm2, %v558_v44 }
 0x102   :  { %v551_v41 = vpack.c.bf16 %v413_v45, %v413_v45  ;;  %v559_v42 = vpack.c.bf16 %v421_v10, %v421_v10  ;;  %491 = vst.msk [vmem:[%s953_s5 + $0x10] sm:$0xf] %vm486_vm2, %v548_v12  ;;  %499 = vst.msk [vmem:[%s953_s5 + $0x30] sm:$0xf] %vm486_vm2, %v556_v13 }
 0x103   :  { %v549_v43 = vpack.c.bf16 %v411_v46, %v411_v46  ;;  %v557_v5 = vpack.c.bf16 %v419_v40, %v419_v40 }
 0x104   :  { %494 = vst.msk [vmem:[%s953_s5 + $0x1c] sm:$0xf] %vm486_vm2, %v551_v41  ;;  %502 = vst.msk [vmem:[%s953_s5 + $0x3c] sm:$0xf] %vm486_vm2, %v559_v42 }
 0x105   :  { %492 = vst.msk [vmem:[%s953_s5 + $0x14] sm:$0xf] %vm486_vm2, %v549_v43  ;;  %500 = vst.msk [vmem:[%s953_s5 + $0x34] sm:$0xf] %vm486_vm2, %v557_v5 }

// kernel: erfnet_forward.153
= control target key start
LH: loop header
LB: loop body
LE: loop exit
PB: predicated region body
PF: predicated region fallthrough
CT: control target
= control target key end

     0   :  { %vm22_vm0 = vcmask 654336   ;;  %v417_v1 = vmov 0.0   ;;  %vm119_vm1 = vcmask 130048   ;;  %s616_s1 = inlined_call_operand.vmem [shape: bf16[16,80], index: 1, kind: input, shape index: {}]   ;;  %s617_s0 = inlined_call_operand.vmem [shape: bf16[128,16], index: 0, kind: input, shape index: {}]   ;;  %s618_s2 = inlined_call_operand.vmem [shape: f32[1,80], index: 2, kind: input, shape index: {}]   ;;  %s619_s3 = inlined_call_operand.vmem [shape: f32[1,80], index: 3, kind: input, shape index: {}]   ;;  %s620_s4 = inlined_call_operand.vmem [shape: f32[128,80], index: 4, kind: output, shape index: {}]  }
   0x1   :  { %v408_v0 = vld [vmem:[%s616_s1] sm:$0xff]   ;;  %25 = vst.msk [vmem:[#allocation2 + $0x10] sm:$0xff] %vm22_vm0, %v417_v1  ;;  %23 = vst.msk [vmem:[#allocation2] sm:$0xff] %vm22_vm0, %v417_v1  ;;  %v411_v4 = vld [vmem:[%s617_s0 + $0x8] sm:$0xff]  }
   0x2   :  { %24 = vst.msk [vmem:[#allocation2 + $0x8] sm:$0xff] %vm22_vm0, %v417_v1  ;;  %26 = vst.msk [vmem:[#allocation2 + $0x18] sm:$0xff] %vm22_vm0, %v417_v1  ;;  %v409_v2 = vld [vmem:[%s617_s0] sm:$0xff]   ;;  %387 = vmatprep.subr.bf16.mxu0 %v408_v0  ;;  %405 = vmatprep.subr.bf16.mxu1 %v408_v0  ;;  %v412_v5 = vld [vmem:[%s617_s0 + $0x28] sm:$0xff]  }
   0x3   :  { %27 = vst.msk [vmem:[#allocation2 + $0x20] sm:$0xff] %vm22_vm0, %v417_v1  ;;  %28 = vst.msk [vmem:[#allocation2 + $0x28] sm:$0xff] %vm22_vm0, %v417_v1  ;;  %v410_v3 = vld [vmem:[%s617_s0 + $0x20] sm:$0xff]   ;;  %388 = vmatpush3.bf16.msra.mxu0 %v408_v0  ;;  %406 = vmatpush3.bf16.msra.mxu1 %v408_v0  ;;  %v413_v6 = vld [vmem:[%s617_s0 + $0x10] sm:$0xff]  }
   0x4   :  { %29 = vst.msk [vmem:[#allocation2 + $0x30] sm:$0xff] %vm22_vm0, %v417_v1  ;;  %30 = vst.msk [vmem:[#allocation2 + $0x38] sm:$0xff] %vm22_vm0, %v417_v1  ;;  %389 = vmatprep.mubr.msk.bf16.mxu0 %vm119_vm1, %v409_v2  ;;  %397 = vmatprep.mubr.msk.bf16.mxu1 %vm119_vm1, %v410_v3  ;;  %v414_v7 = vld [vmem:[%s617_s0 + $0x30] sm:$0xff]   ;;  %v415_v8 = vld [vmem:[%s617_s0 + $0x18] sm:$0xff]  }
   0x5   :  { %31 = vst.msk [vmem:[#allocation2 + $0x40] sm:$0xff] %vm22_vm0, %v417_v1  ;;  %32 = vst.msk [vmem:[#allocation2 + $0x48] sm:$0xff] %vm22_vm0, %v417_v1  ;;  %v416_v9 = vld [vmem:[%s617_s0 + $0x38] sm:$0xff]   ;;  %v505_v38 = vld [vmem:[%s618_s2] ss:$0 sm:$0xff] }
   0x6   :  { %33 = vst.msk [vmem:[#allocation2 + $0x50] sm:$0xff] %vm22_vm0, %v417_v1  ;;  %34 = vst.msk [vmem:[#allocation2 + $0x58] sm:$0xff] %vm22_vm0, %v417_v1  ;;  %390 = vmatmul.mubr.msk.bf16.vlgmr.msra.gmra.mrb[0].mxu0 %vm119_vm1, %v411_v4  ;;  %398 = vmatmul.mubr.msk.bf16.vlgmr.msra.gmra.mrb[0].mxu1 %vm119_vm1, %v412_v5  ;;  %v510_v50 = vld [vmem:[%s619_s3] ss:$0 sm:$0xff] }
   0x7   :  { %35 = vst.msk [vmem:[#allocation2 + $0x60] sm:$0xff] %vm22_vm0, %v417_v1  ;;  %36 = vst.msk [vmem:[#allocation2 + $0x68] sm:$0xff] %vm22_vm0, %v417_v1  ;;  %393 = vmatprep.mubr.msk.bf16.mxu0 %vm119_vm1, %v413_v6  ;;  %401 = vmatprep.mubr.msk.bf16.mxu1 %vm119_vm1, %v414_v7 }
   0x8   :  { %37 = vst.msk [vmem:[#allocation2 + $0x70] sm:$0xff] %vm22_vm0, %v417_v1  ;;  %38 = vst.msk [vmem:[#allocation2 + $0x78] sm:$0xff] %vm22_vm0, %v417_v1  ;;  %v41_v10 = vld [vmem:[#allocation2 + $0x10] sm:$0xff]  ;;  %v39_v12 = vld [vmem:[#allocation2] sm:$0xff] }
   0x9   :  { %v42_v16 = vld [vmem:[#allocation2 + $0x18] sm:$0xff]  ;;  %v40_v22 = vld [vmem:[#allocation2 + $0x8] sm:$0xff] }
   0xa   :  { %v43_v36 = vld [vmem:[#allocation2 + $0x20] sm:$0xff]  ;;  %v44_v47 = vld [vmem:[#allocation2 + $0x28] sm:$0xff] }
   0xb   :  { %v45_v34 = vld [vmem:[#allocation2 + $0x30] sm:$0xff]  ;;  %v46_v41 = vld [vmem:[#allocation2 + $0x38] sm:$0xff] }
   0xc   :  { %v47_v13 = vld [vmem:[#allocation2 + $0x40] sm:$0xff]  ;;  %v48_v23 = vld [vmem:[#allocation2 + $0x48] sm:$0xff] }
   0xd   :  { %v49_v11 = vld [vmem:[#allocation2 + $0x50] sm:$0xff]  ;;  %v50_v17 = vld [vmem:[#allocation2 + $0x58] sm:$0xff] }
   0xe   :  { %394 = vmatmul.mubr.msk.bf16.gmra.mrb[4].mxu0 %vm119_vm1, %v415_v8  ;;  %402 = vmatmul.mubr.msk.bf16.gmra.mrb[4].mxu1 %vm119_vm1, %v416_v9  ;;  %v51_v37 = vld [vmem:[#allocation2 + $0x60] sm:$0xff]  ;;  %v52_v48 = vld [vmem:[#allocation2 + $0x68] sm:$0xff] }
   0xf   :  { %v53_v35 = vld [vmem:[#allocation2 + $0x70] sm:$0xff]  ;;  %v54_v42 = vld [vmem:[#allocation2 + $0x78] sm:$0xff] }
  0xd9   :  { %v391_v14 = vpop.f32.mrb[0].mxu0  ;;  %v399_v15 = vpop.f32.mrb[0].mxu1 }
  0xda   :  { %v243_v18 = vadd.f32 %v391_v14, %v41_v10  ;;  %v251_v19 = vadd.f32 %v399_v15, %v49_v11  ;;  %v178_v20 = vpop.f32.mrb[1].mxu0  ;;  %v210_v21 = vpop.f32.mrb[1].mxu1 }
  0xdb   :  { %v241_v24 = vadd.f32 %v178_v20, %v39_v12  ;;  %v249_v25 = vadd.f32 %v210_v21, %v47_v13  ;;  %v392_v26 = vpop.f32.mrb[2].mxu0  ;;  %v400_v27 = vpop.f32.mrb[2].mxu1 }
  0xdc   :  { %260 = vst.msk [vmem:[#allocation2 + $0x10] sm:$0xff] %vm22_vm0, %v243_v18  ;;  %268 = vst.msk [vmem:[#allocation2 + $0x50] sm:$0xff] %vm22_vm0, %v251_v19  ;;  %v244_v28 = vadd.f32 %v392_v26, %v42_v16  ;;  %v252_v29 = vadd.f32 %v400_v27, %v50_v17  ;;  %v181_v30 = vpop.f32.mrb[3].mxu0  ;;  %v213_v31 = vpop.f32.mrb[3].mxu1 }
  0xdd   :  { %258 = vst.msk [vmem:[#allocation2] sm:$0xff] %vm22_vm0, %v241_v24  ;;  %266 = vst.msk [vmem:[#allocation2 + $0x40] sm:$0xff] %vm22_vm0, %v249_v25  ;;  %v242_v32 = vadd.f32 %v181_v30, %v40_v22  ;;  %v250_v33 = vadd.f32 %v213_v31, %v48_v23 }
  0xde   :  { %261 = vst.msk [vmem:[#allocation2 + $0x18] sm:$0xff] %vm22_vm0, %v244_v28  ;;  %269 = vst.msk [vmem:[#allocation2 + $0x58] sm:$0xff] %vm22_vm0, %v252_v29 }
  0xdf   :  { %259 = vst.msk [vmem:[#allocation2 + $0x8] sm:$0xff] %vm22_vm0, %v242_v32  ;;  %267 = vst.msk [vmem:[#allocation2 + $0x48] sm:$0xff] %vm22_vm0, %v250_v33 }
  0xe1   :  { %v395_v39 = vpop.f32.mrb[4].mxu0  ;;  %v403_v40 = vpop.f32.mrb[4].mxu1 }
  0xe2   :  { %v247_v43 = vadd.f32 %v395_v39, %v45_v34  ;;  %v255_v44 = vadd.f32 %v403_v40, %v53_v35  ;;  %v194_v45 = vpop.f32.mrb[5].mxu0  ;;  %v226_v46 = vpop.f32.mrb[5].mxu1 }
  0xe3   :  { %v279_v49 = vld [vmem:[#allocation2 + $0x10] sm:$0xff]  ;;  %v245_v52 = vadd.f32 %v194_v45, %v43_v36  ;;  %v253_v53 = vadd.f32 %v226_v46, %v51_v37  ;;  %v396_v54 = vpop.f32.mrb[6].mxu0  ;;  %v404_v55 = vpop.f32.mrb[6].mxu1 }
  0xe4   :  { %v287_v51 = vld [vmem:[#allocation2 + $0x50] sm:$0xff]  ;;  %v303_v56 = vmul.f32 %v505_v38, %v279_v49  ;;  %v277_v58 = vld [vmem:[#allocation2] sm:$0xff]  ;;  %264 = vst.msk [vmem:[#allocation2 + $0x30] sm:$0xff] %vm22_vm0, %v247_v43  ;;  %272 = vst.msk [vmem:[#allocation2 + $0x70] sm:$0xff] %vm22_vm0, %v255_v44  ;;  %v248_v60 = vadd.f32 %v396_v54, %v46_v41  ;;  %v256_v61 = vadd.f32 %v404_v55, %v54_v42  ;;  %v197_v62 = vpop.f32.mrb[7].mxu0  ;;  %v229_v63 = vpop.f32.mrb[7].mxu1 }
  0xe5   :  { %v311_v57 = vmul.f32 %v505_v38, %v287_v51  ;;  %v285_v59 = vld [vmem:[#allocation2 + $0x40] sm:$0xff]  ;;  %v301_v0 = vmul.f32 %v505_v38, %v277_v58  ;;  %v280_v2 = vld [vmem:[#allocation2 + $0x18] sm:$0xff]  ;;  %262 = vst.msk [vmem:[#allocation2 + $0x20] sm:$0xff] %vm22_vm0, %v245_v52  ;;  %270 = vst.msk [vmem:[#allocation2 + $0x60] sm:$0xff] %vm22_vm0, %v253_v53  ;;  %v246_v4 = vadd.f32 %v197_v62, %v44_v47 }
  0xe6   :  { %v309_v1 = vmul.f32 %v505_v38, %v285_v59  ;;  %v288_v3 = vld [vmem:[#allocation2 + $0x58] sm:$0xff]  ;;  %v254_v5 = vadd.f32 %v229_v63, %v52_v48  ;;  %v325_v6 = vadd.f32 %v510_v50, %v303_v56  ;;  %v304_v8 = vmul.f32 %v505_v38, %v280_v2  ;;  %v278_v10 = vld [vmem:[#allocation2 + $0x8] sm:$0xff]  ;;  %265 = vst.msk [vmem:[#allocation2 + $0x38] sm:$0xff] %vm22_vm0, %v248_v60 }
  0xe7   :  { %v333_v7 = vadd.f32 %v510_v50, %v311_v57  ;;  %v312_v9 = vmul.f32 %v505_v38, %v288_v3  ;;  %v286_v11 = vld [vmem:[#allocation2 + $0x48] sm:$0xff]  ;;  %273 = vst.msk [vmem:[#allocation2 + $0x78] sm:$0xff] %vm22_vm0, %v256_v61  ;;  %v323_v12 = vadd.f32 %v510_v50, %v301_v0  ;;  %v302_v14 = vmul.f32 %v505_v38, %v278_v10 }
  0xe8   :  { %v331_v13 = vadd.f32 %v510_v50, %v309_v1  ;;  %v310_v15 = vmul.f32 %v505_v38, %v286_v11  ;;  %263 = vst.msk [vmem:[#allocation2 + $0x28] sm:$0xff] %vm22_vm0, %v246_v4  ;;  %271 = vst.msk [vmem:[#allocation2 + $0x68] sm:$0xff] %vm22_vm0, %v254_v5  ;;  %v326_v16 = vadd.f32 %v510_v50, %v304_v8 }
  0xe9   :  { %341 = vst.msk [vmem:[%s620_s4 + $0x10] sm:$0xff] %vm22_vm0, %v325_v6  ;;  %349 = vst.msk [vmem:[%s620_s4 + $0x50] sm:$0xff] %vm22_vm0, %v333_v7  ;;  %v334_v17 = vadd.f32 %v510_v50, %v312_v9  ;;  %v324_v18 = vadd.f32 %v510_v50, %v302_v14 }
  0xea   :  { %339 = vst.msk [vmem:[%s620_s4] sm:$0xff] %vm22_vm0, %v323_v12  ;;  %347 = vst.msk [vmem:[%s620_s4 + $0x40] sm:$0xff] %vm22_vm0, %v331_v13  ;;  %v332_v19 = vadd.f32 %v510_v50, %v310_v15 }
  0xeb   :  { %342 = vst.msk [vmem:[%s620_s4 + $0x18] sm:$0xff] %vm22_vm0, %v326_v16  ;;  %350 = vst.msk [vmem:[%s620_s4 + $0x58] sm:$0xff] %vm22_vm0, %v334_v17  ;;  %v283_v20 = vld [vmem:[#allocation2 + $0x30] sm:$0xff] }
  0xec   :  { %340 = vst.msk [vmem:[%s620_s4 + $0x8] sm:$0xff] %vm22_vm0, %v324_v18  ;;  %348 = vst.msk [vmem:[%s620_s4 + $0x48] sm:$0xff] %vm22_vm0, %v332_v19  ;;  %v291_v21 = vld [vmem:[#allocation2 + $0x70] sm:$0xff]  ;;  %v307_v22 = vmul.f32 %v505_v38, %v283_v20  ;;  %v281_v24 = vld [vmem:[#allocation2 + $0x20] sm:$0xff] }
  0xed   :  { %v315_v23 = vmul.f32 %v505_v38, %v291_v21  ;;  %v289_v25 = vld [vmem:[#allocation2 + $0x60] sm:$0xff]  ;;  %v305_v26 = vmul.f32 %v505_v38, %v281_v24  ;;  %v284_v28 = vld [vmem:[#allocation2 + $0x38] sm:$0xff] }
  0xee   :  { %v313_v27 = vmul.f32 %v505_v38, %v289_v25  ;;  %v292_v29 = vld [vmem:[#allocation2 + $0x78] sm:$0xff]  ;;  %v329_v30 = vadd.f32 %v510_v50, %v307_v22  ;;  %v308_v32 = vmul.f32 %v505_v38, %v284_v28 }
  0xef   :  { %v337_v31 = vadd.f32 %v510_v50, %v315_v23  ;;  %v316_v33 = vmul.f32 %v505_v38, %v292_v29  ;;  %v282_v34 = vld [vmem:[#allocation2 + $0x28] sm:$0xff]  ;;  %v327_v36 = vadd.f32 %v510_v50, %v305_v26 }
  0xf0   :  { %v290_v35 = vld [vmem:[#allocation2 + $0x68] sm:$0xff]  ;;  %v335_v37 = vadd.f32 %v510_v50, %v313_v27  ;;  %v306_v39 = vmul.f32 %v505_v38, %v282_v34  ;;  %345 = vst.msk [vmem:[%s620_s4 + $0x30] sm:$0xff] %vm22_vm0, %v329_v30  ;;  %v330_v41 = vadd.f32 %v510_v50, %v308_v32 }
  0xf1   :  { %v314_v40 = vmul.f32 %v505_v38, %v290_v35  ;;  %353 = vst.msk [vmem:[%s620_s4 + $0x70] sm:$0xff] %vm22_vm0, %v337_v31  ;;  %v338_v42 = vadd.f32 %v510_v50, %v316_v33  ;;  %343 = vst.msk [vmem:[%s620_s4 + $0x20] sm:$0xff] %vm22_vm0, %v327_v36 }
  0xf2   :  { %351 = vst.msk [vmem:[%s620_s4 + $0x60] sm:$0xff] %vm22_vm0, %v335_v37  ;;  %v328_v38 = vadd.f32 %v510_v50, %v306_v39  ;;  %346 = vst.msk [vmem:[%s620_s4 + $0x38] sm:$0xff] %vm22_vm0, %v330_v41 }
  0xf3   :  { %v336_v43 = vadd.f32 %v510_v50, %v314_v40  ;;  %354 = vst.msk [vmem:[%s620_s4 + $0x78] sm:$0xff] %vm22_vm0, %v338_v42 }
  0xf4   :  { %344 = vst.msk [vmem:[%s620_s4 + $0x28] sm:$0xff] %vm22_vm0, %v328_v38 }
  0xf5   :  { %352 = vst.msk [vmem:[%s620_s4 + $0x68] sm:$0xff] %vm22_vm0, %v336_v43 }

</bundles_post_ra>
